<compile_context>
chip_gen: v7x
topology: tpu7x:2x2x1
jax: 0.10.0
libtpu: 0.0.40
codegen_flags: <defaults>
</compile_context>

<pallas_src>
import jax
import jax.numpy as jnp
from jax.experimental import pallas as pl
from jax.experimental.pallas import tpu as pltpu

_WEIGHT_DTYPE = jnp.bfloat16        # MXU operand dtype; accumulation stays f32
_TRUNK_TM_MAX = 512                 # max row tile (v6e could go 1024; 512 fits all gens)
_VMEM_LIMIT = 40 * 1024 * 1024      # well under v7x's 64 MiB physical VMEM


def _round_up(x, m):
    return ((x + m - 1) // m) * m


def _pick_trunk_tile(m):
    """Row tile for the fused trunk.

    Small batches: one exact tile (row dim == array dim is always legal).
    B >= 64: split into >= 2 tiles so the "parallel" M axis can shard across
    v7x's two TensorCores (each TC streams its own weight copy, which is cheap
    in bf16).  Capped at _TRUNK_TM_MAX so VMEM stays comfortable everywhere.
    """
    if m < 64:
        return m
    return min(_round_up(-(-m // 2), 8), _TRUNK_TM_MAX)


def _resident_spec(shape):
    """Weight/bias spec: constant index_map -> block is resident across the grid.
    Single-buffered when supported (double-buffering a constant block never
    overlaps anything, it only doubles the VMEM allocation)."""
    idx = lambda i: (0, 0)
    try:
        return pl.BlockSpec(shape, idx, pipeline_mode=pl.Buffered(1))
    except (AttributeError, TypeError):
        return pl.BlockSpec(shape, idx)


# ----------------------------------------------------------------------------
# Conv stem (im2col-free): lax conv + ReLU, NCHW in / NCHW out.
# Review option (c): the stem is tiny; avoid the patches tensor + relayouts.
# ----------------------------------------------------------------------------
def conv_stem(obs, conv_w, conv_b, *, stride=2, pad=1):
    y = jax.lax.conv_general_dilated(
        obs, conv_w,
        window_strides=(stride, stride),
        padding=((pad, pad), (pad, pad)),
        dimension_numbers=("NCHW", "OIHW", "NCHW"),
    )
    return jnp.maximum(y + conv_b.reshape(1, -1, 1, 1), 0.0)


# ----------------------------------------------------------------------------
# Fused fc trunk + merged heads, one Pallas launch.
# fc0 512->1600 (relu), fc1 1600->512 (relu), fc2 512->512 (relu),
# merged head 512->8 ([logits | value]).  Weights resident in VMEM,
# activations held in VMEM scratch -> no intermediate HBM round trips.
# ----------------------------------------------------------------------------
def _trunk_kernel(h0_ref, w0_ref, b0_ref, w1_ref, b1_ref, w2_ref, b2_ref,
                  wh_ref, bh_ref, o_ref, h1_ref, h2_ref):
    cdt = w0_ref.dtype  # bf16 MXU operands; f32 accumulation / bias / ReLU
    # fc0: 512 -> 1600 (ReLU), activation kept in VMEM scratch (f32)
    h1_ref[...] = jnp.maximum(
        jnp.dot(h0_ref[...].astype(cdt), w0_ref[...],
                preferred_element_type=jnp.float32) + b0_ref[...], 0.0)
    # fc1: 1600 -> 512 (ReLU)
    h2_ref[...] = jnp.maximum(
        jnp.dot(h1_ref[...].astype(cdt), w1_ref[...],
                preferred_element_type=jnp.float32) + b1_ref[...], 0.0)
    # fc2: 512 -> 512 (ReLU)
    h3 = jnp.maximum(
        jnp.dot(h2_ref[...].astype(cdt), w2_ref[...],
                preferred_element_type=jnp.float32) + b2_ref[...], 0.0)
    # merged heads: 512 -> 8  (logits[:, :7] | value[:, 7])
    o_ref[...] = (jnp.dot(h3.astype(cdt), wh_ref[...],
                          preferred_element_type=jnp.float32)
                  + bh_ref[...]).astype(o_ref.dtype)


def fused_trunk(h0, w0, b0, w1, b1, w2, b2, wh, bh):
    m, D0 = h0.shape
    assert D0 == w0.shape[0], (
        f"flattened conv output dim {D0} != fc0 input dim {w0.shape[0]}; "
        "obs spatial size / conv stem config mismatch")
    H1, H2, H3, NH = w0.shape[1], w1.shape[1], w2.shape[1], wh.shape[1]

    tm = _pick_trunk_tile(m)
    gm = pl.cdiv(m, tm)

    out = pl.pallas_call(
        _trunk_kernel,
        out_shape=jax.ShapeDtypeStruct((m, NH), jnp.float32),
        grid_spec=pltpu.PrefetchScalarGridSpec(
            num_scalar_prefetch=0,
            grid=(gm,),
            in_specs=[
                pl.BlockSpec((tm, D0), lambda i: (i, 0)),   # h0 row tile (f32, cast in-kernel)
                _resident_spec((D0, H1)),                   # w0 (bf16, resident)
                _resident_spec((1, H1)),                    # b0 (f32)
                _resident_spec((H1, H2)),                   # w1
                _resident_spec((1, H2)),                    # b1
                _resident_spec((H2, H3)),                   # w2
                _resident_spec((1, H3)),                    # b2
                _resident_spec((H3, NH)),                   # merged head w
                _resident_spec((1, NH)),                    # merged head b
            ],
            out_specs=pl.BlockSpec((tm, NH), lambda i: (i, 0)),
            scratch_shapes=[
                pltpu.VMEM((tm, H1), jnp.float32),          # fc0 activation
                pltpu.VMEM((tm, H2), jnp.float32),          # fc1 activation
            ],
        ),
        compiler_params=pltpu.CompilerParams(
            dimension_semantics=("parallel",),   # M tiles shard across v7x TCs
            vmem_limit_bytes=_VMEM_LIMIT,
        ),
    )(h0.astype(jnp.float32), w0, b0, w1, b1, w2, b2, wh, bh)
    return out


# ----------------------------------------------------------------------------
# Params: PyTorch-layout init + one-time preparation (merge heads, pre-shape
# biases, bf16 weight cast).  fc0_w is used unchanged: the lax conv output is
# flattened in native NCHW (torch) order.
# ----------------------------------------------------------------------------
def init_params(key, in_ch=4, conv_out=8, k=3, flat_dim=512,
                hiddens=(1600, 512, 512), num_outputs=7):
    ks = jax.random.split(key, 16)

    def dense(kk, fan_in, fan_out):
        scale = 1.0 / jnp.sqrt(jnp.float32(fan_in))
        w = jax.random.uniform(kk, (fan_in, fan_out), jnp.float32, -scale, scale)
        b = jnp.zeros((fan_out,), jnp.float32)
        return w, b

    params = {}
    # conv weight in PyTorch layout [Cout, Cin, kH, kW]
    scale = 1.0 / jnp.sqrt(jnp.float32(in_ch * k * k))
    params["conv_w"] = jax.random.uniform(
        ks[0], (conv_out, in_ch, k, k), jnp.float32, -scale, scale)
    params["conv_b"] = jnp.zeros((conv_out,), jnp.float32)

    dims = [flat_dim, *hiddens]
    for i in range(len(hiddens)):
        params[f"fc{i}_w"], params[f"fc{i}_b"] = dense(ks[1 + i], dims[i], dims[i + 1])
    params["logits_w"], params["logits_b"] = dense(ks[10], hiddens[-1], num_outputs)
    params["vf_w"], params["vf_b"] = dense(ks[11], hiddens[-1], 1)
    return params


def prepare_params(params):
    prep = {}
    prep["conv_w"] = params["conv_w"].astype(jnp.float32)     # OIHW, for lax.conv
    prep["conv_b"] = params["conv_b"].astype(jnp.float32)

    prep["w0"] = params["fc0_w"].astype(_WEIGHT_DTYPE)
    prep["b0"] = params["fc0_b"].reshape(1, -1).astype(jnp.float32)
    prep["w1"] = params["fc1_w"].astype(_WEIGHT_DTYPE)
    prep["b1"] = params["fc1_b"].reshape(1, -1).astype(jnp.float32)
    prep["w2"] = params["fc2_w"].astype(_WEIGHT_DTYPE)
    prep["b2"] = params["fc2_b"].reshape(1, -1).astype(jnp.float32)

    # merged heads: [512, 7+1]; column 7 is the value head
    prep["wh"] = jnp.concatenate(
        [params["logits_w"], params["vf_w"]], axis=1).astype(_WEIGHT_DTYPE)
    prep["bh"] = jnp.concatenate(
        [params["logits_b"], params["vf_b"]], axis=0).reshape(1, -1).astype(jnp.float32)
    return prep


# ----------------------------------------------------------------------------
# Forward: conv stem + fused trunk/heads.  Returns (logits [B, 7], value [B]).
# ----------------------------------------------------------------------------
def dev_net_with_cnn_forward(prep, obs, *, stride=2, pad=1):
    obs = obs.astype(jnp.float32)            # mirrors input_dict['obs'].float()
    B = obs.shape[0]

    conv = conv_stem(obs, prep["conv_w"], prep["conv_b"], stride=stride, pad=pad)
    h0 = conv.reshape(B, -1)                 # NCHW flatten == torch .view(B, -1)

    out = fused_trunk(h0, prep["w0"], prep["b0"], prep["w1"], prep["b1"],
                      prep["w2"], prep["b2"], prep["wh"], prep["bh"])   # [B, 8]
    num_outputs = out.shape[1] - 1
    logits = out[:, :num_outputs]            # [B, 7]
    value = out[:, num_outputs]              # [B]  (torch.reshape(vf, [-1]))
    return logits, value


if __name__ == "__main__":
    key = jax.random.PRNGKey(0)
    pkey, xkey = jax.random.split(key)

    B, C, H, W = 2, 4, 16, 16
    obs = jax.random.normal(xkey, (B, C, H, W), jnp.float32)

    params = init_params(pkey, in_ch=C)
    prep = prepare_params(params)

    fwd = jax.jit(dev_net_with_cnn_forward)
    logits, value = fwd(prep, obs)
    jax.block_until_ready((logits, value))

    assert logits.shape == (B, 7), logits.shape
    assert value.shape == (B,), value.shape
    assert bool(jnp.isfinite(logits).all()) and bool(jnp.isfinite(value).all())
    print("KERNEL_OK")
</pallas_src>

<mosaic_0001>
module attributes {stable_mosaic.version = 11 : i64} {
  func.func @_trunk_kernel(%arg0: i32, %arg1: memref<2x512xf32, #tpu.memory_space<vmem>>, %arg2: memref<512x1600xbf16, #tpu.memory_space<vmem>>, %arg3: memref<1x1600xf32, #tpu.memory_space<vmem>>, %arg4: memref<1600x512xbf16, #tpu.memory_space<vmem>>, %arg5: memref<1x512xf32, #tpu.memory_space<vmem>>, %arg6: memref<512x512xbf16, #tpu.memory_space<vmem>>, %arg7: memref<1x512xf32, #tpu.memory_space<vmem>>, %arg8: memref<512x8xbf16, #tpu.memory_space<vmem>>, %arg9: memref<1x8xf32, #tpu.memory_space<vmem>>, %arg10: memref<2x8xf32, #tpu.memory_space<vmem>>, %arg11: memref<2x1600xf32, #tpu.memory_space<vmem>>, %arg12: memref<2x512xf32, #tpu.memory_space<vmem>>) attributes {dimension_semantics = [#tpu.dimension_semantics<parallel>], iteration_bounds = array<i64: 1>, scalar_prefetch = 0 : i64, scratch_operands = 2 : i64, tpu.core_type = #tpu.core_type<tc>, window_params = [{transform_indices = @transform_0, window_bounds = array<i64: 2, 512>}, {pipeline_mode = #tpu.pipeline_mode<synchronous>, transform_indices = @transform_1, window_bounds = array<i64: 512, 1600>}, {pipeline_mode = #tpu.pipeline_mode<synchronous>, transform_indices = @transform_2, window_bounds = array<i64: 1, 1600>}, {pipeline_mode = #tpu.pipeline_mode<synchronous>, transform_indices = @transform_3, window_bounds = array<i64: 1600, 512>}, {pipeline_mode = #tpu.pipeline_mode<synchronous>, transform_indices = @transform_4, window_bounds = array<i64: 1, 512>}, {pipeline_mode = #tpu.pipeline_mode<synchronous>, transform_indices = @transform_5, window_bounds = array<i64: 512, 512>}, {pipeline_mode = #tpu.pipeline_mode<synchronous>, transform_indices = @transform_6, window_bounds = array<i64: 1, 512>}, {pipeline_mode = #tpu.pipeline_mode<synchronous>, transform_indices = @transform_7, window_bounds = array<i64: 512, 8>}, {pipeline_mode = #tpu.pipeline_mode<synchronous>, transform_indices = @transform_8, window_bounds = array<i64: 1, 8>}, {transform_indices = @transform_9, window_bounds = array<i64: 2, 8>}]} {
    %c0 = arith.constant 0 : index
    %c0_0 = arith.constant 0 : index
    %0 = vector.load %arg1[%c0, %c0_0] : memref<2x512xf32, #tpu.memory_space<vmem>>, vector<2x512xf32>
    %1 = arith.truncf %0 : vector<2x512xf32> to vector<2x512xbf16>
    %c0_1 = arith.constant 0 : index
    %c0_2 = arith.constant 0 : index
    %2 = vector.load %arg2[%c0_1, %c0_2] : memref<512x1600xbf16, #tpu.memory_space<vmem>>, vector<512x1600xbf16>
    %cst = arith.constant dense<0.000000e+00> : vector<2x1600xf32>
    %3 = tpu.matmul %1, %2, %cst {dimension_numbers = #tpu.dot_dimension_numbers<[1], [0], [0], [1], [0, 0, 1, 1], [], []>} : vector<2x512xbf16>, vector<512x1600xbf16>, vector<2x1600xf32> -> vector<2x1600xf32>
    %c0_3 = arith.constant 0 : index
    %c0_4 = arith.constant 0 : index
    %4 = vector.load %arg3[%c0_3, %c0_4] : memref<1x1600xf32, #tpu.memory_space<vmem>>, vector<1x1600xf32>
    %5 = vector.broadcast %4 : vector<1x1600xf32> to vector<2x1600xf32>
    %6 = arith.addf %3, %5 : vector<2x1600xf32>
    %cst_5 = arith.constant 0.000000e+00 : f32
    %7 = vector.broadcast %cst_5 : f32 to vector<2x1600xf32>
    %8 = arith.maximumf %6, %7 : vector<2x1600xf32>
    %c0_6 = arith.constant 0 : index
    %c0_7 = arith.constant 0 : index
    %9 = vector.load %arg11[%c0_6, %c0_7] : memref<2x1600xf32, #tpu.memory_space<vmem>>, vector<2x1600xf32>
    tpu.vector_store %arg11[%c0_6, %c0_7], %8 {strides = array<i32>} : memref<2x1600xf32, #tpu.memory_space<vmem>>, vector<2x1600xf32>,
    %c0_8 = arith.constant 0 : index
    %c0_9 = arith.constant 0 : index
    %10 = vector.load %arg11[%c0_8, %c0_9] : memref<2x1600xf32, #tpu.memory_space<vmem>>, vector<2x1600xf32>
    %11 = arith.truncf %10 : vector<2x1600xf32> to vector<2x1600xbf16>
    %c0_10 = arith.constant 0 : index
    %c0_11 = arith.constant 0 : index
    %12 = vector.load %arg4[%c0_10, %c0_11] : memref<1600x512xbf16, #tpu.memory_space<vmem>>, vector<1600x512xbf16>
    %cst_12 = arith.constant dense<0.000000e+00> : vector<2x512xf32>
    %13 = tpu.matmul %11, %12, %cst_12 {dimension_numbers = #tpu.dot_dimension_numbers<[1], [0], [0], [1], [0, 0, 1, 1], [], []>} : vector<2x1600xbf16>, vector<1600x512xbf16>, vector<2x512xf32> -> vector<2x512xf32>
    %c0_13 = arith.constant 0 : index
    %c0_14 = arith.constant 0 : index
    %14 = vector.load %arg5[%c0_13, %c0_14] : memref<1x512xf32, #tpu.memory_space<vmem>>, vector<1x512xf32>
    %15 = vector.broadcast %14 : vector<1x512xf32> to vector<2x512xf32>
    %16 = arith.addf %13, %15 : vector<2x512xf32>
    %cst_15 = arith.constant 0.000000e+00 : f32
    %17 = vector.broadcast %cst_15 : f32 to vector<2x512xf32>
    %18 = arith.maximumf %16, %17 : vector<2x512xf32>
    %c0_16 = arith.constant 0 : index
    %c0_17 = arith.constant 0 : index
    %19 = vector.load %arg12[%c0_16, %c0_17] : memref<2x512xf32, #tpu.memory_space<vmem>>, vector<2x512xf32>
    tpu.vector_store %arg12[%c0_16, %c0_17], %18 {strides = array<i32>} : memref<2x512xf32, #tpu.memory_space<vmem>>, vector<2x512xf32>,
    %c0_18 = arith.constant 0 : index
    %c0_19 = arith.constant 0 : index
    %20 = vector.load %arg12[%c0_18, %c0_19] : memref<2x512xf32, #tpu.memory_space<vmem>>, vector<2x512xf32>
    %21 = arith.truncf %20 : vector<2x512xf32> to vector<2x512xbf16>
    %c0_20 = arith.constant 0 : index
    %c0_21 = arith.constant 0 : index
    %22 = vector.load %arg6[%c0_20, %c0_21] : memref<512x512xbf16, #tpu.memory_space<vmem>>, vector<512x512xbf16>
    %cst_22 = arith.constant dense<0.000000e+00> : vector<2x512xf32>
    %23 = tpu.matmul %21, %22, %cst_22 {dimension_numbers = #tpu.dot_dimension_numbers<[1], [0], [0], [1], [0, 0, 1, 1], [], []>} : vector<2x512xbf16>, vector<512x512xbf16>, vector<2x512xf32> -> vector<2x512xf32>
    %c0_23 = arith.constant 0 : index
    %c0_24 = arith.constant 0 : index
    %24 = vector.load %arg7[%c0_23, %c0_24] : memref<1x512xf32, #tpu.memory_space<vmem>>, vector<1x512xf32>
    %25 = vector.broadcast %24 : vector<1x512xf32> to vector<2x512xf32>
    %26 = arith.addf %23, %25 : vector<2x512xf32>
    %cst_25 = arith.constant 0.000000e+00 : f32
    %27 = vector.broadcast %cst_25 : f32 to vector<2x512xf32>
    %28 = arith.maximumf %26, %27 : vector<2x512xf32>
    %29 = arith.truncf %28 : vector<2x512xf32> to vector<2x512xbf16>
    %c0_26 = arith.constant 0 : index
    %c0_27 = arith.constant 0 : index
    %30 = vector.load %arg8[%c0_26, %c0_27] : memref<512x8xbf16, #tpu.memory_space<vmem>>, vector<512x8xbf16>
    %cst_28 = arith.constant dense<0.000000e+00> : vector<2x8xf32>
    %31 = tpu.matmul %29, %30, %cst_28 {dimension_numbers = #tpu.dot_dimension_numbers<[1], [0], [0], [1], [0, 0, 1, 1], [], []>} : vector<2x512xbf16>, vector<512x8xbf16>, vector<2x8xf32> -> vector<2x8xf32>
    %c0_29 = arith.constant 0 : index
    %c0_30 = arith.constant 0 : index
    %32 = vector.load %arg9[%c0_29, %c0_30] : memref<1x8xf32, #tpu.memory_space<vmem>>, vector<1x8xf32>
    %33 = vector.broadcast %32 : vector<1x8xf32> to vector<2x8xf32>
    %34 = arith.addf %31, %33 : vector<2x8xf32>
    %c0_31 = arith.constant 0 : index
    %c0_32 = arith.constant 0 : index
    %35 = vector.load %arg10[%c0_31, %c0_32] : memref<2x8xf32, #tpu.memory_space<vmem>>, vector<2x8xf32>
    tpu.vector_store %arg10[%c0_31, %c0_32], %34 {strides = array<i32>} : memref<2x8xf32, #tpu.memory_space<vmem>>, vector<2x8xf32>,
    return
  }
  func.func @transform_0(%arg0: i32) -> (i32, i32) {
    %c0_i32 = arith.constant 0 : i32
    %c0_i32_0 = arith.constant 0 : i32
    return %arg0, %c0_i32 : i32, i32
  }
  func.func @transform_1(%arg0: i32) -> (i32, i32) {
    %c0_i32 = arith.constant 0 : i32
    %c0_i32_0 = arith.constant 0 : i32
    %c0_i32_1 = arith.constant 0 : i32
    return %c0_i32, %c0_i32_0 : i32, i32
  }
  func.func @transform_2(%arg0: i32) -> (i32, i32) {
    %c0_i32 = arith.constant 0 : i32
    %c0_i32_0 = arith.constant 0 : i32
    %c0_i32_1 = arith.constant 0 : i32
    return %c0_i32, %c0_i32_0 : i32, i32
  }
  func.func @transform_3(%arg0: i32) -> (i32, i32) {
    %c0_i32 = arith.constant 0 : i32
    %c0_i32_0 = arith.constant 0 : i32
    %c0_i32_1 = arith.constant 0 : i32
    return %c0_i32, %c0_i32_0 : i32, i32
  }
  func.func @transform_4(%arg0: i32) -> (i32, i32) {
    %c0_i32 = arith.constant 0 : i32
    %c0_i32_0 = arith.constant 0 : i32
    %c0_i32_1 = arith.constant 0 : i32
    return %c0_i32, %c0_i32_0 : i32, i32
  }
  func.func @transform_5(%arg0: i32) -> (i32, i32) {
    %c0_i32 = arith.constant 0 : i32
    %c0_i32_0 = arith.constant 0 : i32
    %c0_i32_1 = arith.constant 0 : i32
    return %c0_i32, %c0_i32_0 : i32, i32
  }
  func.func @transform_6(%arg0: i32) -> (i32, i32) {
    %c0_i32 = arith.constant 0 : i32
    %c0_i32_0 = arith.constant 0 : i32
    %c0_i32_1 = arith.constant 0 : i32
    return %c0_i32, %c0_i32_0 : i32, i32
  }
  func.func @transform_7(%arg0: i32) -> (i32, i32) {
    %c0_i32 = arith.constant 0 : i32
    %c0_i32_0 = arith.constant 0 : i32
    %c0_i32_1 = arith.constant 0 : i32
    return %c0_i32, %c0_i32_0 : i32, i32
  }
  func.func @transform_8(%arg0: i32) -> (i32, i32) {
    %c0_i32 = arith.constant 0 : i32
    %c0_i32_0 = arith.constant 0 : i32
    %c0_i32_1 = arith.constant 0 : i32
    return %c0_i32, %c0_i32_0 : i32, i32
  }
  func.func @transform_9(%arg0: i32) -> (i32, i32) {
    %c0_i32 = arith.constant 0 : i32
    %c0_i32_0 = arith.constant 0 : i32
    return %arg0, %c0_i32 : i32, i32
  }
}

</mosaic_0001>

<bundles_post_ra>
// kernel: dev_net_with_cnn_forward.1
= control target key start
LH: loop header
LB: loop body
LE: loop exit
PB: predicated region body
PF: predicated region fallthrough
CT: control target
= control target key end

     0   :  { %v10419_v36 = vmov 1983009808   ;;  %v39_v38 = vlaneseq  ;;  %vm3352_vm0 = vcmask 517120   ;;  %vm5868_vm1 = vcmask 523264   ;;  %s13598_s1 = inlined_call_operand.vmem [shape: bf16[512,1600], index: 1, kind: input, shape index: {}]   ;;  %s13599_s0 = inlined_call_operand.vmem [shape: f32[2,512], index: 0, kind: input, shape index: {}]   ;;  %s13600_s3 = inlined_call_operand.vmem [shape: bf16[1600,512], index: 3, kind: input, shape index: {}]   ;;  %s13601_s2 = inlined_call_operand.vmem [shape: f32[1,1600], index: 2, kind: input, shape index: {}]   ;;  %s13602_s5 = inlined_call_operand.vmem [shape: bf16[512,512], index: 5, kind: input, shape index: {}]   ;;  %s13603_s7 = inlined_call_operand.vmem [shape: bf16[512,8], index: 7, kind: input, shape index: {}]   ;;  %s13604_s4 = inlined_call_operand.vmem [shape: f32[1,512], index: 4, kind: input, shape index: {}]   ;;  %s13605_s6 = inlined_call_operand.vmem [shape: f32[1,512], index: 6, kind: input, shape index: {}]   ;;  %s13606_s8 = inlined_call_operand.vmem [shape: f32[1,8], index: 8, kind: input, shape index: {}]   ;;  %s13607_s9 = inlined_call_operand.vmem [shape: f32[2,8], index: 9, kind: output, shape index: {}]  }
   0x1   :  { %v8982_v0 = vld [vmem:[%s13598_s1 + $0x4] ss:$52 sps:$4 sm:$0xff]   ;;  %v8984_v1 = vld [vmem:[%s13598_s1 + $0xc] ss:$52 sps:$4 sm:$0xff]   ;;  %v8987_v3 = vld [vmem:[%s13598_s1 + $0x8] ss:$52 sps:$4 sm:$0xff]   ;;  %v37_v37 = vunpack.c.l.s4 %v10419_v36 }
   0x2   :  { %2689 = vmatprep.subr.bf16.mxu0 %v8982_v0  ;;  %v8986_v2 = vld [vmem:[%s13598_s1] ss:$52 sps:$4 sm:$0xff]   ;;  %2771 = vmatprep.subr.bf16.mxu1 %v8984_v1  ;;  %v8992_v6 = vld [vmem:[%s13598_s1 + $0x68] ss:$52 sps:$4 sm:$0xff]   ;;  %v8993_v7 = vld [vmem:[%s13598_s1 + $0x70] ss:$52 sps:$4 sm:$0xff]  }
   0x3   :  { %v8988_v4 = vld [vmem:[%s13598_s1 + $0x6c] ss:$52 sps:$4 sm:$0xff]   ;;  %2690 = vmatpush1.bf16.msra.mxu0 %v8986_v2  ;;  %2772 = vmatpush1.bf16.msra.mxu1 %v8987_v3  ;;  %v8990_v5 = vld [vmem:[%s13598_s1 + $0x74] ss:$52 sps:$4 sm:$0xff]   ;;  %v8996_v9 = vld [vmem:[%s13598_s1 + $0xdc] ss:$52 sps:$4 sm:$0xff]   ;;  %v38_v42 = vunpack.c.0.s8 %v37_v37 }
   0x4   :  { %2691 = vmatprep.subr.bf16.mxu0 %v8988_v4  ;;  %2773 = vmatprep.subr.bf16.mxu1 %v8990_v5  ;;  %v8994_v8 = vld [vmem:[%s13598_s1 + $0xd4] ss:$52 sps:$4 sm:$0xff]   ;;  %v8998_v10 = vld [vmem:[%s13598_s1 + $0xd0] ss:$52 sps:$4 sm:$0xff]   ;;  %v8999_v11 = vld [vmem:[%s13598_s1 + $0xd8] ss:$52 sps:$4 sm:$0xff]  }
   0x5   :  { %v9000_v12 = vld [vmem:[%s13598_s1 + $0x13c] ss:$52 sps:$4 sm:$0xff]   ;;  %v9002_v13 = vld [vmem:[%s13598_s1 + $0x144] ss:$52 sps:$4 sm:$0xff]   ;;  %v9005_v15 = vld [vmem:[%s13598_s1 + $0x140] ss:$52 sps:$4 sm:$0xff]  }
   0x6   :  { %v9004_v14 = vld [vmem:[%s13598_s1 + $0x138] ss:$52 sps:$4 sm:$0xff]   ;;  %v9010_v18 = vld [vmem:[%s13598_s1 + $0x1a0] ss:$52 sps:$4 sm:$0xff]   ;;  %v9011_v19 = vld [vmem:[%s13598_s1 + $0x1a8] ss:$52 sps:$4 sm:$0xff]  }
   0x7   :  { %2692 = vmatpush1.bf16.msra.mxu0 %v8992_v6  ;;  %2774 = vmatpush1.bf16.msra.mxu1 %v8993_v7  ;;  %v9006_v16 = vld [vmem:[%s13598_s1 + $0x1a4] ss:$52 sps:$4 sm:$0xff]   ;;  %v9008_v17 = vld [vmem:[%s13598_s1 + $0x1ac] ss:$52 sps:$4 sm:$0xff]   ;;  %v9014_v21 = vld [vmem:[%s13598_s1 + $0x214] ss:$52 sps:$4 sm:$0xff]  }
   0x8   :  { %2693 = vmatprep.subr.bf16.mxu0 %v8994_v8  ;;  %2775 = vmatprep.subr.bf16.mxu1 %v8996_v9  ;;  %v9012_v20 = vld [vmem:[%s13598_s1 + $0x20c] ss:$52 sps:$4 sm:$0xff]   ;;  %v9016_v22 = vld [vmem:[%s13598_s1 + $0x208] ss:$52 sps:$4 sm:$0xff]   ;;  %v9017_v23 = vld [vmem:[%s13598_s1 + $0x210] ss:$52 sps:$4 sm:$0xff]  }
   0x9   :  { %v9018_v24 = vld [vmem:[%s13598_s1 + $0x274] ss:$52 sps:$4 sm:$0xff]   ;;  %v9020_v25 = vld [vmem:[%s13598_s1 + $0x27c] ss:$52 sps:$4 sm:$0xff]   ;;  %v9023_v27 = vld [vmem:[%s13598_s1 + $0x278] ss:$52 sps:$4 sm:$0xff]  }
   0xa   :  { %v9022_v26 = vld [vmem:[%s13598_s1 + $0x270] ss:$52 sps:$4 sm:$0xff]   ;;  %v9028_v30 = vld [vmem:[%s13598_s1 + $0x2d8] ss:$52 sps:$4 sm:$0xff]   ;;  %v9029_v31 = vld [vmem:[%s13598_s1 + $0x2e0] ss:$52 sps:$4 sm:$0xff]  }
   0xb   :  { %2694 = vmatpush1.bf16.msra.mxu0 %v8998_v10  ;;  %2776 = vmatpush1.bf16.msra.mxu1 %v8999_v11  ;;  %v9024_v28 = vld [vmem:[%s13598_s1 + $0x2dc] ss:$52 sps:$4 sm:$0xff]   ;;  %v9026_v29 = vld [vmem:[%s13598_s1 + $0x2e4] ss:$52 sps:$4 sm:$0xff]   ;;  %v9032_v33 = vld [vmem:[%s13598_s1 + $0x34c] ss:$52 sps:$4 sm:$0xff]  }
   0xc   :  { %2695 = vmatprep.subr.bf16.mxu0 %v9000_v12  ;;  %2777 = vmatprep.subr.bf16.mxu1 %v9002_v13  ;;  %v9030_v32 = vld [vmem:[%s13598_s1 + $0x344] ss:$52 sps:$4 sm:$0xff]   ;;  %v9034_v34 = vld [vmem:[%s13598_s1 + $0x340] ss:$52 sps:$4 sm:$0xff]   ;;  %v9035_v35 = vld [vmem:[%s13598_s1 + $0x348] ss:$52 sps:$4 sm:$0xff]  }
   0xd   :  { %v9036_v39 = vld [vmem:[%s13598_s1 + $0x3ac] ss:$52 sps:$4 sm:$0xff]   ;;  %v9038_v40 = vld [vmem:[%s13598_s1 + $0x3b4] ss:$52 sps:$4 sm:$0xff]   ;;  %v10588_v43 = vshrl.u32 %v39_v38, 7  ;;  %vm7805_vm2 = vcmask 58368  }
   0xe   :  { %v9040_v41 = vld [vmem:[%s13598_s1 + $0x3a8] ss:$52 sps:$4 sm:$0xff]   ;;  %v9041_v44 = vld [vmem:[%s13598_s1 + $0x3b0] ss:$52 sps:$4 sm:$0xff]   ;;  %v9047_v48 = vld [vmem:[%s13598_s1 + $0x418] ss:$52 sps:$4 sm:$0xff]  }
   0xf   :  { %2696 = vmatpush1.bf16.msra.mxu0 %v9004_v14  ;;  %2778 = vmatpush1.bf16.msra.mxu1 %v9005_v15  ;;  %v9042_v45 = vld [vmem:[%s13598_s1 + $0x414] ss:$52 sps:$4 sm:$0xff]   ;;  %v9044_v46 = vld [vmem:[%s13598_s1 + $0x41c] ss:$52 sps:$4 sm:$0xff]   ;;  %v10606_v49 = vsub.s32 %v38_v42, %v10588_v43  ;;  %v9050_v51 = vld [vmem:[%s13598_s1 + $0x484] ss:$52 sps:$4 sm:$0xff]  }
  0x10   :  { %2697 = vmatprep.subr.bf16.mxu0 %v9006_v16  ;;  %2779 = vmatprep.subr.bf16.mxu1 %v9008_v17  ;;  %v9046_v47 = vld [vmem:[%s13598_s1 + $0x410] ss:$52 sps:$4 sm:$0xff]   ;;  %v9052_v53 = vld [vmem:[%s13598_s1 + $0x478] ss:$52 sps:$4 sm:$0xff]   ;;  %v9053_v55 = vld [vmem:[%s13598_s1 + $0x480] ss:$52 sps:$4 sm:$0xff]  }
  0x11   :  { %v9048_v50 = vld [vmem:[%s13598_s1 + $0x47c] ss:$52 sps:$4 sm:$0xff]   ;;  %v33_v52 = vld [vmem:[%s13599_s0] sm:$0xff]  ;;  %v9062_v63 = vld [vmem:[%s13598_s1 + $0x554] ss:$52 sps:$4 sm:$0xff]  }
  0x12   :  { %v42_v54 = vrot.slane %v33_v52, %v10606_v49  ;;  %v9054_v56 = vld [vmem:[%s13598_s1 + $0x4e4] ss:$52 sps:$4 sm:$0xff]   ;;  %v9056_v57 = vld [vmem:[%s13598_s1 + $0x4ec] ss:$52 sps:$4 sm:$0xff]   ;;  %v9059_v61 = vld [vmem:[%s13598_s1 + $0x4e8] ss:$52 sps:$4 sm:$0xff]   ;;  %v35_v4 = vcombine.high %v33_v52, %v33_v52 }
  0x13   :  { %2698 = vmatpush1.bf16.msra.mxu0 %v9010_v18  ;;  %2780 = vmatpush1.bf16.msra.mxu1 %v9011_v19  ;;  %v9058_v59 = vld [vmem:[%s13598_s1 + $0x4e0] ss:$52 sps:$4 sm:$0xff]   ;;  %v9064_v0 = vld [vmem:[%s13598_s1 + $0x548] ss:$52 sps:$4 sm:$0xff]   ;;  %v9065_v1 = vld [vmem:[%s13598_s1 + $0x550] ss:$52 sps:$4 sm:$0xff]  }
  0x14   :  { %2699 = vmatprep.subr.bf16.mxu0 %v9012_v20  ;;  %2781 = vmatprep.subr.bf16.mxu1 %v9014_v21  ;;  %v50_v58 = vcombine.high %v42_v54, %v42_v54  ;;  %v9060_v62 = vld [vmem:[%s13598_s1 + $0x54c] ss:$52 sps:$4 sm:$0xff]   ;;  %v9066_v2 = vld [vmem:[%s13598_s1 + $0x5b4] ss:$52 sps:$4 sm:$0xff]   ;;  %v9068_v3 = vld [vmem:[%s13598_s1 + $0x5bc] ss:$52 sps:$4 sm:$0xff]   ;;  %v10671_v9 = vrot.slane %v35_v4, %v10606_v49  ;;  %v10690_v16 = vpack.c.bf16 %v42_v54, %v42_v54 }
  0x15   :  { %v9070_v5 = vld [vmem:[%s13598_s1 + $0x5b0] ss:$52 sps:$4 sm:$0xff]   ;;  %v9071_v6 = vld [vmem:[%s13598_s1 + $0x5b8] ss:$52 sps:$4 sm:$0xff]   ;;  %v9077_v11 = vld [vmem:[%s13598_s1 + $0x620] ss:$52 sps:$4 sm:$0xff]  }
  0x16   :  { %v10633_v60 = vpack.c.bf16 %v50_v58, %v50_v58  ;;  %v9072_v7 = vld [vmem:[%s13598_s1 + $0x61c] ss:$52 sps:$4 sm:$0xff]   ;;  %v9074_v8 = vld [vmem:[%s13598_s1 + $0x624] ss:$52 sps:$4 sm:$0xff]   ;;  %v9083_v13 = vld [vmem:[%s13598_s1 + $0x68c] ss:$52 sps:$4 sm:$0xff]   ;;  %v51_v14 = vcombine.high %v10671_v9, %v10671_v9 }
  0x17   :  { %2700 = vmatpush1.bf16.msra.mxu0 %v9016_v22  ;;  %2782 = vmatpush1.bf16.msra.mxu1 %v9017_v23  ;;  %v9076_v10 = vld [vmem:[%s13598_s1 + $0x618] ss:$52 sps:$4 sm:$0xff]   ;;  %v9078_v15 = vld [vmem:[%s13598_s1 + $0x680] ss:$52 sps:$4 sm:$0xff]   ;;  %v9081_v17 = vld [vmem:[%s13598_s1 + $0x688] ss:$52 sps:$4 sm:$0xff]  }
  0x18   :  { %2701 = vmatprep.subr.bf16.mxu0 %v9018_v24  ;;  %2783 = vmatprep.subr.bf16.mxu1 %v9020_v25  ;;  %v9080_v12 = vld [vmem:[%s13598_s1 + $0x684] ss:$52 sps:$4 sm:$0xff]   ;;  %v9086_v18 = vld [vmem:[%s13598_s1 + $0x6ec] ss:$52 sps:$4 sm:$0xff]   ;;  %v9089_v19 = vld [vmem:[%s13598_s1 + $0x6f4] ss:$52 sps:$4 sm:$0xff]   ;;  %v10701_v20 = vpack.c.bf16 %v51_v14, %v51_v14 }
  0x19   :  { %2721 = vmatprep.mubr.bf16.mxu0 %v10633_v60  ;;  %2803 = vmatprep.mubr.bf16.mxu1 %v10633_v60  ;;  %v9084_v21 = vld [vmem:[%s13598_s1 + $0x6e8] ss:$52 sps:$4 sm:$0xff]   ;;  %v9087_v22 = vld [vmem:[%s13598_s1 + $0x6f0] ss:$52 sps:$4 sm:$0xff]   ;;  %v9117_v42 = vld [vmem:[%s13598_s1 + $0x8f8] ss:$52 sps:$4 sm:$0xff]  }
  0x1a   :  { %v9092_v23 = vld [vmem:[%s13598_s1 + $0x754] ss:$52 sps:$4 sm:$0xff]   ;;  %v9095_v24 = vld [vmem:[%s13598_s1 + $0x75c] ss:$52 sps:$4 sm:$0xff]   ;;  %v9165_v14 = vld [vmem:[%s13598_s1 + $0xc38] ss:$52 sps:$4 sm:$0xff]  }
  0x1b   :  { %2702 = vmatpush1.bf16.msra.mxu0 %v9022_v26  ;;  %2784 = vmatpush1.bf16.msra.mxu1 %v9023_v27  ;;  %v9090_v25 = vld [vmem:[%s13598_s1 + $0x750] ss:$52 sps:$4 sm:$0xff]   ;;  %v9093_v26 = vld [vmem:[%s13598_s1 + $0x758] ss:$52 sps:$4 sm:$0xff]   ;;  %v9113_v36 = vld [vmem:[%s13598_s1 + $0x894] ss:$52 sps:$4 sm:$0xff]  }
  0x1c   :  { %2703 = vmatprep.subr.bf16.mxu0 %v9024_v28  ;;  %2785 = vmatprep.subr.bf16.mxu1 %v9026_v29  ;;  %v9098_v27 = vld [vmem:[%s13598_s1 + $0x7bc] ss:$52 sps:$4 sm:$0xff]   ;;  %v9101_v28 = vld [vmem:[%s13598_s1 + $0x7c4] ss:$52 sps:$4 sm:$0xff]   ;;  %v9137_v54 = vld [vmem:[%s13598_s1 + $0xa34] ss:$52 sps:$4 sm:$0xff]  }
  0x1d   :  { %v9096_v29 = vld [vmem:[%s13598_s1 + $0x7b8] ss:$52 sps:$4 sm:$0xff]   ;;  %v9108_v37 = vld [vmem:[%s13598_s1 + $0x888] ss:$52 sps:$4 sm:$0xff]   ;;  %v9111_v38 = vld [vmem:[%s13598_s1 + $0x890] ss:$52 sps:$4 sm:$0xff]  }
  0x1e   :  { %v9129_v52 = vld [vmem:[%s13598_s1 + $0x9c8] ss:$52 sps:$4 sm:$0xff]   ;;  %v9150_v4 = vld [vmem:[%s13598_s1 + $0xb60] ss:$52 sps:$4 sm:$0xff]  }
  0x1f   :  { %2704 = vmatpush1.bf16.msra.mxu0 %v9028_v30  ;;  %2786 = vmatpush1.bf16.msra.mxu1 %v9029_v31  ;;  %v9099_v30 = vld [vmem:[%s13598_s1 + $0x7c0] ss:$52 sps:$4 sm:$0xff]   ;;  %v9104_v31 = vld [vmem:[%s13598_s1 + $0x824] ss:$52 sps:$4 sm:$0xff]   ;;  %v9143_v58 = vld [vmem:[%s13598_s1 + $0xa9c] ss:$52 sps:$4 sm:$0xff]  }
  0x20   :  { %2705 = vmatprep.subr.bf16.mxu0 %v9030_v32  ;;  %2787 = vmatprep.subr.bf16.mxu1 %v9032_v33  ;;  %v9107_v32 = vld [vmem:[%s13598_s1 + $0x82c] ss:$52 sps:$4 sm:$0xff]  }
  0x21   :  { %v9102_v33 = vld [vmem:[%s13598_s1 + $0x820] ss:$52 sps:$4 sm:$0xff]  }
  0x23   :  { %2706 = vmatpush1.bf16.msra.mxu0 %v9034_v34  ;;  %2788 = vmatpush1.bf16.msra.mxu1 %v9035_v35  ;;  %v9105_v34 = vld [vmem:[%s13598_s1 + $0x828] ss:$52 sps:$4 sm:$0xff]   ;;  %v9110_v35 = vld [vmem:[%s13598_s1 + $0x88c] ss:$52 sps:$4 sm:$0xff]  }
  0x24   :  { %2707 = vmatprep.subr.bf16.mxu0 %v9036_v39  ;;  %2789 = vmatprep.subr.bf16.mxu1 %v9038_v40  ;;  %v9116_v39 = vld [vmem:[%s13598_s1 + $0x8f4] ss:$52 sps:$4 sm:$0xff]   ;;  %v9119_v40 = vld [vmem:[%s13598_s1 + $0x8fc] ss:$52 sps:$4 sm:$0xff]  }
  0x27   :  { %2708 = vmatpush1.bf16.msra.mxu0 %v9040_v41  ;;  %2790 = vmatpush1.bf16.msra.mxu1 %v9041_v44  ;;  %v9114_v41 = vld [vmem:[%s13598_s1 + $0x8f0] ss:$52 sps:$4 sm:$0xff]  }
  0x28   :  { %2709 = vmatprep.subr.bf16.mxu0 %v9042_v45  ;;  %2791 = vmatprep.subr.bf16.mxu1 %v9044_v46  ;;  %v9122_v44 = vld [vmem:[%s13598_s1 + $0x95c] ss:$52 sps:$4 sm:$0xff]   ;;  %v9125_v45 = vld [vmem:[%s13598_s1 + $0x964] ss:$52 sps:$4 sm:$0xff]  }
  0x29   :  { %v9120_v46 = vld [vmem:[%s13598_s1 + $0x958] ss:$52 sps:$4 sm:$0xff]  }
  0x2b   :  { %2710 = vmatpush1.bf16.msra.mxu0 %v9046_v47  ;;  %2792 = vmatpush1.bf16.msra.mxu1 %v9047_v48  ;;  %v9123_v47 = vld [vmem:[%s13598_s1 + $0x960] ss:$52 sps:$4 sm:$0xff]   ;;  %v9128_v48 = vld [vmem:[%s13598_s1 + $0x9c4] ss:$52 sps:$4 sm:$0xff]  }
  0x2c   :  { %2711 = vmatprep.subr.bf16.mxu0 %v9048_v50  ;;  %2793 = vmatprep.subr.bf16.mxu1 %v9050_v51  ;;  %v9131_v50 = vld [vmem:[%s13598_s1 + $0x9cc] ss:$52 sps:$4 sm:$0xff]  }
  0x2d   :  { %v9126_v51 = vld [vmem:[%s13598_s1 + $0x9c0] ss:$52 sps:$4 sm:$0xff]  }
  0x2f   :  { %2712 = vmatpush1.bf16.msra.mxu0 %v9052_v53  ;;  %2794 = vmatpush1.bf16.msra.mxu1 %v9053_v55  ;;  %v9134_v53 = vld [vmem:[%s13598_s1 + $0xa2c] ss:$52 sps:$4 sm:$0xff]   ;;  %v9132_v55 = vld [vmem:[%s13598_s1 + $0xa28] ss:$52 sps:$4 sm:$0xff]  }
  0x30   :  { %2713 = vmatprep.subr.bf16.mxu0 %v9054_v56  ;;  %2795 = vmatprep.subr.bf16.mxu1 %v9056_v57  ;;  %v9135_v56 = vld [vmem:[%s13598_s1 + $0xa30] ss:$52 sps:$4 sm:$0xff]   ;;  %v9140_v57 = vld [vmem:[%s13598_s1 + $0xa94] ss:$52 sps:$4 sm:$0xff]  }
  0x33   :  { %2714 = vmatpush1.bf16.msra.mxu0 %v9058_v59  ;;  %2796 = vmatpush1.bf16.msra.mxu1 %v9059_v61  ;;  %v9138_v59 = vld [vmem:[%s13598_s1 + $0xa90] ss:$52 sps:$4 sm:$0xff]   ;;  %v9141_v61 = vld [vmem:[%s13598_s1 + $0xa98] ss:$52 sps:$4 sm:$0xff]  }
  0x34   :  { %2715 = vmatprep.subr.bf16.mxu0 %v9060_v62  ;;  %2797 = vmatprep.subr.bf16.mxu1 %v9062_v63  ;;  %v9146_v62 = vld [vmem:[%s13598_s1 + $0xafc] ss:$52 sps:$4 sm:$0xff]   ;;  %v9149_v63 = vld [vmem:[%s13598_s1 + $0xb04] ss:$52 sps:$4 sm:$0xff]  }
  0x37   :  { %2716 = vmatpush1.bf16.msra.mxu0 %v9064_v0  ;;  %2798 = vmatpush1.bf16.msra.mxu1 %v9065_v1  ;;  %v9144_v0 = vld [vmem:[%s13598_s1 + $0xaf8] ss:$52 sps:$4 sm:$0xff]   ;;  %v9147_v1 = vld [vmem:[%s13598_s1 + $0xb00] ss:$52 sps:$4 sm:$0xff]  }
  0x38   :  { %2717 = vmatprep.subr.bf16.mxu0 %v9066_v2  ;;  %2799 = vmatprep.subr.bf16.mxu1 %v9068_v3  ;;  %v9152_v2 = vld [vmem:[%s13598_s1 + $0xb64] ss:$52 sps:$4 sm:$0xff]   ;;  %v9155_v3 = vld [vmem:[%s13598_s1 + $0xb6c] ss:$52 sps:$4 sm:$0xff]  }
  0x3b   :  { %2718 = vmatpush1.bf16.msra.mxu0 %v9070_v5  ;;  %2800 = vmatpush1.bf16.msra.mxu1 %v9071_v6  ;;  %v9153_v5 = vld [vmem:[%s13598_s1 + $0xb68] ss:$52 sps:$4 sm:$0xff]   ;;  %v9158_v6 = vld [vmem:[%s13598_s1 + $0xbcc] ss:$52 sps:$4 sm:$0xff]  }
  0x3c   :  { %2719 = vmatprep.subr.bf16.mxu0 %v9072_v7  ;;  %2801 = vmatprep.subr.bf16.mxu1 %v9074_v8  ;;  %v9161_v7 = vld [vmem:[%s13598_s1 + $0xbd4] ss:$52 sps:$4 sm:$0xff]  }
  0x3d   :  { %v9156_v8 = vld [vmem:[%s13598_s1 + $0xbc8] ss:$52 sps:$4 sm:$0xff]  }
  0x3f   :  { %2720 = vmatpush1.bf16.msra.mxu0 %v9076_v10  ;;  %2802 = vmatpush1.bf16.msra.mxu1 %v9077_v11  ;;  %v9159_v10 = vld [vmem:[%s13598_s1 + $0xbd0] ss:$52 sps:$4 sm:$0xff]   ;;  %v9164_v11 = vld [vmem:[%s13598_s1 + $0xc34] ss:$52 sps:$4 sm:$0xff]  }
  0x40   :  { %2730 = vmatprep.subr.bf16.mxu0 %v9080_v12  ;;  %2812 = vmatprep.subr.bf16.mxu1 %v9083_v13  ;;  %v9167_v12 = vld [vmem:[%s13598_s1 + $0xc3c] ss:$52 sps:$4 sm:$0xff]  }
  0x41   :  { %v9162_v13 = vld [vmem:[%s13598_s1 + $0xc30] ss:$52 sps:$4 sm:$0xff]  }
  0x42   :  { %2722 = vmatmul.mubr.bf16.vlgmr.msra.gmra.mrb[0].mxu0 %v10690_v16  ;;  %2804 = vmatmul.mubr.bf16.vlgmr.msra.gmra.mrb[0].mxu1 %v10690_v16 }
  0x43   :  { %2731 = vmatpush1.bf16.msra.mxu0 %v9078_v15  ;;  %2813 = vmatpush1.bf16.msra.mxu1 %v9081_v17  ;;  %v9170_v15 = vld [vmem:[%s13598_s1 + $0xc9c] ss:$52 sps:$4 sm:$0xff]   ;;  %v9173_v17 = vld [vmem:[%s13598_s1 + $0xca4] ss:$52 sps:$4 sm:$0xff]  }
  0x44   :  { %2732 = vmatprep.subr.bf16.mxu0 %v9086_v18  ;;  %2814 = vmatprep.subr.bf16.mxu1 %v9089_v19  ;;  %v9168_v18 = vld [vmem:[%s13598_s1 + $0xc98] ss:$52 sps:$4 sm:$0xff]   ;;  %v9171_v19 = vld [vmem:[%s13598_s1 + $0xca0] ss:$52 sps:$4 sm:$0xff]  }
  0x45   :  { %2762 = vmatprep.mubr.bf16.mxu0 %v10701_v20  ;;  %2844 = vmatprep.mubr.bf16.mxu1 %v10701_v20 }
  0x47   :  { %2733 = vmatpush1.bf16.msra.mxu0 %v9084_v21  ;;  %2815 = vmatpush1.bf16.msra.mxu1 %v9087_v22  ;;  %v9177_v21 = vld [vmem:[%s13598_s1 + $0x14] ss:$52 sps:$4 sm:$0xff]   ;;  %v9180_v22 = vld [vmem:[%s13598_s1 + $0x1c] ss:$52 sps:$4 sm:$0xff]  }
  0x48   :  { %2734 = vmatprep.subr.bf16.mxu0 %v9092_v23  ;;  %2816 = vmatprep.subr.bf16.mxu1 %v9095_v24  ;;  %v10889_v23 = vpack.c.bf16 %v10671_v9, %v10671_v9  ;;  %v9175_v24 = vld [vmem:[%s13598_s1 + $0x10] ss:$52 sps:$4 sm:$0xff]  }
  0x49   :  { %v9186_v9 = vld [vmem:[%s13598_s1 + $0x84] ss:$52 sps:$4 sm:$0xff]  }
  0x4b   :  { %2735 = vmatpush1.bf16.msra.mxu0 %v9090_v25  ;;  %2817 = vmatpush1.bf16.msra.mxu1 %v9093_v26  ;;  %v9178_v25 = vld [vmem:[%s13598_s1 + $0x18] ss:$52 sps:$4 sm:$0xff]   ;;  %v9183_v26 = vld [vmem:[%s13598_s1 + $0x7c] ss:$52 sps:$4 sm:$0xff]  }
  0x4c   :  { %2736 = vmatprep.subr.bf16.mxu0 %v9098_v27  ;;  %2818 = vmatprep.subr.bf16.mxu1 %v9101_v28  ;;  %v9181_v27 = vld [vmem:[%s13598_s1 + $0x78] ss:$52 sps:$4 sm:$0xff]   ;;  %v9184_v28 = vld [vmem:[%s13598_s1 + $0x80] ss:$52 sps:$4 sm:$0xff]  }
  0x4f   :  { %2737 = vmatpush1.bf16.msra.mxu0 %v9096_v29  ;;  %2819 = vmatpush1.bf16.msra.mxu1 %v9099_v30  ;;  %v9189_v29 = vld [vmem:[%s13598_s1 + $0xe4] ss:$52 sps:$4 sm:$0xff]   ;;  %v9192_v30 = vld [vmem:[%s13598_s1 + $0xec] ss:$52 sps:$4 sm:$0xff]  }
  0x50   :  { %2738 = vmatprep.subr.bf16.mxu0 %v9104_v31  ;;  %2820 = vmatprep.subr.bf16.mxu1 %v9107_v32  ;;  %v9187_v31 = vld [vmem:[%s13598_s1 + $0xe0] ss:$52 sps:$4 sm:$0xff]   ;;  %v9190_v32 = vld [vmem:[%s13598_s1 + $0xe8] ss:$52 sps:$4 sm:$0xff]  }
  0x53   :  { %2739 = vmatpush1.bf16.msra.mxu0 %v9102_v33  ;;  %2821 = vmatpush1.bf16.msra.mxu1 %v9105_v34  ;;  %v9195_v33 = vld [vmem:[%s13598_s1 + $0x14c] ss:$52 sps:$4 sm:$0xff]   ;;  %v9198_v34 = vld [vmem:[%s13598_s1 + $0x154] ss:$52 sps:$4 sm:$0xff]  }
  0x54   :  { %2740 = vmatprep.subr.bf16.mxu0 %v9110_v35  ;;  %2822 = vmatprep.subr.bf16.mxu1 %v9113_v36  ;;  %v9193_v35 = vld [vmem:[%s13598_s1 + $0x148] ss:$52 sps:$4 sm:$0xff]   ;;  %v9196_v36 = vld [vmem:[%s13598_s1 + $0x150] ss:$52 sps:$4 sm:$0xff]  }
  0x57   :  { %2741 = vmatpush1.bf16.msra.mxu0 %v9108_v37  ;;  %2823 = vmatpush1.bf16.msra.mxu1 %v9111_v38  ;;  %v9201_v37 = vld [vmem:[%s13598_s1 + $0x1b4] ss:$52 sps:$4 sm:$0xff]   ;;  %v9204_v38 = vld [vmem:[%s13598_s1 + $0x1bc] ss:$52 sps:$4 sm:$0xff]  }
  0x58   :  { %2742 = vmatprep.subr.bf16.mxu0 %v9116_v39  ;;  %2824 = vmatprep.subr.bf16.mxu1 %v9119_v40  ;;  %v9199_v39 = vld [vmem:[%s13598_s1 + $0x1b0] ss:$52 sps:$4 sm:$0xff]   ;;  %v9202_v40 = vld [vmem:[%s13598_s1 + $0x1b8] ss:$52 sps:$4 sm:$0xff]  }
  0x5b   :  { %2743 = vmatpush1.bf16.msra.mxu0 %v9114_v41  ;;  %2825 = vmatpush1.bf16.msra.mxu1 %v9117_v42  ;;  %v9207_v41 = vld [vmem:[%s13598_s1 + $0x21c] ss:$52 sps:$4 sm:$0xff]   ;;  %v9210_v42 = vld [vmem:[%s13598_s1 + $0x224] ss:$52 sps:$4 sm:$0xff]  }
  0x5c   :  { %2744 = vmatprep.subr.bf16.mxu0 %v9122_v44  ;;  %2826 = vmatprep.subr.bf16.mxu1 %v9125_v45  ;;  %v9205_v44 = vld [vmem:[%s13598_s1 + $0x218] ss:$52 sps:$4 sm:$0xff]   ;;  %v9208_v45 = vld [vmem:[%s13598_s1 + $0x220] ss:$52 sps:$4 sm:$0xff]  }
  0x5f   :  { %2745 = vmatpush1.bf16.msra.mxu0 %v9120_v46  ;;  %2827 = vmatpush1.bf16.msra.mxu1 %v9123_v47  ;;  %v9213_v46 = vld [vmem:[%s13598_s1 + $0x284] ss:$52 sps:$4 sm:$0xff]   ;;  %v9216_v47 = vld [vmem:[%s13598_s1 + $0x28c] ss:$52 sps:$4 sm:$0xff]  }
  0x60   :  { %2746 = vmatprep.subr.bf16.mxu0 %v9128_v48  ;;  %2828 = vmatprep.subr.bf16.mxu1 %v9131_v50  ;;  %v9211_v48 = vld [vmem:[%s13598_s1 + $0x280] ss:$52 sps:$4 sm:$0xff]   ;;  %v9214_v50 = vld [vmem:[%s13598_s1 + $0x288] ss:$52 sps:$4 sm:$0xff]  }
  0x63   :  { %2747 = vmatpush1.bf16.msra.mxu0 %v9126_v51  ;;  %2829 = vmatpush1.bf16.msra.mxu1 %v9129_v52  ;;  %v9219_v51 = vld [vmem:[%s13598_s1 + $0x2ec] ss:$52 sps:$4 sm:$0xff]   ;;  %v9222_v52 = vld [vmem:[%s13598_s1 + $0x2f4] ss:$52 sps:$4 sm:$0xff]  }
  0x64   :  { %2748 = vmatprep.subr.bf16.mxu0 %v9134_v53  ;;  %2830 = vmatprep.subr.bf16.mxu1 %v9137_v54  ;;  %v9217_v53 = vld [vmem:[%s13598_s1 + $0x2e8] ss:$52 sps:$4 sm:$0xff]   ;;  %v9220_v54 = vld [vmem:[%s13598_s1 + $0x2f0] ss:$52 sps:$4 sm:$0xff]  }
  0x67   :  { %2749 = vmatpush1.bf16.msra.mxu0 %v9132_v55  ;;  %2831 = vmatpush1.bf16.msra.mxu1 %v9135_v56  ;;  %v9225_v55 = vld [vmem:[%s13598_s1 + $0x354] ss:$52 sps:$4 sm:$0xff]   ;;  %v9228_v56 = vld [vmem:[%s13598_s1 + $0x35c] ss:$52 sps:$4 sm:$0xff]  }
  0x68   :  { %2750 = vmatprep.subr.bf16.mxu0 %v9140_v57  ;;  %2832 = vmatprep.subr.bf16.mxu1 %v9143_v58  ;;  %v9223_v57 = vld [vmem:[%s13598_s1 + $0x350] ss:$52 sps:$4 sm:$0xff]   ;;  %v9226_v58 = vld [vmem:[%s13598_s1 + $0x358] ss:$52 sps:$4 sm:$0xff]  }
  0x6b   :  { %2751 = vmatpush1.bf16.msra.mxu0 %v9138_v59  ;;  %2833 = vmatpush1.bf16.msra.mxu1 %v9141_v61  ;;  %v9231_v59 = vld [vmem:[%s13598_s1 + $0x3bc] ss:$52 sps:$4 sm:$0xff]   ;;  %v9234_v61 = vld [vmem:[%s13598_s1 + $0x3c4] ss:$52 sps:$4 sm:$0xff]  }
  0x6c   :  { %2752 = vmatprep.subr.bf16.mxu0 %v9146_v62  ;;  %2834 = vmatprep.subr.bf16.mxu1 %v9149_v63  ;;  %v9229_v62 = vld [vmem:[%s13598_s1 + $0x3b8] ss:$52 sps:$4 sm:$0xff]   ;;  %v9232_v63 = vld [vmem:[%s13598_s1 + $0x3c0] ss:$52 sps:$4 sm:$0xff]  }
  0x6f   :  { %2753 = vmatpush1.bf16.msra.mxu0 %v9144_v0  ;;  %2835 = vmatpush1.bf16.msra.mxu1 %v9147_v1  ;;  %v9237_v0 = vld [vmem:[%s13598_s1 + $0x424] ss:$52 sps:$4 sm:$0xff]   ;;  %v9240_v1 = vld [vmem:[%s13598_s1 + $0x42c] ss:$52 sps:$4 sm:$0xff]  }
  0x70   :  { %2754 = vmatprep.subr.bf16.mxu0 %v9152_v2  ;;  %2836 = vmatprep.subr.bf16.mxu1 %v9155_v3  ;;  %v9235_v2 = vld [vmem:[%s13598_s1 + $0x420] ss:$52 sps:$4 sm:$0xff]   ;;  %v9238_v3 = vld [vmem:[%s13598_s1 + $0x428] ss:$52 sps:$4 sm:$0xff]  }
  0x73   :  { %2755 = vmatpush1.bf16.msra.mxu0 %v9150_v4  ;;  %2837 = vmatpush1.bf16.msra.mxu1 %v9153_v5  ;;  %v9243_v4 = vld [vmem:[%s13598_s1 + $0x48c] ss:$52 sps:$4 sm:$0xff]   ;;  %v9246_v5 = vld [vmem:[%s13598_s1 + $0x494] ss:$52 sps:$4 sm:$0xff]  }
  0x74   :  { %2756 = vmatprep.subr.bf16.mxu0 %v9158_v6  ;;  %2838 = vmatprep.subr.bf16.mxu1 %v9161_v7  ;;  %v9241_v6 = vld [vmem:[%s13598_s1 + $0x488] ss:$52 sps:$4 sm:$0xff]   ;;  %v9244_v7 = vld [vmem:[%s13598_s1 + $0x490] ss:$52 sps:$4 sm:$0xff]  }
  0x77   :  { %2757 = vmatpush1.bf16.msra.mxu0 %v9156_v8  ;;  %2839 = vmatpush1.bf16.msra.mxu1 %v9159_v10  ;;  %v9249_v8 = vld [vmem:[%s13598_s1 + $0x4f4] ss:$52 sps:$4 sm:$0xff]   ;;  %v9252_v10 = vld [vmem:[%s13598_s1 + $0x4fc] ss:$52 sps:$4 sm:$0xff]  }
  0x78   :  { %2758 = vmatprep.subr.bf16.mxu0 %v9164_v11  ;;  %2840 = vmatprep.subr.bf16.mxu1 %v9167_v12  ;;  %v9247_v11 = vld [vmem:[%s13598_s1 + $0x4f0] ss:$52 sps:$4 sm:$0xff]   ;;  %v9250_v12 = vld [vmem:[%s13598_s1 + $0x4f8] ss:$52 sps:$4 sm:$0xff]  }
  0x7b   :  { %2759 = vmatpush1.bf16.msra.mxu0 %v9162_v13  ;;  %2841 = vmatpush1.bf16.msra.mxu1 %v9165_v14  ;;  %v9255_v13 = vld [vmem:[%s13598_s1 + $0x55c] ss:$52 sps:$4 sm:$0xff]   ;;  %v9258_v14 = vld [vmem:[%s13598_s1 + $0x564] ss:$52 sps:$4 sm:$0xff]  }
  0x7c   :  { %2760 = vmatprep.subr.bf16.mxu0 %v9170_v15  ;;  %2842 = vmatprep.subr.bf16.mxu1 %v9173_v17  ;;  %v9253_v15 = vld [vmem:[%s13598_s1 + $0x558] ss:$52 sps:$4 sm:$0xff]   ;;  %v9256_v17 = vld [vmem:[%s13598_s1 + $0x560] ss:$52 sps:$4 sm:$0xff]  }
  0x7f   :  { %2761 = vmatpush1.bf16.msra.mxu0 %v9168_v18  ;;  %2843 = vmatpush1.bf16.msra.mxu1 %v9171_v19  ;;  %v9261_v18 = vld [vmem:[%s13598_s1 + $0x5c4] ss:$52 sps:$4 sm:$0xff]   ;;  %v9264_v19 = vld [vmem:[%s13598_s1 + $0x5cc] ss:$52 sps:$4 sm:$0xff]  }
  0x80   :  { %2853 = vmatprep.subr.bf16.mxu0 %v9177_v21  ;;  %2935 = vmatprep.subr.bf16.mxu1 %v9180_v22  ;;  %v9259_v21 = vld [vmem:[%s13598_s1 + $0x5c0] ss:$52 sps:$4 sm:$0xff]   ;;  %v9262_v22 = vld [vmem:[%s13598_s1 + $0x5c8] ss:$52 sps:$4 sm:$0xff]  }
  0x82   :  { %2763 = vmatmul.mubr.bf16.vlgmr.msra.gmra.mrb[0].mxu0 %v10889_v23  ;;  %2845 = vmatmul.mubr.bf16.vlgmr.msra.gmra.mrb[0].mxu1 %v10889_v23 }
  0x83   :  { %2854 = vmatpush1.bf16.msra.mxu0 %v9175_v24  ;;  %2936 = vmatpush1.bf16.msra.mxu1 %v9178_v25  ;;  %v9267_v24 = vld [vmem:[%s13598_s1 + $0x62c] ss:$52 sps:$4 sm:$0xff]   ;;  %v9270_v25 = vld [vmem:[%s13598_s1 + $0x634] ss:$52 sps:$4 sm:$0xff]  }
  0x84   :  { %2855 = vmatprep.subr.bf16.mxu0 %v9183_v26  ;;  %2937 = vmatprep.subr.bf16.mxu1 %v9186_v9  ;;  %v9265_v26 = vld [vmem:[%s13598_s1 + $0x628] ss:$52 sps:$4 sm:$0xff]   ;;  %v9268_v9 = vld [vmem:[%s13598_s1 + $0x630] ss:$52 sps:$4 sm:$0xff]  }
  0x85   :  { %2885 = vmatprep.mubr.bf16.mxu0 %v10633_v60  ;;  %2967 = vmatprep.mubr.bf16.mxu1 %v10633_v60 }
  0x87   :  { %2856 = vmatpush1.bf16.msra.mxu0 %v9181_v27  ;;  %2938 = vmatpush1.bf16.msra.mxu1 %v9184_v28  ;;  %v9273_v27 = vld [vmem:[%s13598_s1 + $0x694] ss:$52 sps:$4 sm:$0xff]   ;;  %v9276_v28 = vld [vmem:[%s13598_s1 + $0x69c] ss:$52 sps:$4 sm:$0xff]  }
  0x88   :  { %2857 = vmatprep.subr.bf16.mxu0 %v9189_v29  ;;  %2939 = vmatprep.subr.bf16.mxu1 %v9192_v30  ;;  %v9271_v29 = vld [vmem:[%s13598_s1 + $0x690] ss:$52 sps:$4 sm:$0xff]   ;;  %v9274_v30 = vld [vmem:[%s13598_s1 + $0x698] ss:$52 sps:$4 sm:$0xff]  }
  0x8b   :  { %2858 = vmatpush1.bf16.msra.mxu0 %v9187_v31  ;;  %2940 = vmatpush1.bf16.msra.mxu1 %v9190_v32  ;;  %v9279_v31 = vld [vmem:[%s13598_s1 + $0x6fc] ss:$52 sps:$4 sm:$0xff]   ;;  %v9282_v32 = vld [vmem:[%s13598_s1 + $0x704] ss:$52 sps:$4 sm:$0xff]  }
  0x8c   :  { %2859 = vmatprep.subr.bf16.mxu0 %v9195_v33  ;;  %2941 = vmatprep.subr.bf16.mxu1 %v9198_v34  ;;  %v9277_v33 = vld [vmem:[%s13598_s1 + $0x6f8] ss:$52 sps:$4 sm:$0xff]   ;;  %v9280_v34 = vld [vmem:[%s13598_s1 + $0x700] ss:$52 sps:$4 sm:$0xff]  }
  0x8f   :  { %2860 = vmatpush1.bf16.msra.mxu0 %v9193_v35  ;;  %2942 = vmatpush1.bf16.msra.mxu1 %v9196_v36  ;;  %v9285_v35 = vld [vmem:[%s13598_s1 + $0x764] ss:$52 sps:$4 sm:$0xff]   ;;  %v9288_v36 = vld [vmem:[%s13598_s1 + $0x76c] ss:$52 sps:$4 sm:$0xff]  }
  0x90   :  { %2861 = vmatprep.subr.bf16.mxu0 %v9201_v37  ;;  %2943 = vmatprep.subr.bf16.mxu1 %v9204_v38  ;;  %v9283_v37 = vld [vmem:[%s13598_s1 + $0x760] ss:$52 sps:$4 sm:$0xff]   ;;  %v9286_v38 = vld [vmem:[%s13598_s1 + $0x768] ss:$52 sps:$4 sm:$0xff]  }
  0x93   :  { %2862 = vmatpush1.bf16.msra.mxu0 %v9199_v39  ;;  %2944 = vmatpush1.bf16.msra.mxu1 %v9202_v40  ;;  %v9291_v39 = vld [vmem:[%s13598_s1 + $0x7cc] ss:$52 sps:$4 sm:$0xff]   ;;  %v9294_v40 = vld [vmem:[%s13598_s1 + $0x7d4] ss:$52 sps:$4 sm:$0xff]  }
  0x94   :  { %2863 = vmatprep.subr.bf16.mxu0 %v9207_v41  ;;  %2945 = vmatprep.subr.bf16.mxu1 %v9210_v42  ;;  %v9289_v41 = vld [vmem:[%s13598_s1 + $0x7c8] ss:$52 sps:$4 sm:$0xff]   ;;  %v9292_v42 = vld [vmem:[%s13598_s1 + $0x7d0] ss:$52 sps:$4 sm:$0xff]  }
  0x97   :  { %2864 = vmatpush1.bf16.msra.mxu0 %v9205_v44  ;;  %2946 = vmatpush1.bf16.msra.mxu1 %v9208_v45  ;;  %v9297_v44 = vld [vmem:[%s13598_s1 + $0x834] ss:$52 sps:$4 sm:$0xff]   ;;  %v9300_v45 = vld [vmem:[%s13598_s1 + $0x83c] ss:$52 sps:$4 sm:$0xff]  }
  0x98   :  { %2865 = vmatprep.subr.bf16.mxu0 %v9213_v46  ;;  %2947 = vmatprep.subr.bf16.mxu1 %v9216_v47  ;;  %v9295_v46 = vld [vmem:[%s13598_s1 + $0x830] ss:$52 sps:$4 sm:$0xff]   ;;  %v9298_v47 = vld [vmem:[%s13598_s1 + $0x838] ss:$52 sps:$4 sm:$0xff]  }
  0x9b   :  { %2866 = vmatpush1.bf16.msra.mxu0 %v9211_v48  ;;  %2948 = vmatpush1.bf16.msra.mxu1 %v9214_v50  ;;  %v9303_v48 = vld [vmem:[%s13598_s1 + $0x89c] ss:$52 sps:$4 sm:$0xff]   ;;  %v9306_v50 = vld [vmem:[%s13598_s1 + $0x8a4] ss:$52 sps:$4 sm:$0xff]  }
  0x9c   :  { %2867 = vmatprep.subr.bf16.mxu0 %v9219_v51  ;;  %2949 = vmatprep.subr.bf16.mxu1 %v9222_v52  ;;  %v9301_v51 = vld [vmem:[%s13598_s1 + $0x898] ss:$52 sps:$4 sm:$0xff]   ;;  %v9304_v52 = vld [vmem:[%s13598_s1 + $0x8a0] ss:$52 sps:$4 sm:$0xff]  }
  0x9f   :  { %2868 = vmatpush1.bf16.msra.mxu0 %v9217_v53  ;;  %2950 = vmatpush1.bf16.msra.mxu1 %v9220_v54  ;;  %v9309_v53 = vld [vmem:[%s13598_s1 + $0x904] ss:$52 sps:$4 sm:$0xff]   ;;  %v9312_v54 = vld [vmem:[%s13598_s1 + $0x90c] ss:$52 sps:$4 sm:$0xff]  }
  0xa0   :  { %2869 = vmatprep.subr.bf16.mxu0 %v9225_v55  ;;  %2951 = vmatprep.subr.bf16.mxu1 %v9228_v56  ;;  %v9307_v55 = vld [vmem:[%s13598_s1 + $0x900] ss:$52 sps:$4 sm:$0xff]   ;;  %v9310_v56 = vld [vmem:[%s13598_s1 + $0x908] ss:$52 sps:$4 sm:$0xff]  }
  0xa3   :  { %2870 = vmatpush1.bf16.msra.mxu0 %v9223_v57  ;;  %2952 = vmatpush1.bf16.msra.mxu1 %v9226_v58  ;;  %v9315_v57 = vld [vmem:[%s13598_s1 + $0x96c] ss:$52 sps:$4 sm:$0xff]   ;;  %v9318_v58 = vld [vmem:[%s13598_s1 + $0x974] ss:$52 sps:$4 sm:$0xff]  }
  0xa4   :  { %2871 = vmatprep.subr.bf16.mxu0 %v9231_v59  ;;  %2953 = vmatprep.subr.bf16.mxu1 %v9234_v61  ;;  %v9313_v59 = vld [vmem:[%s13598_s1 + $0x968] ss:$52 sps:$4 sm:$0xff]   ;;  %v9316_v61 = vld [vmem:[%s13598_s1 + $0x970] ss:$52 sps:$4 sm:$0xff]  }
  0xa7   :  { %2872 = vmatpush1.bf16.msra.mxu0 %v9229_v62  ;;  %2954 = vmatpush1.bf16.msra.mxu1 %v9232_v63  ;;  %v9321_v62 = vld [vmem:[%s13598_s1 + $0x9d4] ss:$52 sps:$4 sm:$0xff]   ;;  %v9324_v63 = vld [vmem:[%s13598_s1 + $0x9dc] ss:$52 sps:$4 sm:$0xff]  }
  0xa8   :  { %2873 = vmatprep.subr.bf16.mxu0 %v9237_v0  ;;  %2955 = vmatprep.subr.bf16.mxu1 %v9240_v1  ;;  %v9319_v0 = vld [vmem:[%s13598_s1 + $0x9d0] ss:$52 sps:$4 sm:$0xff]   ;;  %v9322_v1 = vld [vmem:[%s13598_s1 + $0x9d8] ss:$52 sps:$4 sm:$0xff]  }
  0xab   :  { %2874 = vmatpush1.bf16.msra.mxu0 %v9235_v2  ;;  %2956 = vmatpush1.bf16.msra.mxu1 %v9238_v3  ;;  %v9327_v2 = vld [vmem:[%s13598_s1 + $0xa3c] ss:$52 sps:$4 sm:$0xff]   ;;  %v9330_v3 = vld [vmem:[%s13598_s1 + $0xa44] ss:$52 sps:$4 sm:$0xff]  }
  0xac   :  { %2875 = vmatprep.subr.bf16.mxu0 %v9243_v4  ;;  %2957 = vmatprep.subr.bf16.mxu1 %v9246_v5  ;;  %v9325_v4 = vld [vmem:[%s13598_s1 + $0xa38] ss:$52 sps:$4 sm:$0xff]   ;;  %v9328_v5 = vld [vmem:[%s13598_s1 + $0xa40] ss:$52 sps:$4 sm:$0xff]  }
  0xaf   :  { %2876 = vmatpush1.bf16.msra.mxu0 %v9241_v6  ;;  %2958 = vmatpush1.bf16.msra.mxu1 %v9244_v7  ;;  %v9333_v6 = vld [vmem:[%s13598_s1 + $0xaa4] ss:$52 sps:$4 sm:$0xff]   ;;  %v9336_v7 = vld [vmem:[%s13598_s1 + $0xaac] ss:$52 sps:$4 sm:$0xff]  }
  0xb0   :  { %2877 = vmatprep.subr.bf16.mxu0 %v9249_v8  ;;  %2959 = vmatprep.subr.bf16.mxu1 %v9252_v10  ;;  %v9331_v8 = vld [vmem:[%s13598_s1 + $0xaa0] ss:$52 sps:$4 sm:$0xff]   ;;  %v9334_v10 = vld [vmem:[%s13598_s1 + $0xaa8] ss:$52 sps:$4 sm:$0xff]  }
  0xb3   :  { %2878 = vmatpush1.bf16.msra.mxu0 %v9247_v11  ;;  %2960 = vmatpush1.bf16.msra.mxu1 %v9250_v12  ;;  %v9339_v11 = vld [vmem:[%s13598_s1 + $0xb0c] ss:$52 sps:$4 sm:$0xff]   ;;  %v9342_v12 = vld [vmem:[%s13598_s1 + $0xb14] ss:$52 sps:$4 sm:$0xff]  }
  0xb4   :  { %2879 = vmatprep.subr.bf16.mxu0 %v9255_v13  ;;  %2961 = vmatprep.subr.bf16.mxu1 %v9258_v14  ;;  %v9337_v13 = vld [vmem:[%s13598_s1 + $0xb08] ss:$52 sps:$4 sm:$0xff]   ;;  %v9340_v14 = vld [vmem:[%s13598_s1 + $0xb10] ss:$52 sps:$4 sm:$0xff]  }
  0xb7   :  { %2880 = vmatpush1.bf16.msra.mxu0 %v9253_v15  ;;  %2962 = vmatpush1.bf16.msra.mxu1 %v9256_v17  ;;  %v9345_v15 = vld [vmem:[%s13598_s1 + $0xb74] ss:$52 sps:$4 sm:$0xff]   ;;  %v9348_v17 = vld [vmem:[%s13598_s1 + $0xb7c] ss:$52 sps:$4 sm:$0xff]  }
  0xb8   :  { %2881 = vmatprep.subr.bf16.mxu0 %v9261_v18  ;;  %2963 = vmatprep.subr.bf16.mxu1 %v9264_v19  ;;  %v9343_v18 = vld [vmem:[%s13598_s1 + $0xb70] ss:$52 sps:$4 sm:$0xff]   ;;  %v9346_v19 = vld [vmem:[%s13598_s1 + $0xb78] ss:$52 sps:$4 sm:$0xff]  }
  0xbb   :  { %2882 = vmatpush1.bf16.msra.mxu0 %v9259_v21  ;;  %2964 = vmatpush1.bf16.msra.mxu1 %v9262_v22  ;;  %v9351_v21 = vld [vmem:[%s13598_s1 + $0xbdc] ss:$52 sps:$4 sm:$0xff]   ;;  %v9354_v22 = vld [vmem:[%s13598_s1 + $0xbe4] ss:$52 sps:$4 sm:$0xff]  }
  0xbc   :  { %2883 = vmatprep.subr.bf16.mxu0 %v9267_v24  ;;  %2965 = vmatprep.subr.bf16.mxu1 %v9270_v25  ;;  %v9349_v24 = vld [vmem:[%s13598_s1 + $0xbd8] ss:$52 sps:$4 sm:$0xff]   ;;  %v9352_v25 = vld [vmem:[%s13598_s1 + $0xbe0] ss:$52 sps:$4 sm:$0xff]  }
  0xbf   :  { %2884 = vmatpush1.bf16.msra.mxu0 %v9265_v26  ;;  %2966 = vmatpush1.bf16.msra.mxu1 %v9268_v9  ;;  %v9357_v26 = vld [vmem:[%s13598_s1 + $0xc44] ss:$52 sps:$4 sm:$0xff]   ;;  %v9360_v9 = vld [vmem:[%s13598_s1 + $0xc4c] ss:$52 sps:$4 sm:$0xff]  }
  0xc0   :  { %2894 = vmatprep.subr.bf16.mxu0 %v9273_v27  ;;  %2976 = vmatprep.subr.bf16.mxu1 %v9276_v28  ;;  %v9355_v27 = vld [vmem:[%s13598_s1 + $0xc40] ss:$52 sps:$4 sm:$0xff]   ;;  %v9358_v28 = vld [vmem:[%s13598_s1 + $0xc48] ss:$52 sps:$4 sm:$0xff]  }
  0xc2   :  { %2886 = vmatmul.mubr.bf16.vlgmr.msra.gmra.mrb[4].mxu0 %v10690_v16  ;;  %2968 = vmatmul.mubr.bf16.vlgmr.msra.gmra.mrb[4].mxu1 %v10690_v16 }
  0xc3   :  { %2895 = vmatpush1.bf16.msra.mxu0 %v9271_v29  ;;  %2977 = vmatpush1.bf16.msra.mxu1 %v9274_v30  ;;  %v9363_v29 = vld [vmem:[%s13598_s1 + $0xcac] ss:$52 sps:$4 sm:$0xff]   ;;  %v9366_v30 = vld [vmem:[%s13598_s1 + $0xcb4] ss:$52 sps:$4 sm:$0xff]  }
  0xc4   :  { %2896 = vmatprep.subr.bf16.mxu0 %v9279_v31  ;;  %2978 = vmatprep.subr.bf16.mxu1 %v9282_v32  ;;  %v9361_v31 = vld [vmem:[%s13598_s1 + $0xca8] ss:$52 sps:$4 sm:$0xff]   ;;  %v9364_v32 = vld [vmem:[%s13598_s1 + $0xcb0] ss:$52 sps:$4 sm:$0xff]  }
  0xc5   :  { %2926 = vmatprep.mubr.bf16.mxu0 %v10701_v20  ;;  %3008 = vmatprep.mubr.bf16.mxu1 %v10701_v20 }
  0xc7   :  { %2897 = vmatpush1.bf16.msra.mxu0 %v9277_v33  ;;  %2979 = vmatpush1.bf16.msra.mxu1 %v9280_v34  ;;  %v9369_v33 = vld [vmem:[%s13598_s1 + $0x24] ss:$52 sps:$4 sm:$0xff]   ;;  %v9372_v34 = vld [vmem:[%s13598_s1 + $0x2c] ss:$52 sps:$4 sm:$0xff]  }
  0xc8   :  { %2898 = vmatprep.subr.bf16.mxu0 %v9285_v35  ;;  %2980 = vmatprep.subr.bf16.mxu1 %v9288_v36  ;;  %v9367_v35 = vld [vmem:[%s13598_s1 + $0x20] ss:$52 sps:$4 sm:$0xff]   ;;  %v9370_v36 = vld [vmem:[%s13598_s1 + $0x28] ss:$52 sps:$4 sm:$0xff]  }
  0xcb   :  { %2899 = vmatpush1.bf16.msra.mxu0 %v9283_v37  ;;  %2981 = vmatpush1.bf16.msra.mxu1 %v9286_v38  ;;  %v9375_v37 = vld [vmem:[%s13598_s1 + $0x8c] ss:$52 sps:$4 sm:$0xff]   ;;  %v9378_v38 = vld [vmem:[%s13598_s1 + $0x94] ss:$52 sps:$4 sm:$0xff]  }
  0xcc   :  { %2900 = vmatprep.subr.bf16.mxu0 %v9291_v39  ;;  %2982 = vmatprep.subr.bf16.mxu1 %v9294_v40  ;;  %v9373_v39 = vld [vmem:[%s13598_s1 + $0x88] ss:$52 sps:$4 sm:$0xff]   ;;  %v9376_v40 = vld [vmem:[%s13598_s1 + $0x90] ss:$52 sps:$4 sm:$0xff]  }
  0xcf   :  { %2901 = vmatpush1.bf16.msra.mxu0 %v9289_v41  ;;  %2983 = vmatpush1.bf16.msra.mxu1 %v9292_v42  ;;  %v9381_v41 = vld [vmem:[%s13598_s1 + $0xf4] ss:$52 sps:$4 sm:$0xff]   ;;  %v9384_v42 = vld [vmem:[%s13598_s1 + $0xfc] ss:$52 sps:$4 sm:$0xff]  }
  0xd0   :  { %2902 = vmatprep.subr.bf16.mxu0 %v9297_v44  ;;  %2984 = vmatprep.subr.bf16.mxu1 %v9300_v45  ;;  %v9379_v44 = vld [vmem:[%s13598_s1 + $0xf0] ss:$52 sps:$4 sm:$0xff]   ;;  %v9382_v45 = vld [vmem:[%s13598_s1 + $0xf8] ss:$52 sps:$4 sm:$0xff]  }
  0xd3   :  { %2903 = vmatpush1.bf16.msra.mxu0 %v9295_v46  ;;  %2985 = vmatpush1.bf16.msra.mxu1 %v9298_v47  ;;  %v9387_v46 = vld [vmem:[%s13598_s1 + $0x15c] ss:$52 sps:$4 sm:$0xff]   ;;  %v9390_v47 = vld [vmem:[%s13598_s1 + $0x164] ss:$52 sps:$4 sm:$0xff]  }
  0xd4   :  { %2904 = vmatprep.subr.bf16.mxu0 %v9303_v48  ;;  %2986 = vmatprep.subr.bf16.mxu1 %v9306_v50  ;;  %v9385_v48 = vld [vmem:[%s13598_s1 + $0x158] ss:$52 sps:$4 sm:$0xff]   ;;  %v9388_v50 = vld [vmem:[%s13598_s1 + $0x160] ss:$52 sps:$4 sm:$0xff]  }
  0xd7   :  { %2905 = vmatpush1.bf16.msra.mxu0 %v9301_v51  ;;  %2987 = vmatpush1.bf16.msra.mxu1 %v9304_v52  ;;  %v9393_v51 = vld [vmem:[%s13598_s1 + $0x1c4] ss:$52 sps:$4 sm:$0xff]   ;;  %v9396_v52 = vld [vmem:[%s13598_s1 + $0x1cc] ss:$52 sps:$4 sm:$0xff]  }
  0xd8   :  { %2906 = vmatprep.subr.bf16.mxu0 %v9309_v53  ;;  %2988 = vmatprep.subr.bf16.mxu1 %v9312_v54  ;;  %v9391_v53 = vld [vmem:[%s13598_s1 + $0x1c0] ss:$52 sps:$4 sm:$0xff]   ;;  %v9394_v54 = vld [vmem:[%s13598_s1 + $0x1c8] ss:$52 sps:$4 sm:$0xff]  }
  0xdb   :  { %2907 = vmatpush1.bf16.msra.mxu0 %v9307_v55  ;;  %2989 = vmatpush1.bf16.msra.mxu1 %v9310_v56  ;;  %v9399_v55 = vld [vmem:[%s13598_s1 + $0x22c] ss:$52 sps:$4 sm:$0xff]   ;;  %v9402_v56 = vld [vmem:[%s13598_s1 + $0x234] ss:$52 sps:$4 sm:$0xff]  }
  0xdc   :  { %2908 = vmatprep.subr.bf16.mxu0 %v9315_v57  ;;  %2990 = vmatprep.subr.bf16.mxu1 %v9318_v58  ;;  %v9397_v57 = vld [vmem:[%s13598_s1 + $0x228] ss:$52 sps:$4 sm:$0xff]   ;;  %v9400_v58 = vld [vmem:[%s13598_s1 + $0x230] ss:$52 sps:$4 sm:$0xff]  }
  0xdf   :  { %2909 = vmatpush1.bf16.msra.mxu0 %v9313_v59  ;;  %2991 = vmatpush1.bf16.msra.mxu1 %v9316_v61  ;;  %v9405_v59 = vld [vmem:[%s13598_s1 + $0x294] ss:$52 sps:$4 sm:$0xff]   ;;  %v9408_v61 = vld [vmem:[%s13598_s1 + $0x29c] ss:$52 sps:$4 sm:$0xff]  }
  0xe0   :  { %2910 = vmatprep.subr.bf16.mxu0 %v9321_v62  ;;  %2992 = vmatprep.subr.bf16.mxu1 %v9324_v63  ;;  %v9403_v62 = vld [vmem:[%s13598_s1 + $0x290] ss:$52 sps:$4 sm:$0xff]   ;;  %v9406_v63 = vld [vmem:[%s13598_s1 + $0x298] ss:$52 sps:$4 sm:$0xff]  }
  0xe3   :  { %2911 = vmatpush1.bf16.msra.mxu0 %v9319_v0  ;;  %2993 = vmatpush1.bf16.msra.mxu1 %v9322_v1  ;;  %v9411_v0 = vld [vmem:[%s13598_s1 + $0x2fc] ss:$52 sps:$4 sm:$0xff]   ;;  %v9414_v1 = vld [vmem:[%s13598_s1 + $0x304] ss:$52 sps:$4 sm:$0xff]  }
  0xe4   :  { %2912 = vmatprep.subr.bf16.mxu0 %v9327_v2  ;;  %2994 = vmatprep.subr.bf16.mxu1 %v9330_v3  ;;  %v9409_v2 = vld [vmem:[%s13598_s1 + $0x2f8] ss:$52 sps:$4 sm:$0xff]   ;;  %v9412_v3 = vld [vmem:[%s13598_s1 + $0x300] ss:$52 sps:$4 sm:$0xff]  }
  0xe7   :  { %2913 = vmatpush1.bf16.msra.mxu0 %v9325_v4  ;;  %2995 = vmatpush1.bf16.msra.mxu1 %v9328_v5  ;;  %v9417_v4 = vld [vmem:[%s13598_s1 + $0x364] ss:$52 sps:$4 sm:$0xff]   ;;  %v9420_v5 = vld [vmem:[%s13598_s1 + $0x36c] ss:$52 sps:$4 sm:$0xff]  }
  0xe8   :  { %2914 = vmatprep.subr.bf16.mxu0 %v9333_v6  ;;  %2996 = vmatprep.subr.bf16.mxu1 %v9336_v7  ;;  %v9415_v6 = vld [vmem:[%s13598_s1 + $0x360] ss:$52 sps:$4 sm:$0xff]   ;;  %v9418_v7 = vld [vmem:[%s13598_s1 + $0x368] ss:$52 sps:$4 sm:$0xff]  }
  0xeb   :  { %2915 = vmatpush1.bf16.msra.mxu0 %v9331_v8  ;;  %2997 = vmatpush1.bf16.msra.mxu1 %v9334_v10  ;;  %v9423_v8 = vld [vmem:[%s13598_s1 + $0x3cc] ss:$52 sps:$4 sm:$0xff]   ;;  %v9426_v10 = vld [vmem:[%s13598_s1 + $0x3d4] ss:$52 sps:$4 sm:$0xff]  }
  0xec   :  { %2916 = vmatprep.subr.bf16.mxu0 %v9339_v11  ;;  %2998 = vmatprep.subr.bf16.mxu1 %v9342_v12  ;;  %v9421_v11 = vld [vmem:[%s13598_s1 + $0x3c8] ss:$52 sps:$4 sm:$0xff]   ;;  %v9424_v12 = vld [vmem:[%s13598_s1 + $0x3d0] ss:$52 sps:$4 sm:$0xff]  }
  0xef   :  { %2917 = vmatpush1.bf16.msra.mxu0 %v9337_v13  ;;  %2999 = vmatpush1.bf16.msra.mxu1 %v9340_v14  ;;  %v9429_v13 = vld [vmem:[%s13598_s1 + $0x434] ss:$52 sps:$4 sm:$0xff]   ;;  %v9432_v14 = vld [vmem:[%s13598_s1 + $0x43c] ss:$52 sps:$4 sm:$0xff]  }
  0xf0   :  { %2918 = vmatprep.subr.bf16.mxu0 %v9345_v15  ;;  %3000 = vmatprep.subr.bf16.mxu1 %v9348_v17  ;;  %v9427_v15 = vld [vmem:[%s13598_s1 + $0x430] ss:$52 sps:$4 sm:$0xff]   ;;  %v9430_v17 = vld [vmem:[%s13598_s1 + $0x438] ss:$52 sps:$4 sm:$0xff]  }
  0xf3   :  { %2919 = vmatpush1.bf16.msra.mxu0 %v9343_v18  ;;  %3001 = vmatpush1.bf16.msra.mxu1 %v9346_v19  ;;  %v9435_v18 = vld [vmem:[%s13598_s1 + $0x49c] ss:$52 sps:$4 sm:$0xff]   ;;  %v9438_v19 = vld [vmem:[%s13598_s1 + $0x4a4] ss:$52 sps:$4 sm:$0xff]  }
  0xf4   :  { %2920 = vmatprep.subr.bf16.mxu0 %v9351_v21  ;;  %3002 = vmatprep.subr.bf16.mxu1 %v9354_v22  ;;  %v9433_v21 = vld [vmem:[%s13598_s1 + $0x498] ss:$52 sps:$4 sm:$0xff]   ;;  %v9436_v22 = vld [vmem:[%s13598_s1 + $0x4a0] ss:$52 sps:$4 sm:$0xff]  }
  0xf7   :  { %2921 = vmatpush1.bf16.msra.mxu0 %v9349_v24  ;;  %3003 = vmatpush1.bf16.msra.mxu1 %v9352_v25  ;;  %v9441_v24 = vld [vmem:[%s13598_s1 + $0x504] ss:$52 sps:$4 sm:$0xff]   ;;  %v9444_v25 = vld [vmem:[%s13598_s1 + $0x50c] ss:$52 sps:$4 sm:$0xff]  }
  0xf8   :  { %2922 = vmatprep.subr.bf16.mxu0 %v9357_v26  ;;  %3004 = vmatprep.subr.bf16.mxu1 %v9360_v9  ;;  %v9439_v26 = vld [vmem:[%s13598_s1 + $0x500] ss:$52 sps:$4 sm:$0xff]   ;;  %v9442_v9 = vld [vmem:[%s13598_s1 + $0x508] ss:$52 sps:$4 sm:$0xff]  }
  0xfb   :  { %2923 = vmatpush1.bf16.msra.mxu0 %v9355_v27  ;;  %3005 = vmatpush1.bf16.msra.mxu1 %v9358_v28  ;;  %v9447_v27 = vld [vmem:[%s13598_s1 + $0x56c] ss:$52 sps:$4 sm:$0xff]   ;;  %v9450_v28 = vld [vmem:[%s13598_s1 + $0x574] ss:$52 sps:$4 sm:$0xff]  }
  0xfc   :  { %2924 = vmatprep.subr.bf16.mxu0 %v9363_v29  ;;  %3006 = vmatprep.subr.bf16.mxu1 %v9366_v30  ;;  %v9445_v29 = vld [vmem:[%s13598_s1 + $0x568] ss:$52 sps:$4 sm:$0xff]   ;;  %v9448_v30 = vld [vmem:[%s13598_s1 + $0x570] ss:$52 sps:$4 sm:$0xff]  }
  0xff   :  { %2925 = vmatpush1.bf16.msra.mxu0 %v9361_v31  ;;  %3007 = vmatpush1.bf16.msra.mxu1 %v9364_v32  ;;  %v9453_v31 = vld [vmem:[%s13598_s1 + $0x5d4] ss:$52 sps:$4 sm:$0xff]   ;;  %v9456_v32 = vld [vmem:[%s13598_s1 + $0x5dc] ss:$52 sps:$4 sm:$0xff]  }
 0x100   :  { %3017 = vmatprep.subr.bf16.mxu0 %v9369_v33  ;;  %3099 = vmatprep.subr.bf16.mxu1 %v9372_v34  ;;  %v9451_v33 = vld [vmem:[%s13598_s1 + $0x5d0] ss:$52 sps:$4 sm:$0xff]   ;;  %v9454_v34 = vld [vmem:[%s13598_s1 + $0x5d8] ss:$52 sps:$4 sm:$0xff]  }
 0x102   :  { %2927 = vmatmul.mubr.bf16.vlgmr.msra.gmra.mrb[4].mxu0 %v10889_v23  ;;  %3009 = vmatmul.mubr.bf16.vlgmr.msra.gmra.mrb[4].mxu1 %v10889_v23 }
 0x103   :  { %3018 = vmatpush1.bf16.msra.mxu0 %v9367_v35  ;;  %3100 = vmatpush1.bf16.msra.mxu1 %v9370_v36  ;;  %v9459_v35 = vld [vmem:[%s13598_s1 + $0x63c] ss:$52 sps:$4 sm:$0xff]   ;;  %v9462_v36 = vld [vmem:[%s13598_s1 + $0x644] ss:$52 sps:$4 sm:$0xff]  }
 0x104   :  { %3019 = vmatprep.subr.bf16.mxu0 %v9375_v37  ;;  %3101 = vmatprep.subr.bf16.mxu1 %v9378_v38  ;;  %v9457_v37 = vld [vmem:[%s13598_s1 + $0x638] ss:$52 sps:$4 sm:$0xff]   ;;  %v9460_v38 = vld [vmem:[%s13598_s1 + $0x640] ss:$52 sps:$4 sm:$0xff]  }
 0x105   :  { %3049 = vmatprep.mubr.bf16.mxu0 %v10633_v60  ;;  %3131 = vmatprep.mubr.bf16.mxu1 %v10633_v60 }
 0x107   :  { %3020 = vmatpush1.bf16.msra.mxu0 %v9373_v39  ;;  %3102 = vmatpush1.bf16.msra.mxu1 %v9376_v40  ;;  %v9465_v39 = vld [vmem:[%s13598_s1 + $0x6a4] ss:$52 sps:$4 sm:$0xff]   ;;  %v9468_v40 = vld [vmem:[%s13598_s1 + $0x6ac] ss:$52 sps:$4 sm:$0xff]  }
 0x108   :  { %3021 = vmatprep.subr.bf16.mxu0 %v9381_v41  ;;  %3103 = vmatprep.subr.bf16.mxu1 %v9384_v42  ;;  %v9463_v41 = vld [vmem:[%s13598_s1 + $0x6a0] ss:$52 sps:$4 sm:$0xff]   ;;  %v9466_v42 = vld [vmem:[%s13598_s1 + $0x6a8] ss:$52 sps:$4 sm:$0xff]  }
 0x10b   :  { %3022 = vmatpush1.bf16.msra.mxu0 %v9379_v44  ;;  %3104 = vmatpush1.bf16.msra.mxu1 %v9382_v45  ;;  %v9471_v44 = vld [vmem:[%s13598_s1 + $0x70c] ss:$52 sps:$4 sm:$0xff]   ;;  %v9474_v45 = vld [vmem:[%s13598_s1 + $0x714] ss:$52 sps:$4 sm:$0xff]  }
 0x10c   :  { %3023 = vmatprep.subr.bf16.mxu0 %v9387_v46  ;;  %3105 = vmatprep.subr.bf16.mxu1 %v9390_v47  ;;  %v9469_v46 = vld [vmem:[%s13598_s1 + $0x708] ss:$52 sps:$4 sm:$0xff]   ;;  %v9472_v47 = vld [vmem:[%s13598_s1 + $0x710] ss:$52 sps:$4 sm:$0xff]  }
 0x10f   :  { %3024 = vmatpush1.bf16.msra.mxu0 %v9385_v48  ;;  %3106 = vmatpush1.bf16.msra.mxu1 %v9388_v50  ;;  %v9477_v48 = vld [vmem:[%s13598_s1 + $0x774] ss:$52 sps:$4 sm:$0xff]   ;;  %v9480_v50 = vld [vmem:[%s13598_s1 + $0x77c] ss:$52 sps:$4 sm:$0xff]  }
 0x110   :  { %3025 = vmatprep.subr.bf16.mxu0 %v9393_v51  ;;  %3107 = vmatprep.subr.bf16.mxu1 %v9396_v52  ;;  %v9475_v51 = vld [vmem:[%s13598_s1 + $0x770] ss:$52 sps:$4 sm:$0xff]   ;;  %v9478_v52 = vld [vmem:[%s13598_s1 + $0x778] ss:$52 sps:$4 sm:$0xff]  }
 0x113   :  { %3026 = vmatpush1.bf16.msra.mxu0 %v9391_v53  ;;  %3108 = vmatpush1.bf16.msra.mxu1 %v9394_v54  ;;  %v9483_v53 = vld [vmem:[%s13598_s1 + $0x7dc] ss:$52 sps:$4 sm:$0xff]   ;;  %v9486_v54 = vld [vmem:[%s13598_s1 + $0x7e4] ss:$52 sps:$4 sm:$0xff]  }
 0x114   :  { %3027 = vmatprep.subr.bf16.mxu0 %v9399_v55  ;;  %3109 = vmatprep.subr.bf16.mxu1 %v9402_v56  ;;  %v9481_v55 = vld [vmem:[%s13598_s1 + $0x7d8] ss:$52 sps:$4 sm:$0xff]   ;;  %v9484_v56 = vld [vmem:[%s13598_s1 + $0x7e0] ss:$52 sps:$4 sm:$0xff]  }
 0x117   :  { %3028 = vmatpush1.bf16.msra.mxu0 %v9397_v57  ;;  %3110 = vmatpush1.bf16.msra.mxu1 %v9400_v58  ;;  %v9489_v57 = vld [vmem:[%s13598_s1 + $0x844] ss:$52 sps:$4 sm:$0xff]   ;;  %v9492_v58 = vld [vmem:[%s13598_s1 + $0x84c] ss:$52 sps:$4 sm:$0xff]  }
 0x118   :  { %3029 = vmatprep.subr.bf16.mxu0 %v9405_v59  ;;  %3111 = vmatprep.subr.bf16.mxu1 %v9408_v61  ;;  %v9487_v59 = vld [vmem:[%s13598_s1 + $0x840] ss:$52 sps:$4 sm:$0xff]   ;;  %v9490_v61 = vld [vmem:[%s13598_s1 + $0x848] ss:$52 sps:$4 sm:$0xff]  }
 0x11b   :  { %3030 = vmatpush1.bf16.msra.mxu0 %v9403_v62  ;;  %3112 = vmatpush1.bf16.msra.mxu1 %v9406_v63  ;;  %v508_v62 = vld [vmem:[%s13601_s2] sm:$0xff]  ;;  %v11541_v63 = vsub.s32 0, %v10588_v43 }
 0x11c   :  { %3031 = vmatprep.subr.bf16.mxu0 %v9411_v0  ;;  %3113 = vmatprep.subr.bf16.mxu1 %v9414_v1  ;;  %v11544_v0 = vsub.s32 2, %v10588_v43  ;;  %v11547_v1 = vsub.s32 1, %v10588_v43 }
 0x11f   :  { %3032 = vmatpush1.bf16.msra.mxu0 %v9409_v2  ;;  %3114 = vmatpush1.bf16.msra.mxu1 %v9412_v3  ;;  %v11550_v2 = vsub.s32 3, %v10588_v43  ;;  %v9495_v3 = vld [vmem:[%s13598_s1 + $0x8ac] ss:$52 sps:$4 sm:$0xff]  }
 0x120   :  { %3033 = vmatprep.subr.bf16.mxu0 %v9417_v4  ;;  %3115 = vmatprep.subr.bf16.mxu1 %v9420_v5  ;;  %v9498_v4 = vld [vmem:[%s13598_s1 + $0x8b4] ss:$52 sps:$4 sm:$0xff]  }
 0x121   :  { %v9493_v5 = vld [vmem:[%s13598_s1 + $0x8a8] ss:$52 sps:$4 sm:$0xff]  }
 0x123   :  { %3034 = vmatpush1.bf16.msra.mxu0 %v9415_v6  ;;  %3116 = vmatpush1.bf16.msra.mxu1 %v9418_v7  ;;  %v9496_v6 = vld [vmem:[%s13598_s1 + $0x8b0] ss:$52 sps:$4 sm:$0xff]   ;;  %v515_v7 = vrot.slane %v508_v62, %v11541_v63 }
 0x124   :  { %3035 = vmatprep.subr.bf16.mxu0 %v9423_v8  ;;  %3117 = vmatprep.subr.bf16.mxu1 %v9426_v10  ;;  %v523_v8 = vrot.slane %v508_v62, %v11544_v0  ;;  %v9501_v10 = vld [vmem:[%s13598_s1 + $0x914] ss:$52 sps:$4 sm:$0xff]  }
 0x127   :  { %3036 = vmatpush1.bf16.msra.mxu0 %v9421_v11  ;;  %3118 = vmatpush1.bf16.msra.mxu1 %v9424_v12  ;;  %v9504_v11 = vld [vmem:[%s13598_s1 + $0x91c] ss:$52 sps:$4 sm:$0xff]   ;;  %v519_v12 = vrot.slane %v508_v62, %v11547_v1 }
 0x128   :  { %3037 = vmatprep.subr.bf16.mxu0 %v9429_v13  ;;  %3119 = vmatprep.subr.bf16.mxu1 %v9432_v14  ;;  %v527_v13 = vrot.slane %v508_v62, %v11550_v2  ;;  %v9537_v62 = vld [vmem:[%s13598_s1 + $0xb84] ss:$52 sps:$4 sm:$0xff]  }
 0x12b   :  { %3038 = vmatpush1.bf16.msra.mxu0 %v9427_v15  ;;  %3120 = vmatpush1.bf16.msra.mxu1 %v9430_v17  ;;  %v9499_v17 = vld [vmem:[%s13598_s1 + $0x910] ss:$52 sps:$4 sm:$0xff]  }
 0x12c   :  { %3039 = vmatprep.subr.bf16.mxu0 %v9435_v18  ;;  %3121 = vmatprep.subr.bf16.mxu1 %v9438_v19  ;;  %v9502_v18 = vld [vmem:[%s13598_s1 + $0x918] ss:$52 sps:$4 sm:$0xff]  }
 0x12f   :  { %3040 = vmatpush1.bf16.msra.mxu0 %v9433_v21  ;;  %3122 = vmatpush1.bf16.msra.mxu1 %v9436_v22 }
 0x130   :  { %3041 = vmatprep.subr.bf16.mxu0 %v9441_v24  ;;  %3123 = vmatprep.subr.bf16.mxu1 %v9444_v25  ;;  %v9507_v25 = vld [vmem:[%s13598_s1 + $0x97c] ss:$52 sps:$4 sm:$0xff]  }
 0x133   :  { %3042 = vmatpush1.bf16.msra.mxu0 %v9439_v26  ;;  %3124 = vmatpush1.bf16.msra.mxu1 %v9442_v9  ;;  %v9510_v26 = vld [vmem:[%s13598_s1 + $0x984] ss:$52 sps:$4 sm:$0xff]  }
 0x134   :  { %3043 = vmatprep.subr.bf16.mxu0 %v9447_v27  ;;  %3125 = vmatprep.subr.bf16.mxu1 %v9450_v28 }
 0x137   :  { %3044 = vmatpush1.bf16.msra.mxu0 %v9445_v29  ;;  %3126 = vmatpush1.bf16.msra.mxu1 %v9448_v30 }
 0x138   :  { %3045 = vmatprep.subr.bf16.mxu0 %v9453_v31  ;;  %3127 = vmatprep.subr.bf16.mxu1 %v9456_v32 }
 0x13b   :  { %3046 = vmatpush1.bf16.msra.mxu0 %v9451_v33  ;;  %3128 = vmatpush1.bf16.msra.mxu1 %v9454_v34 }
 0x13c   :  { %3047 = vmatprep.subr.bf16.mxu0 %v9459_v35  ;;  %3129 = vmatprep.subr.bf16.mxu1 %v9462_v36  ;;  %v9505_v36 = vld [vmem:[%s13598_s1 + $0x978] ss:$52 sps:$4 sm:$0xff]  }
 0x13f   :  { %3048 = vmatpush1.bf16.msra.mxu0 %v9457_v37  ;;  %3130 = vmatpush1.bf16.msra.mxu1 %v9460_v38  ;;  %v9508_v37 = vld [vmem:[%s13598_s1 + $0x980] ss:$52 sps:$4 sm:$0xff]   ;;  %v9513_v38 = vld [vmem:[%s13598_s1 + $0x9e4] ss:$52 sps:$4 sm:$0xff]  }
 0x140   :  { %3058 = vmatprep.subr.bf16.mxu0 %v9465_v39  ;;  %3140 = vmatprep.subr.bf16.mxu1 %v9468_v40  ;;  %v9516_v39 = vld [vmem:[%s13598_s1 + $0x9ec] ss:$52 sps:$4 sm:$0xff]  }
 0x142   :  { %3050 = vmatmul.mubr.bf16.vlgmr.msra.gmra.mrb[8].mxu0 %v10690_v16  ;;  %3132 = vmatmul.mubr.bf16.vlgmr.msra.gmra.mrb[8].mxu1 %v10690_v16 }
 0x143   :  { %3059 = vmatpush1.bf16.msra.mxu0 %v9463_v41  ;;  %3141 = vmatpush1.bf16.msra.mxu1 %v9466_v42 }
 0x144   :  { %3060 = vmatprep.subr.bf16.mxu0 %v9471_v44  ;;  %3142 = vmatprep.subr.bf16.mxu1 %v9474_v45  ;;  %v9511_v45 = vld [vmem:[%s13598_s1 + $0x9e0] ss:$52 sps:$4 sm:$0xff]  }
 0x145   :  { %3090 = vmatprep.mubr.bf16.mxu0 %v10701_v20  ;;  %3172 = vmatprep.mubr.bf16.mxu1 %v10701_v20 }
 0x147   :  { %3061 = vmatpush1.bf16.msra.mxu0 %v9469_v46  ;;  %3143 = vmatpush1.bf16.msra.mxu1 %v9472_v47  ;;  %v9514_v46 = vld [vmem:[%s13598_s1 + $0x9e8] ss:$52 sps:$4 sm:$0xff]   ;;  %v9519_v47 = vld [vmem:[%s13598_s1 + $0xa4c] ss:$52 sps:$4 sm:$0xff]  }
 0x148   :  { %3062 = vmatprep.subr.bf16.mxu0 %v9477_v48  ;;  %3144 = vmatprep.subr.bf16.mxu1 %v9480_v50  ;;  %v9522_v48 = vld [vmem:[%s13598_s1 + $0xa54] ss:$52 sps:$4 sm:$0xff]  }
 0x14b   :  { %3063 = vmatpush1.bf16.msra.mxu0 %v9475_v51  ;;  %3145 = vmatpush1.bf16.msra.mxu1 %v9478_v52  ;;  %v9517_v51 = vld [vmem:[%s13598_s1 + $0xa48] ss:$52 sps:$4 sm:$0xff]   ;;  %v9520_v52 = vld [vmem:[%s13598_s1 + $0xa50] ss:$52 sps:$4 sm:$0xff]  }
 0x14c   :  { %3064 = vmatprep.subr.bf16.mxu0 %v9483_v53  ;;  %3146 = vmatprep.subr.bf16.mxu1 %v9486_v54  ;;  %v9525_v53 = vld [vmem:[%s13598_s1 + $0xab4] ss:$52 sps:$4 sm:$0xff]   ;;  %v9528_v54 = vld [vmem:[%s13598_s1 + $0xabc] ss:$52 sps:$4 sm:$0xff]  }
 0x14f   :  { %3065 = vmatpush1.bf16.msra.mxu0 %v9481_v55  ;;  %3147 = vmatpush1.bf16.msra.mxu1 %v9484_v56  ;;  %v9523_v55 = vld [vmem:[%s13598_s1 + $0xab0] ss:$52 sps:$4 sm:$0xff]   ;;  %v9526_v56 = vld [vmem:[%s13598_s1 + $0xab8] ss:$52 sps:$4 sm:$0xff]  }
 0x150   :  { %3066 = vmatprep.subr.bf16.mxu0 %v9489_v57  ;;  %3148 = vmatprep.subr.bf16.mxu1 %v9492_v58  ;;  %v9531_v57 = vld [vmem:[%s13598_s1 + $0xb1c] ss:$52 sps:$4 sm:$0xff]   ;;  %v9534_v58 = vld [vmem:[%s13598_s1 + $0xb24] ss:$52 sps:$4 sm:$0xff]  }
 0x153   :  { %3067 = vmatpush1.bf16.msra.mxu0 %v9487_v59  ;;  %3149 = vmatpush1.bf16.msra.mxu1 %v9490_v61  ;;  %v9529_v59 = vld [vmem:[%s13598_s1 + $0xb18] ss:$52 sps:$4 sm:$0xff]   ;;  %v9532_v61 = vld [vmem:[%s13598_s1 + $0xb20] ss:$52 sps:$4 sm:$0xff]  }
 0x154   :  { %3068 = vmatprep.subr.bf16.mxu0 %v9495_v3  ;;  %3150 = vmatprep.subr.bf16.mxu1 %v9498_v4  ;;  %v9540_v3 = vld [vmem:[%s13598_s1 + $0xb8c] ss:$52 sps:$4 sm:$0xff]  }
 0x155   :  { %v2764_v14 = vpop.f32.mrb[0].mxu0  ;;  %v2846_v15 = vpop.f32.mrb[0].mxu1  ;;  %v9535_v4 = vld [vmem:[%s13598_s1 + $0xb80] ss:$52 sps:$4 sm:$0xff]  }
 0x156   :  { %v8880_v19 = vadd.f32 %v2764_v14, %v515_v7  ;;  %v8882_v21 = vadd.f32 %v2846_v15, %v523_v8  ;;  %v2766_v22 = vpop.f32.mrb[1].mxu0  ;;  %v2848_v24 = vpop.f32.mrb[1].mxu1  ;;  %v9546_v7 = vld [vmem:[%s13598_s1 + $0xbf4] ss:$52 sps:$4 sm:$0xff]   ;;  %v9550_v14 = vld [vmem:[%s13598_s1 + $0xc58] ss:$52 sps:$4 sm:$0xff]  }
 0x157   :  { %v8881_v9 = vadd.f32 %v2766_v22, %v519_v12  ;;  %v8883_v27 = vadd.f32 %v2848_v24, %v527_v13  ;;  %v2768_v28 = vpop.f32.mrb[2].mxu0  ;;  %v2850_v29 = vpop.f32.mrb[2].mxu1  ;;  %3069 = vmatpush1.bf16.msra.mxu0 %v9493_v5  ;;  %3151 = vmatpush1.bf16.msra.mxu1 %v9496_v6  ;;  %v9538_v5 = vld [vmem:[%s13598_s1 + $0xb88] ss:$52 sps:$4 sm:$0xff]   ;;  %v9543_v6 = vld [vmem:[%s13598_s1 + $0xbec] ss:$52 sps:$4 sm:$0xff]  }
 0x158   :  { %v3261_v30 = vmax.f32 %v8880_v19, 0.0  ;;  %v3263_v31 = vmax.f32 %v8882_v21, 0.0  ;;  %v2769_v32 = vpop.f32.mrb[3].mxu0  ;;  %v2851_v33 = vpop.f32.mrb[3].mxu1  ;;  %3070 = vmatprep.subr.bf16.mxu0 %v9501_v10  ;;  %3152 = vmatprep.subr.bf16.mxu1 %v9504_v11  ;;  %v9541_v8 = vld [vmem:[%s13598_s1 + $0xbe8] ss:$52 sps:$4 sm:$0xff]  }
 0x159   :  { %v3262_v34 = vmax.f32 %v8881_v9, 0.0  ;;  %v3264_v35 = vmax.f32 %v8883_v27, 0.0  ;;  %v9544_v10 = vld [vmem:[%s13598_s1 + $0xbf0] ss:$52 sps:$4 sm:$0xff]   ;;  %v9549_v11 = vld [vmem:[%s13598_s1 + $0xc54] ss:$52 sps:$4 sm:$0xff]  }
 0x15a   :  { %v9552_v12 = vld [vmem:[%s13598_s1 + $0xc5c] ss:$52 sps:$4 sm:$0xff]   ;;  %v9556_v19 = vld [vmem:[%s13598_s1 + $0xcc0] ss:$52 sps:$4 sm:$0xff]   ;;  %v9564_v9 = vld [vmem:[%s13598_s1 + $0xa58] ss:$52 sps:$4 sm:$0xff]  }
 0x15b   :  { %v3287_v40 = vcombine.low %v3261_v30, %v3262_v34  ;;  %v3288_v41 = vcombine.low %v3263_v31, %v3264_v35  ;;  %3071 = vmatpush1.bf16.msra.mxu0 %v9499_v17  ;;  %3153 = vmatpush1.bf16.msra.mxu1 %v9502_v18  ;;  %v9547_v13 = vld [vmem:[%s13598_s1 + $0xc50] ss:$52 sps:$4 sm:$0xff]   ;;  %v9553_v18 = vld [vmem:[%s13598_s1 + $0xcb8] ss:$52 sps:$4 sm:$0xff]   ;;  %v9567_v29 = vld [vmem:[%s13598_s1 + $0x440] ss:$52 sps:$4 sm:$0xff]  }
 0x15c   :  { %3072 = vmatprep.subr.bf16.mxu0 %v9507_v25  ;;  %3154 = vmatprep.subr.bf16.mxu1 %v9510_v26  ;;  %v9555_v15 = vld [vmem:[%s13598_s1 + $0xcbc] ss:$52 sps:$4 sm:$0xff]   ;;  %v9558_v17 = vld [vmem:[%s13598_s1 + $0xcc4] ss:$52 sps:$4 sm:$0xff]   ;;  %v9568_v30 = vld [vmem:[%s13598_s1 + $0xac0] ss:$52 sps:$4 sm:$0xff]  }
 0x15d   :  { %v3295_v42 = vrot.slane %v3287_v40, %v10606_v49  ;;  %v11600_v44 = vrot.slane %v3288_v41, %v10606_v49  ;;  %v9559_v21 = vld [vmem:[%s13598_s1 + $0x370] ss:$52 sps:$4 sm:$0xff]   ;;  %v9563_v26 = vld [vmem:[%s13598_s1 + $0x3d8] ss:$52 sps:$4 sm:$0xff]   ;;  %v9569_v31 = vld [vmem:[%s13598_s1 + $0x100] ss:$52 sps:$4 sm:$0xff]  }
 0x15e   :  { %v9560_v22 = vld [vmem:[%s13598_s1 + $0x9f0] ss:$52 sps:$4 sm:$0xff]   ;;  %v9565_v27 = vld [vmem:[%s13598_s1 + $0x98] ss:$52 sps:$4 sm:$0xff]   ;;  %v9570_v32 = vld [vmem:[%s13598_s1 + $0x780] ss:$52 sps:$4 sm:$0xff]  }
 0x15f   :  { %v11615_v50 = vcombine.low %v3295_v42, %v11600_v44  ;;  %3073 = vmatpush1.bf16.msra.mxu0 %v9505_v36  ;;  %3155 = vmatpush1.bf16.msra.mxu1 %v9508_v37  ;;  %v9561_v24 = vld [vmem:[%s13598_s1 + $0x30] ss:$52 sps:$4 sm:$0xff]   ;;  %v9566_v28 = vld [vmem:[%s13598_s1 + $0x718] ss:$52 sps:$4 sm:$0xff]   ;;  %v9571_v33 = vld [vmem:[%s13598_s1 + $0x4a8] ss:$52 sps:$4 sm:$0xff]  }
 0x160   :  { %3074 = vmatprep.subr.bf16.mxu0 %v9513_v38  ;;  %3156 = vmatprep.subr.bf16.mxu1 %v9516_v39  ;;  %v9562_v25 = vld [vmem:[%s13598_s1 + $0x6b0] ss:$52 sps:$4 sm:$0xff]   ;;  %v9572_v34 = vld [vmem:[%s13598_s1 + $0xb28] ss:$52 sps:$4 sm:$0xff]   ;;  %v9579_v39 = vld [vmem:[%s13598_s1 + $0x578] ss:$52 sps:$4 sm:$0xff]  }
 0x161   :  { %v9573_v35 = vld [vmem:[%s13598_s1 + $0x168] ss:$52 sps:$4 sm:$0xff]   ;;  %v9576_v36 = vld [vmem:[%s13598_s1 + $0xb90] ss:$52 sps:$4 sm:$0xff]   ;;  %v9580_v40 = vld [vmem:[%s13598_s1 + $0xbf8] ss:$52 sps:$4 sm:$0xff]  }
 0x162   :  { %v9577_v37 = vld [vmem:[%s13598_s1 + $0x1d0] ss:$52 sps:$4 sm:$0xff]   ;;  %v9581_v41 = vld [vmem:[%s13598_s1 + $0x238] ss:$52 sps:$4 sm:$0xff]  }
 0x163   :  { %3075 = vmatpush1.bf16.msra.mxu0 %v9511_v45  ;;  %3157 = vmatpush1.bf16.msra.mxu1 %v9514_v46  ;;  %v9578_v38 = vld [vmem:[%s13598_s1 + $0x850] ss:$52 sps:$4 sm:$0xff]   ;;  %v9582_v42 = vld [vmem:[%s13598_s1 + $0x8b8] ss:$52 sps:$4 sm:$0xff]   ;;  %v9583_v45 = vld [vmem:[%s13598_s1 + $0x5e0] ss:$52 sps:$4 sm:$0xff]  }
 0x164   :  { %3076 = vmatprep.subr.bf16.mxu0 %v9519_v47  ;;  %3158 = vmatprep.subr.bf16.mxu1 %v9522_v48  ;;  %v9584_v46 = vld [vmem:[%s13598_s1 + $0xc60] ss:$52 sps:$4 sm:$0xff]  }
 0x165   :  { %v9585_v47 = vld [vmem:[%s13598_s1 + $0x2a0] ss:$52 sps:$4 sm:$0xff]  }
 0x166   :  { %v9586_v48 = vld [vmem:[%s13598_s1 + $0x920] ss:$52 sps:$4 sm:$0xff]  }
 0x167   :  { %3077 = vmatpush1.bf16.msra.mxu0 %v9517_v51  ;;  %3159 = vmatpush1.bf16.msra.mxu1 %v9520_v52  ;;  %v9587_v51 = vld [vmem:[%s13598_s1 + $0x648] ss:$52 sps:$4 sm:$0xff]  }
 0x168   :  { %3078 = vmatprep.subr.bf16.mxu0 %v9525_v53  ;;  %3160 = vmatprep.subr.bf16.mxu1 %v9528_v54  ;;  %v9588_v52 = vld [vmem:[%s13598_s1 + $0xcc8] ss:$52 sps:$4 sm:$0xff]  }
 0x169   :  { %v9589_v53 = vld [vmem:[%s13598_s1 + $0x308] ss:$52 sps:$4 sm:$0xff]  }
 0x16a   :  { %v9590_v54 = vld [vmem:[%s13598_s1 + $0x988] ss:$52 sps:$4 sm:$0xff]  }
 0x16b   :  { %3079 = vmatpush1.bf16.msra.mxu0 %v9523_v55  ;;  %3161 = vmatpush1.bf16.msra.mxu1 %v9526_v56  ;;  %v11797_v55 = vrot.slane %v11615_v50, %v10606_v49  ;;  %v9593_v56 = vld [vmem:[%s13600_s3 + $0x4] ss:$16 sps:$4 sm:$0xff]  }
 0x16c   :  { %3080 = vmatprep.subr.bf16.mxu0 %v9531_v57  ;;  %3162 = vmatprep.subr.bf16.mxu1 %v9534_v58  ;;  %v9596_v57 = vld [vmem:[%s13600_s3 + $0xc] ss:$16 sps:$4 sm:$0xff]   ;;  %v9591_v58 = vld [vmem:[%s13600_s3] ss:$16 sps:$4 sm:$0xff]  }
 0x16d   :  { %v3377_v50 = vcombine.high %v11797_v55, %v11797_v55 }
 0x16f   :  { %3081 = vmatpush1.bf16.msra.mxu0 %v9529_v59  ;;  %3163 = vmatpush1.bf16.msra.mxu1 %v9532_v61  ;;  %v9594_v59 = vld [vmem:[%s13600_s3 + $0x8] ss:$16 sps:$4 sm:$0xff]   ;;  %v9599_v61 = vld [vmem:[%s13600_s3 + $0x24] ss:$16 sps:$4 sm:$0xff]  }
 0x170   :  { %3082 = vmatprep.subr.bf16.mxu0 %v9537_v62  ;;  %3164 = vmatprep.subr.bf16.mxu1 %v9540_v3  ;;  %v9602_v62 = vld [vmem:[%s13600_s3 + $0x2c] ss:$16 sps:$4 sm:$0xff]   ;;  %v3434_v3 = vpack.c.bf16 %v3377_v50, %v3377_v50 }
 0x171   :  { %v9674_v50 = vld [vmem:[%s13600_s3 + $0x1ac] ss:$16 sps:$4 sm:$0xff]  }
 0x173   :  { %3083 = vmatpush1.bf16.msra.mxu0 %v9535_v4  ;;  %3165 = vmatpush1.bf16.msra.mxu1 %v9538_v5  ;;  %v9597_v4 = vld [vmem:[%s13600_s3 + $0x20] ss:$16 sps:$4 sm:$0xff]   ;;  %v9600_v5 = vld [vmem:[%s13600_s3 + $0x28] ss:$16 sps:$4 sm:$0xff]  }
 0x174   :  { %3084 = vmatprep.subr.bf16.mxu0 %v9543_v6  ;;  %3166 = vmatprep.subr.bf16.mxu1 %v9546_v7  ;;  %v9605_v6 = vld [vmem:[%s13600_s3 + $0x44] ss:$16 sps:$4 sm:$0xff]   ;;  %v9606_v7 = vld [vmem:[%s13600_s3 + $0x48] ss:$16 sps:$4 sm:$0xff]  }
 0x177   :  { %3085 = vmatpush1.bf16.msra.mxu0 %v9541_v8  ;;  %3167 = vmatpush1.bf16.msra.mxu1 %v9544_v10  ;;  %v9611_v8 = vld [vmem:[%s13600_s3 + $0x64] ss:$16 sps:$4 sm:$0xff]   ;;  %v9609_v10 = vld [vmem:[%s13600_s3 + $0x60] ss:$16 sps:$4 sm:$0xff]  }
 0x178   :  { %3086 = vmatprep.subr.bf16.mxu0 %v9549_v11  ;;  %3168 = vmatprep.subr.bf16.mxu1 %v9552_v12  ;;  %v9614_v11 = vld [vmem:[%s13600_s3 + $0x6c] ss:$16 sps:$4 sm:$0xff]   ;;  %v9612_v12 = vld [vmem:[%s13600_s3 + $0x68] ss:$16 sps:$4 sm:$0xff]  }
 0x17b   :  { %3087 = vmatpush1.bf16.msra.mxu0 %v9547_v13  ;;  %3169 = vmatpush1.bf16.msra.mxu1 %v9550_v14  ;;  %v9617_v13 = vld [vmem:[%s13600_s3 + $0x84] ss:$16 sps:$4 sm:$0xff]   ;;  %v9615_v14 = vld [vmem:[%s13600_s3 + $0x80] ss:$16 sps:$4 sm:$0xff]  }
 0x17c   :  { %3088 = vmatprep.subr.bf16.mxu0 %v9555_v15  ;;  %3170 = vmatprep.subr.bf16.mxu1 %v9558_v17  ;;  %v9620_v15 = vld [vmem:[%s13600_s3 + $0x8c] ss:$16 sps:$4 sm:$0xff]   ;;  %v9618_v17 = vld [vmem:[%s13600_s3 + $0x88] ss:$16 sps:$4 sm:$0xff]  }
 0x17f   :  { %3089 = vmatpush1.bf16.msra.mxu0 %v9553_v18  ;;  %3171 = vmatpush1.bf16.msra.mxu1 %v9556_v19  ;;  %v9623_v18 = vld [vmem:[%s13600_s3 + $0xa4] ss:$16 sps:$4 sm:$0xff]   ;;  %v9621_v19 = vld [vmem:[%s13600_s3 + $0xa0] ss:$16 sps:$4 sm:$0xff]  }
 0x180   :  { %8792 = vmatprep.subr.bf16.mxu0 %v9559_v21  ;;  %8814 = vmatprep.subr.bf16.mxu1 %v9560_v22  ;;  %v9626_v21 = vld [vmem:[%s13600_s3 + $0xac] ss:$16 sps:$4 sm:$0xff]   ;;  %v9624_v22 = vld [vmem:[%s13600_s3 + $0xa8] ss:$16 sps:$4 sm:$0xff]  }
 0x182   :  { %3091 = vmatmul.mubr.bf16.vlgmr.msra.gmra.mrb[8].mxu0 %v10889_v23  ;;  %3173 = vmatmul.mubr.bf16.vlgmr.msra.gmra.mrb[8].mxu1 %v10889_v23 }
 0x183   :  { %8793 = vmatpush3.bf16.msra.mxu0 %v9561_v24  ;;  %8815 = vmatpush3.bf16.msra.mxu1 %v9562_v25  ;;  %v9629_v24 = vld [vmem:[%s13600_s3 + $0xc4] ss:$16 sps:$4 sm:$0xff]   ;;  %v9627_v25 = vld [vmem:[%s13600_s3 + $0xc0] ss:$16 sps:$4 sm:$0xff]  }
 0x184   :  { %8794 = vmatprep.subr.bf16.mxu0 %v9563_v26  ;;  %8816 = vmatprep.subr.bf16.mxu1 %v9564_v9  ;;  %v9632_v26 = vld [vmem:[%s13600_s3 + $0xcc] ss:$16 sps:$4 sm:$0xff]   ;;  %v9630_v9 = vld [vmem:[%s13600_s3 + $0xc8] ss:$16 sps:$4 sm:$0xff]  }
 0x185   :  { %3213 = vmatprep.mubr.bf16.mxu0 %v10633_v60  ;;  %3253 = vmatprep.mubr.bf16.mxu1 %v10701_v20  ;;  %v9574_v60 = vld [vmem:[%s13598_s1 + $0x7e8] ss:$52 sps:$4 sm:$0xff]   ;;  %v9575_v20 = vld [vmem:[%s13598_s1 + $0x510] ss:$52 sps:$4 sm:$0xff]  }
 0x187   :  { %8795 = vmatpush3.bf16.msra.mxu0 %v9565_v27  ;;  %8817 = vmatpush3.bf16.msra.mxu1 %v9566_v28  ;;  %v9635_v27 = vld [vmem:[%s13600_s3 + $0xe4] ss:$16 sps:$4 sm:$0xff]   ;;  %v9633_v28 = vld [vmem:[%s13600_s3 + $0xe0] ss:$16 sps:$4 sm:$0xff]  }
 0x188   :  { %8796 = vmatprep.subr.bf16.mxu0 %v9567_v29  ;;  %8818 = vmatprep.subr.bf16.mxu1 %v9568_v30  ;;  %v9638_v29 = vld [vmem:[%s13600_s3 + $0xec] ss:$16 sps:$4 sm:$0xff]   ;;  %v9636_v30 = vld [vmem:[%s13600_s3 + $0xe8] ss:$16 sps:$4 sm:$0xff]  }
 0x18b   :  { %8797 = vmatpush3.bf16.msra.mxu0 %v9569_v31  ;;  %8819 = vmatpush3.bf16.msra.mxu1 %v9570_v32  ;;  %v9641_v31 = vld [vmem:[%s13600_s3 + $0x104] ss:$16 sps:$4 sm:$0xff]   ;;  %v9639_v32 = vld [vmem:[%s13600_s3 + $0x100] ss:$16 sps:$4 sm:$0xff]  }
 0x18c   :  { %8798 = vmatprep.subr.bf16.mxu0 %v9571_v33  ;;  %8820 = vmatprep.subr.bf16.mxu1 %v9572_v34  ;;  %v9644_v33 = vld [vmem:[%s13600_s3 + $0x10c] ss:$16 sps:$4 sm:$0xff]   ;;  %v9642_v34 = vld [vmem:[%s13600_s3 + $0x108] ss:$16 sps:$4 sm:$0xff]  }
 0x18f   :  { %8799 = vmatpush3.bf16.msra.mxu0 %v9573_v35  ;;  %8821 = vmatpush3.bf16.msra.mxu1 %v9574_v60  ;;  %v9647_v35 = vld [vmem:[%s13600_s3 + $0x124] ss:$16 sps:$4 sm:$0xff]   ;;  %v9645_v60 = vld [vmem:[%s13600_s3 + $0x120] ss:$16 sps:$4 sm:$0xff]  }
 0x190   :  { %8800 = vmatprep.subr.bf16.mxu0 %v9575_v20  ;;  %8822 = vmatprep.subr.bf16.mxu1 %v9576_v36  ;;  %v9650_v20 = vld [vmem:[%s13600_s3 + $0x12c] ss:$16 sps:$4 sm:$0xff]   ;;  %v9648_v36 = vld [vmem:[%s13600_s3 + $0x128] ss:$16 sps:$4 sm:$0xff]  }
 0x193   :  { %8801 = vmatpush3.bf16.msra.mxu0 %v9577_v37  ;;  %8823 = vmatpush3.bf16.msra.mxu1 %v9578_v38  ;;  %v9653_v37 = vld [vmem:[%s13600_s3 + $0x144] ss:$16 sps:$4 sm:$0xff]   ;;  %v9651_v38 = vld [vmem:[%s13600_s3 + $0x140] ss:$16 sps:$4 sm:$0xff]  }
 0x194   :  { %8802 = vmatprep.subr.bf16.mxu0 %v9579_v39  ;;  %8824 = vmatprep.subr.bf16.mxu1 %v9580_v40  ;;  %v9656_v39 = vld [vmem:[%s13600_s3 + $0x14c] ss:$16 sps:$4 sm:$0xff]   ;;  %v9654_v40 = vld [vmem:[%s13600_s3 + $0x148] ss:$16 sps:$4 sm:$0xff]  }
 0x197   :  { %8803 = vmatpush3.bf16.msra.mxu0 %v9581_v41  ;;  %8825 = vmatpush3.bf16.msra.mxu1 %v9582_v42  ;;  %v9659_v41 = vld [vmem:[%s13600_s3 + $0x164] ss:$16 sps:$4 sm:$0xff]   ;;  %v9657_v42 = vld [vmem:[%s13600_s3 + $0x160] ss:$16 sps:$4 sm:$0xff]  }
 0x198   :  { %8804 = vmatprep.subr.bf16.mxu0 %v9583_v45  ;;  %8826 = vmatprep.subr.bf16.mxu1 %v9584_v46  ;;  %v9662_v45 = vld [vmem:[%s13600_s3 + $0x16c] ss:$16 sps:$4 sm:$0xff]   ;;  %v9660_v46 = vld [vmem:[%s13600_s3 + $0x168] ss:$16 sps:$4 sm:$0xff]  }
 0x19b   :  { %8805 = vmatpush3.bf16.msra.mxu0 %v9585_v47  ;;  %8827 = vmatpush3.bf16.msra.mxu1 %v9586_v48  ;;  %v9665_v47 = vld [vmem:[%s13600_s3 + $0x184] ss:$16 sps:$4 sm:$0xff]   ;;  %v9663_v48 = vld [vmem:[%s13600_s3 + $0x180] ss:$16 sps:$4 sm:$0xff]  }
 0x19c   :  { %8806 = vmatprep.subr.bf16.mxu0 %v9587_v51  ;;  %8828 = vmatprep.subr.bf16.mxu1 %v9588_v52  ;;  %v9668_v51 = vld [vmem:[%s13600_s3 + $0x18c] ss:$16 sps:$4 sm:$0xff]   ;;  %v530_v52 = vsub.s32 4, %v10588_v43 }
 0x19f   :  { %8807 = vmatpush3.bf16.msra.mxu0 %v9589_v53  ;;  %8829 = vmatpush3.bf16.msra.mxu1 %v9590_v54  ;;  %v538_v53 = vsub.s32 6, %v10588_v43  ;;  %v534_v54 = vsub.s32 5, %v10588_v43 }
 0x1a0   :  { %5872 = vmatprep.subr.bf16.mxu0 %v9593_v56  ;;  %6159 = vmatprep.subr.bf16.mxu1 %v9596_v57  ;;  %v542_v56 = vsub.s32 7, %v10588_v43  ;;  %v9666_v57 = vld [vmem:[%s13600_s3 + $0x188] ss:$16 sps:$4 sm:$0xff]  }
 0x1a2   :  { %3214 = vmatmul.mubr.bf16.vlgmr.msra.gmra.mrb[12].mxu0 %v10690_v16  ;;  %3254 = vmatmul.mubr.bf16.vlgmr.msra.gmra.mrb[12].mxu1 %v10889_v23  ;;  %v9608_v16 = vld [vmem:[%s13600_s3 + $0x4c] ss:$16 sps:$4 sm:$0xff]   ;;  %v9603_v23 = vld [vmem:[%s13600_s3 + $0x40] ss:$16 sps:$4 sm:$0xff]  }
 0x1a3   :  { %5873 = vmatpush1.bf16.msra.mxu0 %v9591_v58  ;;  %5904 = vmatprep.mubr.bf16.mxu0 %v3434_v3  ;;  %v9671_v58 = vld [vmem:[%s13600_s3 + $0x1a4] ss:$16 sps:$4 sm:$0xff]  }
 0x1a4   :  { %6160 = vmatpush1.bf16.msra.mxu1 %v9594_v59  ;;  %6191 = vmatprep.mubr.bf16.mxu1 %v3434_v3  ;;  %v9669_v59 = vld [vmem:[%s13600_s3 + $0x1a0] ss:$16 sps:$4 sm:$0xff]  }
 0x1a5   :  { %5874 = vmatprep.subr.bf16.mxu0 %v9599_v61  ;;  %6161 = vmatprep.subr.bf16.mxu1 %v9602_v62  ;;  %v10415_v61 = vld [vmem:[%s13601_s2] sm:$0xff] }
 0x1a6   :  { %v531_v62 = vrot.slane %v10415_v61, %v530_v52  ;;  %v539_v3 = vrot.slane %v10415_v61, %v538_v53  ;;  %v9699_v53 = vld [vmem:[%s13600_s3 + $0x240] ss:$16 sps:$4 sm:$0xff]  }
 0x1a7   :  { %5875 = vmatpush1.bf16.msra.mxu0 %v9597_v4  ;;  %v9672_v4 = vld [vmem:[%s13600_s3 + $0x1a8] ss:$16 sps:$4 sm:$0xff]  }
 0x1a8   :  { %6162 = vmatpush1.bf16.msra.mxu1 %v9600_v5  ;;  %5876 = vmatprep.subr.bf16.mxu0 %v9605_v6  ;;  %v9677_v5 = vld [vmem:[%s13600_s3 + $0x1c4] ss:$16 sps:$4 sm:$0xff]   ;;  %v535_v6 = vrot.slane %v10415_v61, %v534_v54  ;;  %v9702_v54 = vld [vmem:[%s13600_s3 + $0x248] ss:$16 sps:$4 sm:$0xff]  }
 0x1a9   :  { %6163 = vmatprep.subr.bf16.mxu1 %v9608_v16  ;;  %v543_v16 = vrot.slane %v10415_v61, %v542_v56  ;;  %v9707_v56 = vld [vmem:[%s13600_s3 + $0x264] ss:$16 sps:$4 sm:$0xff]   ;;  %v9716_v61 = vld [vmem:[%s13600_s3 + $0x28c] ss:$16 sps:$4 sm:$0xff]  }
 0x1ab   :  { %5877 = vmatpush1.bf16.msra.mxu0 %v9603_v23  ;;  %v9680_v23 = vld [vmem:[%s13600_s3 + $0x1cc] ss:$16 sps:$4 sm:$0xff]  }
 0x1ac   :  { %6164 = vmatpush1.bf16.msra.mxu1 %v9606_v7  ;;  %5878 = vmatprep.subr.bf16.mxu0 %v9611_v8 }
 0x1ad   :  { %6165 = vmatprep.subr.bf16.mxu1 %v9614_v11 }
 0x1af   :  { %5879 = vmatpush1.bf16.msra.mxu0 %v9609_v10 }
 0x1b0   :  { %6166 = vmatpush1.bf16.msra.mxu1 %v9612_v12  ;;  %5880 = vmatprep.subr.bf16.mxu0 %v9617_v13 }
 0x1b1   :  { %6167 = vmatprep.subr.bf16.mxu1 %v9620_v15  ;;  %v9678_v15 = vld [vmem:[%s13600_s3 + $0x1c8] ss:$16 sps:$4 sm:$0xff]  }
 0x1b3   :  { %5881 = vmatpush1.bf16.msra.mxu0 %v9615_v14  ;;  %v9675_v14 = vld [vmem:[%s13600_s3 + $0x1c0] ss:$16 sps:$4 sm:$0xff]  }
 0x1b4   :  { %6168 = vmatpush1.bf16.msra.mxu1 %v9618_v17  ;;  %5882 = vmatprep.subr.bf16.mxu0 %v9623_v18  ;;  %v10416_v17 = vcombine.low %v11600_v44, %v11600_v44 }
 0x1b5   :  { %6169 = vmatprep.subr.bf16.mxu1 %v9626_v21 }
 0x1b7   :  { %5883 = vmatpush1.bf16.msra.mxu0 %v9621_v19 }
 0x1b8   :  { %6170 = vmatpush1.bf16.msra.mxu1 %v9624_v22  ;;  %5884 = vmatprep.subr.bf16.mxu0 %v9629_v24  ;;  %v9683_v24 = vld [vmem:[%s13600_s3 + $0x1e4] ss:$16 sps:$4 sm:$0xff]  }
 0x1b9   :  { %6171 = vmatprep.subr.bf16.mxu1 %v9632_v26 }
 0x1bb   :  { %5885 = vmatpush1.bf16.msra.mxu0 %v9627_v25  ;;  %v9686_v25 = vld [vmem:[%s13600_s3 + $0x1ec] ss:$16 sps:$4 sm:$0xff]  }
 0x1bc   :  { %6172 = vmatpush1.bf16.msra.mxu1 %v9630_v9  ;;  %5886 = vmatprep.subr.bf16.mxu0 %v9635_v27 }
 0x1bd   :  { %6173 = vmatprep.subr.bf16.mxu1 %v9638_v29 }
 0x1bf   :  { %5887 = vmatpush1.bf16.msra.mxu0 %v9633_v28 }
 0x1c0   :  { %6174 = vmatpush1.bf16.msra.mxu1 %v9636_v30  ;;  %5888 = vmatprep.subr.bf16.mxu0 %v9641_v31  ;;  %v9681_v30 = vld [vmem:[%s13600_s3 + $0x1e0] ss:$16 sps:$4 sm:$0xff]   ;;  %v9684_v31 = vld [vmem:[%s13600_s3 + $0x1e8] ss:$16 sps:$4 sm:$0xff]  }
 0x1c1   :  { %6175 = vmatprep.subr.bf16.mxu1 %v9644_v33 }
 0x1c3   :  { %5889 = vmatpush1.bf16.msra.mxu0 %v9639_v32  ;;  %v12007_v32 = vrot.slane %v10416_v17, %v10606_v49  ;;  %v9740_v17 = vld [vmem:[%s13600_s3 + $0x30c] ss:$16 sps:$4 sm:$0xff]  }
 0x1c4   :  { %6176 = vmatpush1.bf16.msra.mxu1 %v9642_v34  ;;  %5890 = vmatprep.subr.bf16.mxu0 %v9647_v35  ;;  %v9689_v35 = vld [vmem:[%s13600_s3 + $0x204] ss:$16 sps:$4 sm:$0xff]  }
 0x1c5   :  { %6177 = vmatprep.subr.bf16.mxu1 %v9650_v20 }
 0x1c7   :  { %5891 = vmatpush1.bf16.msra.mxu0 %v9645_v60  ;;  %v9692_v60 = vld [vmem:[%s13600_s3 + $0x20c] ss:$16 sps:$4 sm:$0xff]  }
 0x1c8   :  { %6178 = vmatpush1.bf16.msra.mxu1 %v9648_v36  ;;  %5892 = vmatprep.subr.bf16.mxu0 %v9653_v37  ;;  %v9687_v37 = vld [vmem:[%s13600_s3 + $0x200] ss:$16 sps:$4 sm:$0xff]  }
 0x1c9   :  { %6179 = vmatprep.subr.bf16.mxu1 %v9656_v39 }
 0x1cb   :  { %5893 = vmatpush1.bf16.msra.mxu0 %v9651_v38  ;;  %v3378_v38 = vcombine.high %v12007_v32, %v12007_v32 }
 0x1cc   :  { %6180 = vmatpush1.bf16.msra.mxu1 %v9654_v40  ;;  %5894 = vmatprep.subr.bf16.mxu0 %v9659_v41  ;;  %v9690_v40 = vld [vmem:[%s13600_s3 + $0x208] ss:$16 sps:$4 sm:$0xff]   ;;  %v9695_v41 = vld [vmem:[%s13600_s3 + $0x224] ss:$16 sps:$4 sm:$0xff]  }
 0x1cd   :  { %6181 = vmatprep.subr.bf16.mxu1 %v9662_v45  ;;  %v3436_v45 = vpack.c.bf16 %v3378_v38, %v3378_v38  ;;  %v9765_v38 = vld [vmem:[%s13600_s3 + $0x3a0] ss:$16 sps:$4 sm:$0xff]  }
 0x1cf   :  { %5895 = vmatpush1.bf16.msra.mxu0 %v9657_v42  ;;  %v3433_v42 = vpack.c.bf16 %v11797_v55, %v11797_v55  ;;  %v9701_v55 = vld [vmem:[%s13600_s3 + $0x244] ss:$16 sps:$4 sm:$0xff]  }
 0x1d0   :  { %6182 = vmatpush1.bf16.msra.mxu1 %v9660_v46  ;;  %5896 = vmatprep.subr.bf16.mxu0 %v9665_v47  ;;  %v9693_v46 = vld [vmem:[%s13600_s3 + $0x220] ss:$16 sps:$4 sm:$0xff]   ;;  %v9696_v47 = vld [vmem:[%s13600_s3 + $0x228] ss:$16 sps:$4 sm:$0xff]  }
 0x1d1   :  { %6183 = vmatprep.subr.bf16.mxu1 %v9668_v51  ;;  %v9704_v51 = vld [vmem:[%s13600_s3 + $0x24c] ss:$16 sps:$4 sm:$0xff]  }
 0x1d3   :  { %5897 = vmatpush1.bf16.msra.mxu0 %v9663_v48  ;;  %v9698_v48 = vld [vmem:[%s13600_s3 + $0x22c] ss:$16 sps:$4 sm:$0xff]  }
 0x1d4   :  { %6184 = vmatpush1.bf16.msra.mxu1 %v9666_v57  ;;  %5898 = vmatprep.subr.bf16.mxu0 %v9671_v58  ;;  %v9705_v57 = vld [vmem:[%s13600_s3 + $0x260] ss:$16 sps:$4 sm:$0xff]   ;;  %v9710_v58 = vld [vmem:[%s13600_s3 + $0x26c] ss:$16 sps:$4 sm:$0xff]  }
 0x1d5   :  { %v2928_v7 = vpop.f32.mrb[4].mxu0  ;;  %v3010_v8 = vpop.f32.mrb[4].mxu1  ;;  %6185 = vmatprep.subr.bf16.mxu1 %v9674_v50  ;;  %v9708_v50 = vld [vmem:[%s13600_s3 + $0x268] ss:$16 sps:$4 sm:$0xff]  }
 0x1d6   :  { %v8884_v10 = vadd.f32 %v2928_v7, %v531_v62  ;;  %v8886_v11 = vadd.f32 %v3010_v8, %v539_v3  ;;  %v2930_v12 = vpop.f32.mrb[5].mxu0  ;;  %v3012_v13 = vpop.f32.mrb[5].mxu1  ;;  %v9711_v62 = vld [vmem:[%s13600_s3 + $0x280] ss:$16 sps:$4 sm:$0xff]   ;;  %v9714_v3 = vld [vmem:[%s13600_s3 + $0x288] ss:$16 sps:$4 sm:$0xff]  }
 0x1d7   :  { %v8885_v18 = vadd.f32 %v2930_v12, %v535_v6  ;;  %v8887_v19 = vadd.f32 %v3012_v13, %v543_v16  ;;  %v2932_v21 = vpop.f32.mrb[6].mxu0  ;;  %v3014_v22 = vpop.f32.mrb[6].mxu1  ;;  %5899 = vmatpush1.bf16.msra.mxu0 %v9669_v59  ;;  %v9713_v59 = vld [vmem:[%s13600_s3 + $0x284] ss:$16 sps:$4 sm:$0xff]   ;;  %v9717_v6 = vld [vmem:[%s13600_s3 + $0x2a0] ss:$16 sps:$4 sm:$0xff]  }
 0x1d8   :  { %v3265_v26 = vmax.f32 %v8884_v10, 0.0  ;;  %v3267_v9 = vmax.f32 %v8886_v11, 0.0  ;;  %6186 = vmatpush1.bf16.msra.mxu1 %v9672_v4  ;;  %v2933_v27 = vpop.f32.mrb[7].mxu0  ;;  %v3015_v28 = vpop.f32.mrb[7].mxu1  ;;  %5900 = vmatprep.subr.bf16.mxu0 %v9677_v5  ;;  %v9719_v4 = vld [vmem:[%s13600_s3 + $0x2a4] ss:$16 sps:$4 sm:$0xff]  }
 0x1d9   :  { %v3266_v44 = vmax.f32 %v8885_v18, 0.0  ;;  %v3268_v29 = vmax.f32 %v8887_v19, 0.0  ;;  %6187 = vmatprep.subr.bf16.mxu1 %v9680_v23  ;;  %v9722_v5 = vld [vmem:[%s13600_s3 + $0x2ac] ss:$16 sps:$4 sm:$0xff]   ;;  %v9720_v16 = vld [vmem:[%s13600_s3 + $0x2a8] ss:$16 sps:$4 sm:$0xff]  }
 0x1da   :  { %v9725_v23 = vld [vmem:[%s13600_s3 + $0x2c4] ss:$16 sps:$4 sm:$0xff]   ;;  %v9728_v7 = vld [vmem:[%s13600_s3 + $0x2cc] ss:$16 sps:$4 sm:$0xff]   ;;  %v9723_v8 = vld [vmem:[%s13600_s3 + $0x2c0] ss:$16 sps:$4 sm:$0xff]  }
 0x1db   :  { %v3304_v33 = vcombine.low %v3265_v26, %v3266_v44  ;;  %v3305_v34 = vcombine.low %v3267_v9, %v3268_v29  ;;  %5901 = vmatpush1.bf16.msra.mxu0 %v9675_v14  ;;  %v9726_v10 = vld [vmem:[%s13600_s3 + $0x2c8] ss:$16 sps:$4 sm:$0xff]   ;;  %v9731_v11 = vld [vmem:[%s13600_s3 + $0x2e4] ss:$16 sps:$4 sm:$0xff]   ;;  %v9734_v12 = vld [vmem:[%s13600_s3 + $0x2ec] ss:$16 sps:$4 sm:$0xff]  }
 0x1dc   :  { %6188 = vmatpush1.bf16.msra.mxu1 %v9678_v15  ;;  %5902 = vmatprep.subr.bf16.mxu0 %v9683_v24  ;;  %v9729_v13 = vld [vmem:[%s13600_s3 + $0x2e0] ss:$16 sps:$4 sm:$0xff]   ;;  %v9732_v14 = vld [vmem:[%s13600_s3 + $0x2e8] ss:$16 sps:$4 sm:$0xff]   ;;  %v9737_v15 = vld [vmem:[%s13600_s3 + $0x304] ss:$16 sps:$4 sm:$0xff]  }
 0x1dd   :  { %v3312_v20 = vrot.slane %v3304_v33, %v10606_v49  ;;  %v12017_v36 = vrot.slane %v3305_v34, %v10606_v49  ;;  %6189 = vmatprep.subr.bf16.mxu1 %v9686_v25  ;;  %v9735_v18 = vld [vmem:[%s13600_s3 + $0x300] ss:$16 sps:$4 sm:$0xff]   ;;  %v9738_v19 = vld [vmem:[%s13600_s3 + $0x308] ss:$16 sps:$4 sm:$0xff]   ;;  %v9743_v21 = vld [vmem:[%s13600_s3 + $0x324] ss:$16 sps:$4 sm:$0xff]  }
 0x1de   :  { %v9746_v22 = vld [vmem:[%s13600_s3 + $0x32c] ss:$16 sps:$4 sm:$0xff]   ;;  %v9741_v24 = vld [vmem:[%s13600_s3 + $0x320] ss:$16 sps:$4 sm:$0xff]   ;;  %v9744_v25 = vld [vmem:[%s13600_s3 + $0x328] ss:$16 sps:$4 sm:$0xff]  }
 0x1df   :  { %v12025_v39 = vcombine.low %v3312_v20, %v12017_v36  ;;  %5903 = vmatpush1.bf16.msra.mxu0 %v9681_v30  ;;  %v9749_v26 = vld [vmem:[%s13600_s3 + $0x344] ss:$16 sps:$4 sm:$0xff]   ;;  %v9752_v9 = vld [vmem:[%s13600_s3 + $0x34c] ss:$16 sps:$4 sm:$0xff]   ;;  %v9747_v27 = vld [vmem:[%s13600_s3 + $0x340] ss:$16 sps:$4 sm:$0xff]  }
 0x1e0   :  { %6190 = vmatpush1.bf16.msra.mxu1 %v9684_v31  ;;  %5913 = vmatprep.subr.bf16.mxu0 %v9689_v35  ;;  %v9750_v28 = vld [vmem:[%s13600_s3 + $0x348] ss:$16 sps:$4 sm:$0xff]   ;;  %v9755_v44 = vld [vmem:[%s13600_s3 + $0x364] ss:$16 sps:$4 sm:$0xff]   ;;  %v9758_v29 = vld [vmem:[%s13600_s3 + $0x36c] ss:$16 sps:$4 sm:$0xff]  }
 0x1e1   :  { %6200 = vmatprep.subr.bf16.mxu1 %v9692_v60  ;;  %v9753_v30 = vld [vmem:[%s13600_s3 + $0x360] ss:$16 sps:$4 sm:$0xff]   ;;  %v9756_v31 = vld [vmem:[%s13600_s3 + $0x368] ss:$16 sps:$4 sm:$0xff]   ;;  %v9761_v33 = vld [vmem:[%s13600_s3 + $0x384] ss:$16 sps:$4 sm:$0xff]  }
 0x1e2   :  { %5905 = vmatmul.mubr.bf16.vlgmr.msra.gmra.mrb[16].mxu0 %v3433_v42  ;;  %v9764_v34 = vld [vmem:[%s13600_s3 + $0x38c] ss:$16 sps:$4 sm:$0xff]   ;;  %v9759_v35 = vld [vmem:[%s13600_s3 + $0x380] ss:$16 sps:$4 sm:$0xff]   ;;  %v9762_v60 = vld [vmem:[%s13600_s3 + $0x388] ss:$16 sps:$4 sm:$0xff]  }
 0x1e3   :  { %6192 = vmatmul.mubr.bf16.vlgmr.msra.gmra.mrb[16].mxu1 %v3433_v42  ;;  %5914 = vmatpush1.bf16.msra.mxu0 %v9687_v37  ;;  %v9767_v20 = vld [vmem:[%s13600_s3 + $0x3a4] ss:$16 sps:$4 sm:$0xff]   ;;  %v9770_v37 = vld [vmem:[%s13600_s3 + $0x3ac] ss:$16 sps:$4 sm:$0xff]  }
 0x1e4   :  { %5945 = vmatprep.mubr.bf16.mxu0 %v3436_v45  ;;  %6201 = vmatpush1.bf16.msra.mxu1 %v9690_v40  ;;  %v9768_v40 = vld [vmem:[%s13600_s3 + $0x3a8] ss:$16 sps:$4 sm:$0xff]   ;;  %v9776_v42 = vld [vmem:[%s13600_s3 + $0x3cc] ss:$16 sps:$4 sm:$0xff]  }
 0x1e5   :  { %6232 = vmatprep.mubr.bf16.mxu1 %v3436_v45  ;;  %5915 = vmatprep.subr.bf16.mxu0 %v9695_v41  ;;  %v9773_v41 = vld [vmem:[%s13600_s3 + $0x3c4] ss:$16 sps:$4 sm:$0xff]   ;;  %v9771_v45 = vld [vmem:[%s13600_s3 + $0x3c0] ss:$16 sps:$4 sm:$0xff]  }
 0x1e6   :  { %6202 = vmatprep.subr.bf16.mxu1 %v9698_v48  ;;  %v9782_v48 = vld [vmem:[%s13600_s3 + $0x3ec] ss:$16 sps:$4 sm:$0xff]  }
 0x1e7   :  { %5916 = vmatpush1.bf16.msra.mxu0 %v9693_v46  ;;  %v9774_v46 = vld [vmem:[%s13600_s3 + $0x3c8] ss:$16 sps:$4 sm:$0xff]  }
 0x1e8   :  { %6203 = vmatpush1.bf16.msra.mxu1 %v9696_v47  ;;  %5917 = vmatprep.subr.bf16.mxu0 %v9701_v55  ;;  %v9779_v47 = vld [vmem:[%s13600_s3 + $0x3e4] ss:$16 sps:$4 sm:$0xff]   ;;  %v12208_v55 = vrot.slane %v12025_v39, %v10606_v49  ;;  %v9788_v39 = vld [vmem:[%s13600_s3 + $0x40c] ss:$16 sps:$4 sm:$0xff]  }
 0x1e9   :  { %6204 = vmatprep.subr.bf16.mxu1 %v9704_v51  ;;  %v9777_v51 = vld [vmem:[%s13600_s3 + $0x3e0] ss:$16 sps:$4 sm:$0xff]  }
 0x1eb   :  { %5918 = vmatpush1.bf16.msra.mxu0 %v9699_v53  ;;  %v9780_v53 = vld [vmem:[%s13600_s3 + $0x3e8] ss:$16 sps:$4 sm:$0xff]  }
 0x1ec   :  { %6205 = vmatpush1.bf16.msra.mxu1 %v9702_v54  ;;  %5919 = vmatprep.subr.bf16.mxu0 %v9707_v56  ;;  %v9785_v54 = vld [vmem:[%s13600_s3 + $0x404] ss:$16 sps:$4 sm:$0xff]   ;;  %v3394_v56 = vcombine.high %v12208_v55, %v12208_v55 }
 0x1ed   :  { %6206 = vmatprep.subr.bf16.mxu1 %v9710_v58  ;;  %v3435_v58 = vpack.c.bf16 %v12007_v32, %v12007_v32  ;;  %v9789_v32 = vld [vmem:[%s13600_s3 + $0x420] ss:$16 sps:$4 sm:$0xff]  }
 0x1ef   :  { %5920 = vmatpush1.bf16.msra.mxu0 %v9705_v57  ;;  %v9783_v57 = vld [vmem:[%s13600_s3 + $0x400] ss:$16 sps:$4 sm:$0xff]  }
 0x1f0   :  { %6207 = vmatpush1.bf16.msra.mxu1 %v9708_v50  ;;  %5921 = vmatprep.subr.bf16.mxu0 %v9713_v59  ;;  %v9786_v50 = vld [vmem:[%s13600_s3 + $0x408] ss:$16 sps:$4 sm:$0xff]   ;;  %v9791_v59 = vld [vmem:[%s13600_s3 + $0x424] ss:$16 sps:$4 sm:$0xff]  }
 0x1f1   :  { %6208 = vmatprep.subr.bf16.mxu1 %v9716_v61  ;;  %v3438_v61 = vpack.c.bf16 %v3394_v56, %v3394_v56  ;;  %v9866_v56 = vld [vmem:[%s13600_s3 + $0x5ac] ss:$16 sps:$4 sm:$0xff]  }
 0x1f3   :  { %5922 = vmatpush1.bf16.msra.mxu0 %v9711_v62  ;;  %v9794_v62 = vld [vmem:[%s13600_s3 + $0x42c] ss:$16 sps:$4 sm:$0xff]  }
 0x1f4   :  { %6209 = vmatpush1.bf16.msra.mxu1 %v9714_v3  ;;  %5923 = vmatprep.subr.bf16.mxu0 %v9719_v4  ;;  %v9792_v3 = vld [vmem:[%s13600_s3 + $0x428] ss:$16 sps:$4 sm:$0xff]   ;;  %v9797_v4 = vld [vmem:[%s13600_s3 + $0x444] ss:$16 sps:$4 sm:$0xff]  }
 0x1f5   :  { %6210 = vmatprep.subr.bf16.mxu1 %v9722_v5  ;;  %v9800_v5 = vld [vmem:[%s13600_s3 + $0x44c] ss:$16 sps:$4 sm:$0xff]  }
 0x1f7   :  { %5924 = vmatpush1.bf16.msra.mxu0 %v9717_v6  ;;  %v9795_v6 = vld [vmem:[%s13600_s3 + $0x440] ss:$16 sps:$4 sm:$0xff]  }
 0x1f8   :  { %6211 = vmatpush1.bf16.msra.mxu1 %v9720_v16  ;;  %5925 = vmatprep.subr.bf16.mxu0 %v9725_v23  ;;  %v9798_v16 = vld [vmem:[%s13600_s3 + $0x448] ss:$16 sps:$4 sm:$0xff]   ;;  %v9803_v23 = vld [vmem:[%s13600_s3 + $0x464] ss:$16 sps:$4 sm:$0xff]  }
 0x1f9   :  { %6212 = vmatprep.subr.bf16.mxu1 %v9728_v7  ;;  %v9806_v7 = vld [vmem:[%s13600_s3 + $0x46c] ss:$16 sps:$4 sm:$0xff]  }
 0x1fb   :  { %5926 = vmatpush1.bf16.msra.mxu0 %v9723_v8  ;;  %v9801_v8 = vld [vmem:[%s13600_s3 + $0x460] ss:$16 sps:$4 sm:$0xff]  }
 0x1fc   :  { %6213 = vmatpush1.bf16.msra.mxu1 %v9726_v10  ;;  %5927 = vmatprep.subr.bf16.mxu0 %v9731_v11  ;;  %v9804_v10 = vld [vmem:[%s13600_s3 + $0x468] ss:$16 sps:$4 sm:$0xff]   ;;  %v9809_v11 = vld [vmem:[%s13600_s3 + $0x484] ss:$16 sps:$4 sm:$0xff]  }
 0x1fd   :  { %6214 = vmatprep.subr.bf16.mxu1 %v9734_v12  ;;  %v9812_v12 = vld [vmem:[%s13600_s3 + $0x48c] ss:$16 sps:$4 sm:$0xff]  }
 0x1ff   :  { %5928 = vmatpush1.bf16.msra.mxu0 %v9729_v13  ;;  %v9807_v13 = vld [vmem:[%s13600_s3 + $0x480] ss:$16 sps:$4 sm:$0xff]  }
 0x200   :  { %6215 = vmatpush1.bf16.msra.mxu1 %v9732_v14  ;;  %5929 = vmatprep.subr.bf16.mxu0 %v9737_v15  ;;  %v9810_v14 = vld [vmem:[%s13600_s3 + $0x488] ss:$16 sps:$4 sm:$0xff]   ;;  %v9815_v15 = vld [vmem:[%s13600_s3 + $0x4a4] ss:$16 sps:$4 sm:$0xff]  }
 0x201   :  { %6216 = vmatprep.subr.bf16.mxu1 %v9740_v17  ;;  %v9818_v17 = vld [vmem:[%s13600_s3 + $0x4ac] ss:$16 sps:$4 sm:$0xff]  }
 0x203   :  { %5930 = vmatpush1.bf16.msra.mxu0 %v9735_v18  ;;  %v9813_v18 = vld [vmem:[%s13600_s3 + $0x4a0] ss:$16 sps:$4 sm:$0xff]  }
 0x204   :  { %6217 = vmatpush1.bf16.msra.mxu1 %v9738_v19  ;;  %5931 = vmatprep.subr.bf16.mxu0 %v9743_v21  ;;  %v9816_v19 = vld [vmem:[%s13600_s3 + $0x4a8] ss:$16 sps:$4 sm:$0xff]   ;;  %v9821_v21 = vld [vmem:[%s13600_s3 + $0x4c4] ss:$16 sps:$4 sm:$0xff]  }
 0x205   :  { %6218 = vmatprep.subr.bf16.mxu1 %v9746_v22  ;;  %v9824_v22 = vld [vmem:[%s13600_s3 + $0x4cc] ss:$16 sps:$4 sm:$0xff]  }
 0x207   :  { %5932 = vmatpush1.bf16.msra.mxu0 %v9741_v24  ;;  %v9819_v24 = vld [vmem:[%s13600_s3 + $0x4c0] ss:$16 sps:$4 sm:$0xff]  }
 0x208   :  { %6219 = vmatpush1.bf16.msra.mxu1 %v9744_v25  ;;  %5933 = vmatprep.subr.bf16.mxu0 %v9749_v26  ;;  %v9822_v25 = vld [vmem:[%s13600_s3 + $0x4c8] ss:$16 sps:$4 sm:$0xff]   ;;  %v9827_v26 = vld [vmem:[%s13600_s3 + $0x4e4] ss:$16 sps:$4 sm:$0xff]  }
 0x209   :  { %6220 = vmatprep.subr.bf16.mxu1 %v9752_v9  ;;  %v9830_v9 = vld [vmem:[%s13600_s3 + $0x4ec] ss:$16 sps:$4 sm:$0xff]  }
 0x20b   :  { %5934 = vmatpush1.bf16.msra.mxu0 %v9747_v27  ;;  %v9825_v27 = vld [vmem:[%s13600_s3 + $0x4e0] ss:$16 sps:$4 sm:$0xff]  }
 0x20c   :  { %6221 = vmatpush1.bf16.msra.mxu1 %v9750_v28  ;;  %5935 = vmatprep.subr.bf16.mxu0 %v9755_v44  ;;  %v9828_v28 = vld [vmem:[%s13600_s3 + $0x4e8] ss:$16 sps:$4 sm:$0xff]   ;;  %v9833_v44 = vld [vmem:[%s13600_s3 + $0x504] ss:$16 sps:$4 sm:$0xff]  }
 0x20d   :  { %6222 = vmatprep.subr.bf16.mxu1 %v9758_v29  ;;  %v9836_v29 = vld [vmem:[%s13600_s3 + $0x50c] ss:$16 sps:$4 sm:$0xff]  }
 0x20f   :  { %5936 = vmatpush1.bf16.msra.mxu0 %v9753_v30  ;;  %v9831_v30 = vld [vmem:[%s13600_s3 + $0x500] ss:$16 sps:$4 sm:$0xff]  }
 0x210   :  { %6223 = vmatpush1.bf16.msra.mxu1 %v9756_v31  ;;  %5937 = vmatprep.subr.bf16.mxu0 %v9761_v33  ;;  %v9834_v31 = vld [vmem:[%s13600_s3 + $0x508] ss:$16 sps:$4 sm:$0xff]   ;;  %v9839_v33 = vld [vmem:[%s13600_s3 + $0x524] ss:$16 sps:$4 sm:$0xff]  }
 0x211   :  { %6224 = vmatprep.subr.bf16.mxu1 %v9764_v34  ;;  %v9842_v34 = vld [vmem:[%s13600_s3 + $0x52c] ss:$16 sps:$4 sm:$0xff]  }
 0x213   :  { %5938 = vmatpush1.bf16.msra.mxu0 %v9759_v35  ;;  %v9837_v35 = vld [vmem:[%s13600_s3 + $0x520] ss:$16 sps:$4 sm:$0xff]  }
 0x214   :  { %6225 = vmatpush1.bf16.msra.mxu1 %v9762_v60  ;;  %5939 = vmatprep.subr.bf16.mxu0 %v9767_v20  ;;  %v9840_v60 = vld [vmem:[%s13600_s3 + $0x528] ss:$16 sps:$4 sm:$0xff]   ;;  %v9845_v20 = vld [vmem:[%s13600_s3 + $0x544] ss:$16 sps:$4 sm:$0xff]  }
 0x215   :  { %6226 = vmatprep.subr.bf16.mxu1 %v9770_v37  ;;  %v9848_v37 = vld [vmem:[%s13600_s3 + $0x54c] ss:$16 sps:$4 sm:$0xff]  }
 0x217   :  { %5940 = vmatpush1.bf16.msra.mxu0 %v9765_v38  ;;  %v9843_v38 = vld [vmem:[%s13600_s3 + $0x540] ss:$16 sps:$4 sm:$0xff]  }
 0x218   :  { %6227 = vmatpush1.bf16.msra.mxu1 %v9768_v40  ;;  %5941 = vmatprep.subr.bf16.mxu0 %v9773_v41  ;;  %v9846_v40 = vld [vmem:[%s13600_s3 + $0x548] ss:$16 sps:$4 sm:$0xff]   ;;  %v9851_v41 = vld [vmem:[%s13600_s3 + $0x564] ss:$16 sps:$4 sm:$0xff]  }
 0x219   :  { %6228 = vmatprep.subr.bf16.mxu1 %v9776_v42  ;;  %v9854_v42 = vld [vmem:[%s13600_s3 + $0x56c] ss:$16 sps:$4 sm:$0xff]  }
 0x21b   :  { %5942 = vmatpush1.bf16.msra.mxu0 %v9771_v45  ;;  %v9849_v45 = vld [vmem:[%s13600_s3 + $0x560] ss:$16 sps:$4 sm:$0xff]  }
 0x21c   :  { %6229 = vmatpush1.bf16.msra.mxu1 %v9774_v46  ;;  %5943 = vmatprep.subr.bf16.mxu0 %v9779_v47  ;;  %v9852_v46 = vld [vmem:[%s13600_s3 + $0x568] ss:$16 sps:$4 sm:$0xff]   ;;  %v9857_v47 = vld [vmem:[%s13600_s3 + $0x584] ss:$16 sps:$4 sm:$0xff]  }
 0x21d   :  { %6230 = vmatprep.subr.bf16.mxu1 %v9782_v48  ;;  %v9860_v48 = vld [vmem:[%s13600_s3 + $0x58c] ss:$16 sps:$4 sm:$0xff]  }
 0x21f   :  { %5944 = vmatpush1.bf16.msra.mxu0 %v9777_v51  ;;  %v9855_v51 = vld [vmem:[%s13600_s3 + $0x580] ss:$16 sps:$4 sm:$0xff]  }
 0x220   :  { %6231 = vmatpush1.bf16.msra.mxu1 %v9780_v53  ;;  %5954 = vmatprep.subr.bf16.mxu0 %v9785_v54  ;;  %v12376_v53 = vld [vmem:[%s13601_s2 + $0x8] sm:$0x1f] }
 0x221   :  { %6241 = vmatprep.subr.bf16.mxu1 %v9788_v39  ;;  %v9858_v54 = vld [vmem:[%s13600_s3 + $0x588] ss:$16 sps:$4 sm:$0xff]   ;;  %v9863_v39 = vld [vmem:[%s13600_s3 + $0x5a4] ss:$16 sps:$4 sm:$0xff]  }
 0x222   :  { %5946 = vmatmul.mubr.bf16.vlgmr.msra.gmra.mrb[16].mxu0 %v3435_v58 }
 0x223   :  { %6233 = vmatmul.mubr.bf16.vlgmr.msra.gmra.mrb[16].mxu1 %v3435_v58  ;;  %5955 = vmatpush1.bf16.msra.mxu0 %v9783_v57  ;;  %v547_v57 = vrot.slane %v12376_v53, %v11541_v63  ;;  %v555_v58 = vrot.slane %v12376_v53, %v11544_v0 }
 0x224   :  { %5986 = vmatprep.mubr.bf16.mxu0 %v3438_v61  ;;  %6242 = vmatpush1.bf16.msra.mxu1 %v9786_v50  ;;  %v551_v50 = vrot.slane %v12376_v53, %v11547_v1 }
 0x225   :  { %6273 = vmatprep.mubr.bf16.mxu1 %v3438_v61  ;;  %5956 = vmatprep.subr.bf16.mxu0 %v9791_v59  ;;  %v559_v59 = vrot.slane %v12376_v53, %v11550_v2  ;;  %v9861_v61 = vld [vmem:[%s13600_s3 + $0x5a0] ss:$16 sps:$4 sm:$0xff]  }
 0x226   :  { %6243 = vmatprep.subr.bf16.mxu1 %v9794_v62  ;;  %v9864_v62 = vld [vmem:[%s13600_s3 + $0x5a8] ss:$16 sps:$4 sm:$0xff]  }
 0x227   :  { %5957 = vmatpush1.bf16.msra.mxu0 %v9789_v32  ;;  %v9869_v32 = vld [vmem:[%s13600_s3 + $0x5c4] ss:$16 sps:$4 sm:$0xff]  }
 0x228   :  { %6244 = vmatpush1.bf16.msra.mxu1 %v9792_v3  ;;  %5958 = vmatprep.subr.bf16.mxu0 %v9797_v4 }
 0x229   :  { %6245 = vmatprep.subr.bf16.mxu1 %v9800_v5  ;;  %v9872_v5 = vld [vmem:[%s13600_s3 + $0x5cc] ss:$16 sps:$4 sm:$0xff]  }
 0x22b   :  { %5959 = vmatpush1.bf16.msra.mxu0 %v9795_v6 }
 0x22c   :  { %6246 = vmatpush1.bf16.msra.mxu1 %v9798_v16  ;;  %5960 = vmatprep.subr.bf16.mxu0 %v9803_v23 }
 0x22d   :  { %6247 = vmatprep.subr.bf16.mxu1 %v9806_v7 }
 0x22f   :  { %5961 = vmatpush1.bf16.msra.mxu0 %v9801_v8  ;;  %v10417_v8 = vcombine.low %v12017_v36, %v12017_v36  ;;  %v9875_v36 = vld [vmem:[%s13600_s3 + $0x5e4] ss:$16 sps:$4 sm:$0xff]  }
 0x230   :  { %6248 = vmatpush1.bf16.msra.mxu1 %v9804_v10  ;;  %5962 = vmatprep.subr.bf16.mxu0 %v9809_v11 }
 0x231   :  { %6249 = vmatprep.subr.bf16.mxu1 %v9812_v12 }
 0x233   :  { %5963 = vmatpush1.bf16.msra.mxu0 %v9807_v13 }
 0x234   :  { %6250 = vmatpush1.bf16.msra.mxu1 %v9810_v14  ;;  %5964 = vmatprep.subr.bf16.mxu0 %v9815_v15  ;;  %v9867_v14 = vld [vmem:[%s13600_s3 + $0x5c0] ss:$16 sps:$4 sm:$0xff]   ;;  %v9870_v15 = vld [vmem:[%s13600_s3 + $0x5c8] ss:$16 sps:$4 sm:$0xff]  }
 0x235   :  { %6251 = vmatprep.subr.bf16.mxu1 %v9818_v17 }
 0x237   :  { %5965 = vmatpush1.bf16.msra.mxu0 %v9813_v18 }
 0x238   :  { %6252 = vmatpush1.bf16.msra.mxu1 %v9816_v19  ;;  %5966 = vmatprep.subr.bf16.mxu0 %v9821_v21 }
 0x239   :  { %6253 = vmatprep.subr.bf16.mxu1 %v9824_v22 }
 0x23b   :  { %5967 = vmatpush1.bf16.msra.mxu0 %v9819_v24 }
 0x23c   :  { %6254 = vmatpush1.bf16.msra.mxu1 %v9822_v25  ;;  %5968 = vmatprep.subr.bf16.mxu0 %v9827_v26  ;;  %v9878_v25 = vld [vmem:[%s13600_s3 + $0x5ec] ss:$16 sps:$4 sm:$0xff]   ;;  %v12422_v26 = vrot.slane %v10417_v8, %v10606_v49 }
 0x23d   :  { %6255 = vmatprep.subr.bf16.mxu1 %v9830_v9 }
 0x23f   :  { %5969 = vmatpush1.bf16.msra.mxu0 %v9825_v27 }
 0x240   :  { %6256 = vmatpush1.bf16.msra.mxu1 %v9828_v28  ;;  %5970 = vmatprep.subr.bf16.mxu0 %v9833_v44  ;;  %v9873_v28 = vld [vmem:[%s13600_s3 + $0x5e0] ss:$16 sps:$4 sm:$0xff]   ;;  %v9876_v44 = vld [vmem:[%s13600_s3 + $0x5e8] ss:$16 sps:$4 sm:$0xff]  }
 0x241   :  { %6257 = vmatprep.subr.bf16.mxu1 %v9836_v29  ;;  %v9881_v29 = vld [vmem:[%s13600_s3 + $0x604] ss:$16 sps:$4 sm:$0xff]  }
 0x243   :  { %5971 = vmatpush1.bf16.msra.mxu0 %v9831_v30 }
 0x244   :  { %6258 = vmatpush1.bf16.msra.mxu1 %v9834_v31  ;;  %5972 = vmatprep.subr.bf16.mxu0 %v9839_v33  ;;  %v9884_v33 = vld [vmem:[%s13600_s3 + $0x60c] ss:$16 sps:$4 sm:$0xff]  }
 0x245   :  { %6259 = vmatprep.subr.bf16.mxu1 %v9842_v34  ;;  %v3395_v34 = vcombine.high %v12422_v26, %v12422_v26 }
 0x247   :  { %5973 = vmatpush1.bf16.msra.mxu0 %v9837_v35 }
 0x248   :  { %6260 = vmatpush1.bf16.msra.mxu1 %v9840_v60  ;;  %5974 = vmatprep.subr.bf16.mxu0 %v9845_v20  ;;  %v9879_v60 = vld [vmem:[%s13600_s3 + $0x600] ss:$16 sps:$4 sm:$0xff]   ;;  %v3437_v20 = vpack.c.bf16 %v12208_v55, %v12208_v55 }
 0x249   :  { %6261 = vmatprep.subr.bf16.mxu1 %v9848_v37  ;;  %v9882_v37 = vld [vmem:[%s13600_s3 + $0x608] ss:$16 sps:$4 sm:$0xff]   ;;  %v9885_v55 = vld [vmem:[%s13600_s3 + $0x620] ss:$16 sps:$4 sm:$0xff]  }
 0x24b   :  { %5975 = vmatpush1.bf16.msra.mxu0 %v9843_v38  ;;  %v9887_v38 = vld [vmem:[%s13600_s3 + $0x624] ss:$16 sps:$4 sm:$0xff]  }
 0x24c   :  { %6262 = vmatpush1.bf16.msra.mxu1 %v9846_v40  ;;  %5976 = vmatprep.subr.bf16.mxu0 %v9851_v41  ;;  %v3440_v40 = vpack.c.bf16 %v3395_v34, %v3395_v34  ;;  %v9890_v41 = vld [vmem:[%s13600_s3 + $0x62c] ss:$16 sps:$4 sm:$0xff]   ;;  %v9941_v34 = vld [vmem:[%s13600_s3 + $0x744] ss:$16 sps:$4 sm:$0xff]  }
 0x24d   :  { %6263 = vmatprep.subr.bf16.mxu1 %v9854_v42  ;;  %v9888_v42 = vld [vmem:[%s13600_s3 + $0x628] ss:$16 sps:$4 sm:$0xff]  }
 0x24f   :  { %5977 = vmatpush1.bf16.msra.mxu0 %v9849_v45  ;;  %v9893_v45 = vld [vmem:[%s13600_s3 + $0x644] ss:$16 sps:$4 sm:$0xff]  }
 0x250   :  { %6264 = vmatpush1.bf16.msra.mxu1 %v9852_v46  ;;  %5978 = vmatprep.subr.bf16.mxu0 %v9857_v47  ;;  %v9896_v46 = vld [vmem:[%s13600_s3 + $0x64c] ss:$16 sps:$4 sm:$0xff]   ;;  %v9891_v47 = vld [vmem:[%s13600_s3 + $0x640] ss:$16 sps:$4 sm:$0xff]  }
 0x251   :  { %6265 = vmatprep.subr.bf16.mxu1 %v9860_v48  ;;  %v9894_v48 = vld [vmem:[%s13600_s3 + $0x648] ss:$16 sps:$4 sm:$0xff]  }
 0x253   :  { %5979 = vmatpush1.bf16.msra.mxu0 %v9855_v51  ;;  %v9899_v51 = vld [vmem:[%s13600_s3 + $0x664] ss:$16 sps:$4 sm:$0xff]  }
 0x254   :  { %6266 = vmatpush1.bf16.msra.mxu1 %v9858_v54  ;;  %5980 = vmatprep.subr.bf16.mxu0 %v9863_v39  ;;  %v9902_v54 = vld [vmem:[%s13600_s3 + $0x66c] ss:$16 sps:$4 sm:$0xff]   ;;  %v9897_v39 = vld [vmem:[%s13600_s3 + $0x660] ss:$16 sps:$4 sm:$0xff]  }
 0x255   :  { %v3092_v3 = vpop.f32.mrb[8].mxu0  ;;  %v3174_v4 = vpop.f32.mrb[8].mxu1  ;;  %6267 = vmatprep.subr.bf16.mxu1 %v9866_v56  ;;  %v9900_v56 = vld [vmem:[%s13600_s3 + $0x668] ss:$16 sps:$4 sm:$0xff]  }
 0x256   :  { %v8888_v6 = vadd.f32 %v3092_v3, %v547_v57  ;;  %v8890_v16 = vadd.f32 %v3174_v4, %v555_v58  ;;  %v3094_v23 = vpop.f32.mrb[9].mxu0  ;;  %v3176_v7 = vpop.f32.mrb[9].mxu1  ;;  %v9905_v57 = vld [vmem:[%s13600_s3 + $0x684] ss:$16 sps:$4 sm:$0xff]   ;;  %v9908_v58 = vld [vmem:[%s13600_s3 + $0x68c] ss:$16 sps:$4 sm:$0xff]  }
 0x257   :  { %v8889_v10 = vadd.f32 %v3094_v23, %v551_v50  ;;  %v8891_v11 = vadd.f32 %v3176_v7, %v559_v59  ;;  %v3096_v12 = vpop.f32.mrb[10].mxu0  ;;  %v3178_v13 = vpop.f32.mrb[10].mxu1  ;;  %5981 = vmatpush1.bf16.msra.mxu0 %v9861_v61  ;;  %v9903_v50 = vld [vmem:[%s13600_s3 + $0x680] ss:$16 sps:$4 sm:$0xff]   ;;  %v9906_v59 = vld [vmem:[%s13600_s3 + $0x688] ss:$16 sps:$4 sm:$0xff]  }
 0x258   :  { %v3269_v17 = vmax.f32 %v8888_v6, 0.0  ;;  %v3271_v18 = vmax.f32 %v8890_v16, 0.0  ;;  %6268 = vmatpush1.bf16.msra.mxu1 %v9864_v62  ;;  %v3097_v19 = vpop.f32.mrb[11].mxu0  ;;  %v3179_v21 = vpop.f32.mrb[11].mxu1  ;;  %5982 = vmatprep.subr.bf16.mxu0 %v9869_v32  ;;  %v9911_v61 = vld [vmem:[%s13600_s3 + $0x6a4] ss:$16 sps:$4 sm:$0xff]   ;;  %v563_v16 = vrot.slane %v12376_v53, %v530_v52 }
 0x259   :  { %v3270_v22 = vmax.f32 %v8889_v10, 0.0  ;;  %v3272_v24 = vmax.f32 %v8891_v11, 0.0  ;;  %6269 = vmatprep.subr.bf16.mxu1 %v9872_v5  ;;  %v9914_v62 = vld [vmem:[%s13600_s3 + $0x6ac] ss:$16 sps:$4 sm:$0xff]   ;;  %v9909_v32 = vld [vmem:[%s13600_s3 + $0x6a0] ss:$16 sps:$4 sm:$0xff]  }
 0x25a   :  { %v9912_v3 = vld [vmem:[%s13600_s3 + $0x6a8] ss:$16 sps:$4 sm:$0xff]   ;;  %v9917_v4 = vld [vmem:[%s13600_s3 + $0x6c4] ss:$16 sps:$4 sm:$0xff]   ;;  %v9920_v23 = vld [vmem:[%s13600_s3 + $0x6cc] ss:$16 sps:$4 sm:$0xff]  }
 0x25b   :  { %v3321_v9 = vcombine.low %v3269_v17, %v3270_v22  ;;  %v3322_v27 = vcombine.low %v3271_v18, %v3272_v24  ;;  %5983 = vmatpush1.bf16.msra.mxu0 %v9867_v14  ;;  %v9915_v14 = vld [vmem:[%s13600_s3 + $0x6c0] ss:$16 sps:$4 sm:$0xff]   ;;  %v9918_v52 = vld [vmem:[%s13600_s3 + $0x6c8] ss:$16 sps:$4 sm:$0xff]   ;;  %v9923_v53 = vld [vmem:[%s13600_s3 + $0x6e4] ss:$16 sps:$4 sm:$0xff]  }
 0x25c   :  { %6270 = vmatpush1.bf16.msra.mxu1 %v9870_v15  ;;  %5984 = vmatprep.subr.bf16.mxu0 %v9875_v36  ;;  %v9926_v18 = vld [vmem:[%s13600_s3 + $0x6ec] ss:$16 sps:$4 sm:$0xff]   ;;  %v9921_v21 = vld [vmem:[%s13600_s3 + $0x6e0] ss:$16 sps:$4 sm:$0xff]   ;;  %v9924_v36 = vld [vmem:[%s13600_s3 + $0x6e8] ss:$16 sps:$4 sm:$0xff]  }
 0x25d   :  { %v3329_v30 = vrot.slane %v3321_v9, %v10606_v49  ;;  %v12435_v31 = vrot.slane %v3322_v27, %v10606_v49  ;;  %6271 = vmatprep.subr.bf16.mxu1 %v9878_v25  ;;  %v9929_v22 = vld [vmem:[%s13600_s3 + $0x704] ss:$16 sps:$4 sm:$0xff]   ;;  %v9932_v25 = vld [vmem:[%s13600_s3 + $0x70c] ss:$16 sps:$4 sm:$0xff]   ;;  %v9927_v27 = vld [vmem:[%s13600_s3 + $0x700] ss:$16 sps:$4 sm:$0xff]  }
 0x25f   :  { %v12443_v35 = vcombine.low %v3329_v30, %v12435_v31  ;;  %5985 = vmatpush1.bf16.msra.mxu0 %v9873_v28  ;;  %v9930_v28 = vld [vmem:[%s13600_s3 + $0x708] ss:$16 sps:$4 sm:$0xff]   ;;  %v9933_v30 = vld [vmem:[%s13600_s3 + $0x720] ss:$16 sps:$4 sm:$0xff]  }
 0x260   :  { %6272 = vmatpush1.bf16.msra.mxu1 %v9876_v44  ;;  %5995 = vmatprep.subr.bf16.mxu0 %v9881_v29  ;;  %v9935_v44 = vld [vmem:[%s13600_s3 + $0x724] ss:$16 sps:$4 sm:$0xff]   ;;  %v9938_v29 = vld [vmem:[%s13600_s3 + $0x72c] ss:$16 sps:$4 sm:$0xff]  }
 0x261   :  { %6282 = vmatprep.subr.bf16.mxu1 %v9884_v33  ;;  %v9936_v33 = vld [vmem:[%s13600_s3 + $0x728] ss:$16 sps:$4 sm:$0xff]  }
 0x262   :  { %5987 = vmatmul.mubr.bf16.vlgmr.msra.gmra.mrb[16].mxu0 %v3437_v20 }
 0x263   :  { %6274 = vmatmul.mubr.bf16.vlgmr.msra.gmra.mrb[16].mxu1 %v3437_v20  ;;  %5996 = vmatpush1.bf16.msra.mxu0 %v9879_v60  ;;  %v9944_v60 = vld [vmem:[%s13600_s3 + $0x74c] ss:$16 sps:$4 sm:$0xff]   ;;  %v9939_v20 = vld [vmem:[%s13600_s3 + $0x740] ss:$16 sps:$4 sm:$0xff]  }
 0x264   :  { %6027 = vmatprep.mubr.bf16.mxu0 %v3440_v40  ;;  %6283 = vmatpush1.bf16.msra.mxu1 %v9882_v37  ;;  %v9942_v37 = vld [vmem:[%s13600_s3 + $0x748] ss:$16 sps:$4 sm:$0xff]  }
 0x265   :  { %6314 = vmatprep.mubr.bf16.mxu1 %v3440_v40  ;;  %5997 = vmatprep.subr.bf16.mxu0 %v9887_v38  ;;  %v9947_v38 = vld [vmem:[%s13600_s3 + $0x764] ss:$16 sps:$4 sm:$0xff]   ;;  %v9950_v40 = vld [vmem:[%s13600_s3 + $0x76c] ss:$16 sps:$4 sm:$0xff]  }
 0x266   :  { %6284 = vmatprep.subr.bf16.mxu1 %v9890_v41  ;;  %v9945_v41 = vld [vmem:[%s13600_s3 + $0x760] ss:$16 sps:$4 sm:$0xff]  }
 0x267   :  { %5998 = vmatpush1.bf16.msra.mxu0 %v9885_v55  ;;  %v9948_v55 = vld [vmem:[%s13600_s3 + $0x768] ss:$16 sps:$4 sm:$0xff]  }
 0x268   :  { %6285 = vmatpush1.bf16.msra.mxu1 %v9888_v42  ;;  %5999 = vmatprep.subr.bf16.mxu0 %v9893_v45  ;;  %v9953_v42 = vld [vmem:[%s13600_s3 + $0x784] ss:$16 sps:$4 sm:$0xff]   ;;  %v9956_v45 = vld [vmem:[%s13600_s3 + $0x78c] ss:$16 sps:$4 sm:$0xff]  }
 0x269   :  { %6286 = vmatprep.subr.bf16.mxu1 %v9896_v46  ;;  %v9951_v46 = vld [vmem:[%s13600_s3 + $0x780] ss:$16 sps:$4 sm:$0xff]  }
 0x26b   :  { %6000 = vmatpush1.bf16.msra.mxu0 %v9891_v47  ;;  %v9954_v47 = vld [vmem:[%s13600_s3 + $0x788] ss:$16 sps:$4 sm:$0xff]  }
 0x26c   :  { %6287 = vmatpush1.bf16.msra.mxu1 %v9894_v48  ;;  %6001 = vmatprep.subr.bf16.mxu0 %v9899_v51  ;;  %v9959_v48 = vld [vmem:[%s13600_s3 + $0x7a4] ss:$16 sps:$4 sm:$0xff]   ;;  %v9962_v51 = vld [vmem:[%s13600_s3 + $0x7ac] ss:$16 sps:$4 sm:$0xff]  }
 0x26d   :  { %6288 = vmatprep.subr.bf16.mxu1 %v9902_v54  ;;  %v9957_v54 = vld [vmem:[%s13600_s3 + $0x7a0] ss:$16 sps:$4 sm:$0xff]  }
 0x26f   :  { %6002 = vmatpush1.bf16.msra.mxu0 %v9897_v39  ;;  %v9960_v39 = vld [vmem:[%s13600_s3 + $0x7a8] ss:$16 sps:$4 sm:$0xff]  }
 0x270   :  { %6289 = vmatpush1.bf16.msra.mxu1 %v9900_v56  ;;  %6003 = vmatprep.subr.bf16.mxu0 %v9905_v57  ;;  %v9965_v56 = vld [vmem:[%s13600_s3 + $0x7c4] ss:$16 sps:$4 sm:$0xff]   ;;  %v9968_v57 = vld [vmem:[%s13600_s3 + $0x7cc] ss:$16 sps:$4 sm:$0xff]  }
 0x271   :  { %6290 = vmatprep.subr.bf16.mxu1 %v9908_v58  ;;  %v9963_v58 = vld [vmem:[%s13600_s3 + $0x7c0] ss:$16 sps:$4 sm:$0xff]  }
 0x273   :  { %6004 = vmatpush1.bf16.msra.mxu0 %v9903_v50  ;;  %v9966_v50 = vld [vmem:[%s13600_s3 + $0x7c8] ss:$16 sps:$4 sm:$0xff]  }
 0x274   :  { %6291 = vmatpush1.bf16.msra.mxu1 %v9906_v59  ;;  %6005 = vmatprep.subr.bf16.mxu0 %v9911_v61  ;;  %v9971_v59 = vld [vmem:[%s13600_s3 + $0x7e4] ss:$16 sps:$4 sm:$0xff]   ;;  %v9974_v61 = vld [vmem:[%s13600_s3 + $0x7ec] ss:$16 sps:$4 sm:$0xff]  }
 0x275   :  { %v8808_v5 = vpop.f32.mrb[12].mxu0  ;;  %v8830_v6 = vpop.f32.mrb[12].mxu1  ;;  %6292 = vmatprep.subr.bf16.mxu1 %v9914_v62  ;;  %v12633_v62 = vrot.slane %v12443_v35, %v10606_v49  ;;  %v9980_v35 = vld [vmem:[%s13600_s3 + $0x80c] ss:$16 sps:$4 sm:$0xff]  }
 0x276   :  { %v8809_v7 = vpop.f32.mrb[13].mxu0  ;;  %v8831_v8 = vpop.f32.mrb[13].mxu1 }
 0x277   :  { %v8810_v10 = vadd.f32 %v8809_v7, %v8808_v5  ;;  %v8832_v11 = vadd.f32 %v8831_v8, %v8830_v6  ;;  %v8811_v12 = vpop.f32.mrb[14].mxu0  ;;  %v8833_v13 = vpop.f32.mrb[14].mxu1  ;;  %6006 = vmatpush1.bf16.msra.mxu0 %v9909_v32  ;;  %v9969_v32 = vld [vmem:[%s13600_s3 + $0x7e0] ss:$16 sps:$4 sm:$0xff]   ;;  %v3411_v5 = vcombine.high %v12633_v62, %v12633_v62  ;;  %v9983_v7 = vld [vmem:[%s13600_s3 + $0x824] ss:$16 sps:$4 sm:$0xff]  }
 0x278   :  { %6293 = vmatpush1.bf16.msra.mxu1 %v9912_v3  ;;  %v8812_v43 = vpop.f32.mrb[15].mxu0  ;;  %v8834_v15 = vpop.f32.mrb[15].mxu1  ;;  %6007 = vmatprep.subr.bf16.mxu0 %v9917_v4  ;;  %v9972_v3 = vld [vmem:[%s13600_s3 + $0x7e8] ss:$16 sps:$4 sm:$0xff]   ;;  %v9977_v4 = vld [vmem:[%s13600_s3 + $0x804] ss:$16 sps:$4 sm:$0xff]  }
 0x279   :  { %v3216_v17 = vadd.f32 %v8810_v10, %v563_v16  ;;  %6294 = vmatprep.subr.bf16.mxu1 %v9920_v23  ;;  %v9975_v6 = vld [vmem:[%s13600_s3 + $0x800] ss:$16 sps:$4 sm:$0xff]   ;;  %v3439_v16 = vpack.c.bf16 %v12422_v26, %v12422_v26  ;;  %v9978_v23 = vld [vmem:[%s13600_s3 + $0x808] ss:$16 sps:$4 sm:$0xff]   ;;  %v3442_v8 = vpack.c.bf16 %v3411_v5, %v3411_v5  ;;  %v9986_v10 = vld [vmem:[%s13600_s3 + $0x82c] ss:$16 sps:$4 sm:$0xff]  }
 0x27a   :  { %v9981_v26 = vld [vmem:[%s13600_s3 + $0x820] ss:$16 sps:$4 sm:$0xff]   ;;  %v9989_v12 = vld [vmem:[%s13600_s3 + $0x844] ss:$16 sps:$4 sm:$0xff]   ;;  %v9992_v13 = vld [vmem:[%s13600_s3 + $0x84c] ss:$16 sps:$4 sm:$0xff]  }
 0x27b   :  { %v3256_v19 = vadd.f32 %v8832_v11, %v3216_v17  ;;  %6008 = vmatpush1.bf16.msra.mxu0 %v9915_v14  ;;  %v9984_v11 = vld [vmem:[%s13600_s3 + $0x828] ss:$16 sps:$4 sm:$0xff]   ;;  %v9987_v14 = vld [vmem:[%s13600_s3 + $0x840] ss:$16 sps:$4 sm:$0xff]   ;;  %v9995_v15 = vld [vmem:[%s13600_s3 + $0x864] ss:$16 sps:$4 sm:$0xff]  }
 0x27c   :  { %6295 = vmatpush1.bf16.msra.mxu1 %v9918_v52  ;;  %6009 = vmatprep.subr.bf16.mxu0 %v9923_v53  ;;  %v9990_v43 = vld [vmem:[%s13600_s3 + $0x848] ss:$16 sps:$4 sm:$0xff]   ;;  %v9998_v52 = vld [vmem:[%s13600_s3 + $0x86c] ss:$16 sps:$4 sm:$0xff]   ;;  %v9993_v53 = vld [vmem:[%s13600_s3 + $0x860] ss:$16 sps:$4 sm:$0xff]  }
 0x27d   :  { %v3273_v24 = vmax.f32 %v3256_v19, 0.0  ;;  %6296 = vmatprep.subr.bf16.mxu1 %v9926_v18  ;;  %v9996_v17 = vld [vmem:[%s13600_s3 + $0x868] ss:$16 sps:$4 sm:$0xff]   ;;  %v10001_v18 = vld [vmem:[%s13600_s3 + $0x884] ss:$16 sps:$4 sm:$0xff]  }
 0x27e   :  { %v10004_v19 = vld [vmem:[%s13600_s3 + $0x88c] ss:$16 sps:$4 sm:$0xff]   ;;  %v10061_v5 = vld [vmem:[%s13600_s3 + $0x9c4] ss:$16 sps:$4 sm:$0xff]  }
 0x27f   :  { %v3344_v9 = vrot.slane %v3273_v24, %v10606_v49  ;;  %6010 = vmatpush1.bf16.msra.mxu0 %v9921_v21  ;;  %v9999_v21 = vld [vmem:[%s13600_s3 + $0x880] ss:$16 sps:$4 sm:$0xff]   ;;  %v10010_v24 = vld [vmem:[%s13600_s3 + $0x8ac] ss:$16 sps:$4 sm:$0xff]  }
 0x280   :  { %6297 = vmatpush1.bf16.msra.mxu1 %v9924_v36  ;;  %6011 = vmatprep.subr.bf16.mxu0 %v9929_v22  ;;  %v10002_v36 = vld [vmem:[%s13600_s3 + $0x888] ss:$16 sps:$4 sm:$0xff]   ;;  %v10007_v22 = vld [vmem:[%s13600_s3 + $0x8a4] ss:$16 sps:$4 sm:$0xff]  }
 0x281   :  { %3353 = vst.msk [vmem:[#allocation2 + $0x18] sm:$0x3] %vm3352_vm0, %v3344_v9  ;;  %6298 = vmatprep.subr.bf16.mxu1 %v9932_v25  ;;  %v10005_v25 = vld [vmem:[%s13600_s3 + $0x8a0] ss:$16 sps:$4 sm:$0xff]   ;;  %v10008_v9 = vld [vmem:[%s13600_s3 + $0x8a8] ss:$16 sps:$4 sm:$0xff]  }
 0x283   :  { %6012 = vmatpush1.bf16.msra.mxu0 %v9927_v27  ;;  %v10013_v27 = vld [vmem:[%s13600_s3 + $0x8c4] ss:$16 sps:$4 sm:$0xff]  }
 0x284   :  { %6299 = vmatpush1.bf16.msra.mxu1 %v9930_v28  ;;  %6013 = vmatprep.subr.bf16.mxu0 %v9935_v44  ;;  %v10016_v28 = vld [vmem:[%s13600_s3 + $0x8cc] ss:$16 sps:$4 sm:$0xff]   ;;  %v10011_v44 = vld [vmem:[%s13600_s3 + $0x8c0] ss:$16 sps:$4 sm:$0xff]  }
 0x285   :  { %6300 = vmatprep.subr.bf16.mxu1 %v9938_v29  ;;  %v10014_v29 = vld [vmem:[%s13600_s3 + $0x8c8] ss:$16 sps:$4 sm:$0xff]  }
 0x287   :  { %6014 = vmatpush1.bf16.msra.mxu0 %v9933_v30  ;;  %v10019_v30 = vld [vmem:[%s13600_s3 + $0x8e4] ss:$16 sps:$4 sm:$0xff]  }
 0x288   :  { %6301 = vmatpush1.bf16.msra.mxu1 %v9936_v33  ;;  %6015 = vmatprep.subr.bf16.mxu0 %v9941_v34  ;;  %v10022_v33 = vld [vmem:[%s13600_s3 + $0x8ec] ss:$16 sps:$4 sm:$0xff]   ;;  %v10017_v34 = vld [vmem:[%s13600_s3 + $0x8e0] ss:$16 sps:$4 sm:$0xff]  }
 0x289   :  { %6302 = vmatprep.subr.bf16.mxu1 %v9944_v60  ;;  %v10020_v60 = vld [vmem:[%s13600_s3 + $0x8e8] ss:$16 sps:$4 sm:$0xff]  }
 0x28b   :  { %6016 = vmatpush1.bf16.msra.mxu0 %v9939_v20  ;;  %v10025_v20 = vld [vmem:[%s13600_s3 + $0x904] ss:$16 sps:$4 sm:$0xff]  }
 0x28c   :  { %6303 = vmatpush1.bf16.msra.mxu1 %v9942_v37  ;;  %6017 = vmatprep.subr.bf16.mxu0 %v9947_v38  ;;  %v10028_v37 = vld [vmem:[%s13600_s3 + $0x90c] ss:$16 sps:$4 sm:$0xff]   ;;  %v10023_v38 = vld [vmem:[%s13600_s3 + $0x900] ss:$16 sps:$4 sm:$0xff]  }
 0x28d   :  { %6304 = vmatprep.subr.bf16.mxu1 %v9950_v40  ;;  %v10026_v40 = vld [vmem:[%s13600_s3 + $0x908] ss:$16 sps:$4 sm:$0xff]  }
 0x28f   :  { %6018 = vmatpush1.bf16.msra.mxu0 %v9945_v41  ;;  %v10031_v41 = vld [vmem:[%s13600_s3 + $0x924] ss:$16 sps:$4 sm:$0xff]  }
 0x290   :  { %6305 = vmatpush1.bf16.msra.mxu1 %v9948_v55  ;;  %6019 = vmatprep.subr.bf16.mxu0 %v9953_v42  ;;  %v10029_v55 = vld [vmem:[%s13600_s3 + $0x920] ss:$16 sps:$4 sm:$0xff]   ;;  %v10034_v42 = vld [vmem:[%s13600_s3 + $0x92c] ss:$16 sps:$4 sm:$0xff]  }
 0x291   :  { %6306 = vmatprep.subr.bf16.mxu1 %v9956_v45  ;;  %v10032_v45 = vld [vmem:[%s13600_s3 + $0x928] ss:$16 sps:$4 sm:$0xff]  }
 0x293   :  { %6020 = vmatpush1.bf16.msra.mxu0 %v9951_v46  ;;  %v10037_v46 = vld [vmem:[%s13600_s3 + $0x944] ss:$16 sps:$4 sm:$0xff]  }
 0x294   :  { %6307 = vmatpush1.bf16.msra.mxu1 %v9954_v47  ;;  %6021 = vmatprep.subr.bf16.mxu0 %v9959_v48  ;;  %v10035_v47 = vld [vmem:[%s13600_s3 + $0x940] ss:$16 sps:$4 sm:$0xff]   ;;  %v10040_v48 = vld [vmem:[%s13600_s3 + $0x94c] ss:$16 sps:$4 sm:$0xff]  }
 0x295   :  { %6308 = vmatprep.subr.bf16.mxu1 %v9962_v51  ;;  %v10038_v51 = vld [vmem:[%s13600_s3 + $0x948] ss:$16 sps:$4 sm:$0xff]  }
 0x297   :  { %6022 = vmatpush1.bf16.msra.mxu0 %v9957_v54  ;;  %v10043_v54 = vld [vmem:[%s13600_s3 + $0x964] ss:$16 sps:$4 sm:$0xff]  }
 0x298   :  { %6309 = vmatpush1.bf16.msra.mxu1 %v9960_v39  ;;  %6023 = vmatprep.subr.bf16.mxu0 %v9965_v56  ;;  %v10041_v39 = vld [vmem:[%s13600_s3 + $0x960] ss:$16 sps:$4 sm:$0xff]   ;;  %v10046_v56 = vld [vmem:[%s13600_s3 + $0x96c] ss:$16 sps:$4 sm:$0xff]  }
 0x299   :  { %6310 = vmatprep.subr.bf16.mxu1 %v9968_v57  ;;  %v10044_v57 = vld [vmem:[%s13600_s3 + $0x968] ss:$16 sps:$4 sm:$0xff]  }
 0x29b   :  { %6024 = vmatpush1.bf16.msra.mxu0 %v9963_v58  ;;  %v10049_v58 = vld [vmem:[%s13600_s3 + $0x984] ss:$16 sps:$4 sm:$0xff]  }
 0x29c   :  { %6311 = vmatpush1.bf16.msra.mxu1 %v9966_v50  ;;  %6025 = vmatprep.subr.bf16.mxu0 %v9971_v59  ;;  %v10047_v50 = vld [vmem:[%s13600_s3 + $0x980] ss:$16 sps:$4 sm:$0xff]   ;;  %v10052_v59 = vld [vmem:[%s13600_s3 + $0x98c] ss:$16 sps:$4 sm:$0xff]  }
 0x29d   :  { %6312 = vmatprep.subr.bf16.mxu1 %v9974_v61  ;;  %v10050_v61 = vld [vmem:[%s13600_s3 + $0x988] ss:$16 sps:$4 sm:$0xff]  }
 0x29f   :  { %6026 = vmatpush1.bf16.msra.mxu0 %v9969_v32  ;;  %v10055_v32 = vld [vmem:[%s13600_s3 + $0x9a4] ss:$16 sps:$4 sm:$0xff]  }
 0x2a0   :  { %6313 = vmatpush1.bf16.msra.mxu1 %v9972_v3  ;;  %6036 = vmatprep.subr.bf16.mxu0 %v9977_v4  ;;  %v10053_v3 = vld [vmem:[%s13600_s3 + $0x9a0] ss:$16 sps:$4 sm:$0xff]   ;;  %v10058_v4 = vld [vmem:[%s13600_s3 + $0x9ac] ss:$16 sps:$4 sm:$0xff]  }
 0x2a1   :  { %6323 = vmatprep.subr.bf16.mxu1 %v9980_v35  ;;  %v10056_v35 = vld [vmem:[%s13600_s3 + $0x9a8] ss:$16 sps:$4 sm:$0xff]  }
 0x2a2   :  { %6028 = vmatmul.mubr.bf16.vlgmr.msra.gmra.mrb[16].mxu0 %v3439_v16 }
 0x2a3   :  { %6315 = vmatmul.mubr.bf16.vlgmr.msra.gmra.mrb[16].mxu1 %v3439_v16  ;;  %6037 = vmatpush1.bf16.msra.mxu0 %v9975_v6  ;;  %v10059_v6 = vld [vmem:[%s13600_s3 + $0x9c0] ss:$16 sps:$4 sm:$0xff]   ;;  %v10064_v16 = vld [vmem:[%s13600_s3 + $0x9cc] ss:$16 sps:$4 sm:$0xff]  }
 0x2a4   :  { %6068 = vmatprep.mubr.bf16.mxu0 %v3442_v8  ;;  %6324 = vmatpush1.bf16.msra.mxu1 %v9978_v23  ;;  %v10418_v23 = vcombine.low %v12435_v31, %v12435_v31  ;;  %v10070_v31 = vld [vmem:[%s13600_s3 + $0x9ec] ss:$16 sps:$4 sm:$0xff]  }
 0x2a5   :  { %6355 = vmatprep.mubr.bf16.mxu1 %v3442_v8  ;;  %6038 = vmatprep.subr.bf16.mxu0 %v9983_v7  ;;  %v10062_v7 = vld [vmem:[%s13600_s3 + $0x9c8] ss:$16 sps:$4 sm:$0xff]   ;;  %v10067_v8 = vld [vmem:[%s13600_s3 + $0x9e4] ss:$16 sps:$4 sm:$0xff]  }
 0x2a6   :  { %6325 = vmatprep.subr.bf16.mxu1 %v9986_v10  ;;  %v10065_v10 = vld [vmem:[%s13600_s3 + $0x9e0] ss:$16 sps:$4 sm:$0xff]  }
 0x2a7   :  { %6039 = vmatpush1.bf16.msra.mxu0 %v9981_v26  ;;  %v12837_v26 = vrot.slane %v10418_v23, %v10606_v49  ;;  %v10148_v23 = vld [vmem:[%s13600_s3 + $0xb8c] ss:$16 sps:$4 sm:$0xff]  }
 0x2a8   :  { %6326 = vmatpush1.bf16.msra.mxu1 %v9984_v11  ;;  %6040 = vmatprep.subr.bf16.mxu0 %v9989_v12  ;;  %v10068_v11 = vld [vmem:[%s13600_s3 + $0x9e8] ss:$16 sps:$4 sm:$0xff]   ;;  %v10073_v12 = vld [vmem:[%s13600_s3 + $0xa04] ss:$16 sps:$4 sm:$0xff]  }
 0x2a9   :  { %6327 = vmatprep.subr.bf16.mxu1 %v9992_v13  ;;  %v10071_v13 = vld [vmem:[%s13600_s3 + $0xa00] ss:$16 sps:$4 sm:$0xff]  }
 0x2ab   :  { %6041 = vmatpush1.bf16.msra.mxu0 %v9987_v14  ;;  %v10076_v14 = vld [vmem:[%s13600_s3 + $0xa0c] ss:$16 sps:$4 sm:$0xff]  }
 0x2ac   :  { %6328 = vmatpush1.bf16.msra.mxu1 %v9990_v43  ;;  %6042 = vmatprep.subr.bf16.mxu0 %v9995_v15  ;;  %v10074_v43 = vld [vmem:[%s13600_s3 + $0xa08] ss:$16 sps:$4 sm:$0xff]   ;;  %v3412_v15 = vcombine.high %v12837_v26, %v12837_v26 }
 0x2ad   :  { %6329 = vmatprep.subr.bf16.mxu1 %v9998_v52  ;;  %v10079_v52 = vld [vmem:[%s13600_s3 + $0xa24] ss:$16 sps:$4 sm:$0xff]  }
 0x2af   :  { %6043 = vmatpush1.bf16.msra.mxu0 %v9993_v53  ;;  %v3441_v53 = vpack.c.bf16 %v12633_v62, %v12633_v62  ;;  %v10085_v62 = vld [vmem:[%s13600_s3 + $0xa44] ss:$16 sps:$4 sm:$0xff]  }
 0x2b0   :  { %6330 = vmatpush1.bf16.msra.mxu1 %v9996_v17  ;;  %6044 = vmatprep.subr.bf16.mxu0 %v10001_v18  ;;  %v10077_v17 = vld [vmem:[%s13600_s3 + $0xa20] ss:$16 sps:$4 sm:$0xff]   ;;  %v10082_v18 = vld [vmem:[%s13600_s3 + $0xa2c] ss:$16 sps:$4 sm:$0xff]  }
 0x2b1   :  { %6331 = vmatprep.subr.bf16.mxu1 %v10004_v19  ;;  %v3444_v19 = vpack.c.bf16 %v3412_v15, %v3412_v15  ;;  %v10158_v15 = vld [vmem:[%s13600_s3 + $0xbc8] ss:$16 sps:$4 sm:$0xff]  }
 0x2b3   :  { %6045 = vmatpush1.bf16.msra.mxu0 %v9999_v21  ;;  %v10080_v21 = vld [vmem:[%s13600_s3 + $0xa28] ss:$16 sps:$4 sm:$0xff]  }
 0x2b4   :  { %6332 = vmatpush1.bf16.msra.mxu1 %v10002_v36  ;;  %6046 = vmatprep.subr.bf16.mxu0 %v10007_v22  ;;  %v10088_v36 = vld [vmem:[%s13600_s3 + $0xa4c] ss:$16 sps:$4 sm:$0xff]   ;;  %v10083_v22 = vld [vmem:[%s13600_s3 + $0xa40] ss:$16 sps:$4 sm:$0xff]  }
 0x2b5   :  { %6333 = vmatprep.subr.bf16.mxu1 %v10010_v24  ;;  %v10086_v24 = vld [vmem:[%s13600_s3 + $0xa48] ss:$16 sps:$4 sm:$0xff]  }
 0x2b7   :  { %6047 = vmatpush1.bf16.msra.mxu0 %v10005_v25  ;;  %v10091_v25 = vld [vmem:[%s13600_s3 + $0xa64] ss:$16 sps:$4 sm:$0xff]  }
 0x2b8   :  { %6334 = vmatpush1.bf16.msra.mxu1 %v10008_v9  ;;  %6048 = vmatprep.subr.bf16.mxu0 %v10013_v27  ;;  %v10094_v9 = vld [vmem:[%s13600_s3 + $0xa6c] ss:$16 sps:$4 sm:$0xff]   ;;  %v10089_v27 = vld [vmem:[%s13600_s3 + $0xa60] ss:$16 sps:$4 sm:$0xff]  }
 0x2b9   :  { %6335 = vmatprep.subr.bf16.mxu1 %v10016_v28  ;;  %v10092_v28 = vld [vmem:[%s13600_s3 + $0xa68] ss:$16 sps:$4 sm:$0xff]  }
 0x2bb   :  { %6049 = vmatpush1.bf16.msra.mxu0 %v10011_v44  ;;  %v10097_v44 = vld [vmem:[%s13600_s3 + $0xa84] ss:$16 sps:$4 sm:$0xff]  }
 0x2bc   :  { %6336 = vmatpush1.bf16.msra.mxu1 %v10014_v29  ;;  %6050 = vmatprep.subr.bf16.mxu0 %v10019_v30  ;;  %v10100_v29 = vld [vmem:[%s13600_s3 + $0xa8c] ss:$16 sps:$4 sm:$0xff]   ;;  %v10095_v30 = vld [vmem:[%s13600_s3 + $0xa80] ss:$16 sps:$4 sm:$0xff]  }
 0x2bd   :  { %6337 = vmatprep.subr.bf16.mxu1 %v10022_v33  ;;  %v10098_v33 = vld [vmem:[%s13600_s3 + $0xa88] ss:$16 sps:$4 sm:$0xff]  }
 0x2bf   :  { %6051 = vmatpush1.bf16.msra.mxu0 %v10017_v34  ;;  %v10103_v34 = vld [vmem:[%s13600_s3 + $0xaa4] ss:$16 sps:$4 sm:$0xff]  }
 0x2c0   :  { %6338 = vmatpush1.bf16.msra.mxu1 %v10020_v60  ;;  %6052 = vmatprep.subr.bf16.mxu0 %v10025_v20  ;;  %v10106_v60 = vld [vmem:[%s13600_s3 + $0xaac] ss:$16 sps:$4 sm:$0xff]   ;;  %v10101_v20 = vld [vmem:[%s13600_s3 + $0xaa0] ss:$16 sps:$4 sm:$0xff]  }
 0x2c1   :  { %6339 = vmatprep.subr.bf16.mxu1 %v10028_v37  ;;  %v10104_v37 = vld [vmem:[%s13600_s3 + $0xaa8] ss:$16 sps:$4 sm:$0xff]  }
 0x2c3   :  { %6053 = vmatpush1.bf16.msra.mxu0 %v10023_v38  ;;  %v10109_v38 = vld [vmem:[%s13600_s3 + $0xac4] ss:$16 sps:$4 sm:$0xff]  }
 0x2c4   :  { %6340 = vmatpush1.bf16.msra.mxu1 %v10026_v40  ;;  %6054 = vmatprep.subr.bf16.mxu0 %v10031_v41  ;;  %v10112_v40 = vld [vmem:[%s13600_s3 + $0xacc] ss:$16 sps:$4 sm:$0xff]   ;;  %v10107_v41 = vld [vmem:[%s13600_s3 + $0xac0] ss:$16 sps:$4 sm:$0xff]  }
 0x2c5   :  { %6341 = vmatprep.subr.bf16.mxu1 %v10034_v42  ;;  %v10115_v42 = vld [vmem:[%s13600_s3 + $0xae4] ss:$16 sps:$4 sm:$0xff]  }
 0x2c7   :  { %6055 = vmatpush1.bf16.msra.mxu0 %v10029_v55  ;;  %v10110_v55 = vld [vmem:[%s13600_s3 + $0xac8] ss:$16 sps:$4 sm:$0xff]  }
 0x2c8   :  { %6342 = vmatpush1.bf16.msra.mxu1 %v10032_v45  ;;  %6056 = vmatprep.subr.bf16.mxu0 %v10037_v46  ;;  %v10118_v45 = vld [vmem:[%s13600_s3 + $0xaec] ss:$16 sps:$4 sm:$0xff]   ;;  %v10113_v46 = vld [vmem:[%s13600_s3 + $0xae0] ss:$16 sps:$4 sm:$0xff]  }
 0x2c9   :  { %6343 = vmatprep.subr.bf16.mxu1 %v10040_v48  ;;  %v10121_v48 = vld [vmem:[%s13600_s3 + $0xb04] ss:$16 sps:$4 sm:$0xff]  }
 0x2cb   :  { %6057 = vmatpush1.bf16.msra.mxu0 %v10035_v47  ;;  %v10116_v47 = vld [vmem:[%s13600_s3 + $0xae8] ss:$16 sps:$4 sm:$0xff]  }
 0x2cc   :  { %6344 = vmatpush1.bf16.msra.mxu1 %v10038_v51  ;;  %6058 = vmatprep.subr.bf16.mxu0 %v10043_v54  ;;  %v10124_v51 = vld [vmem:[%s13600_s3 + $0xb0c] ss:$16 sps:$4 sm:$0xff]   ;;  %v10119_v54 = vld [vmem:[%s13600_s3 + $0xb00] ss:$16 sps:$4 sm:$0xff]  }
 0x2cd   :  { %6345 = vmatprep.subr.bf16.mxu1 %v10046_v56  ;;  %v10127_v56 = vld [vmem:[%s13600_s3 + $0xb24] ss:$16 sps:$4 sm:$0xff]  }
 0x2cf   :  { %6059 = vmatpush1.bf16.msra.mxu0 %v10041_v39  ;;  %v10122_v39 = vld [vmem:[%s13600_s3 + $0xb08] ss:$16 sps:$4 sm:$0xff]  }
 0x2d0   :  { %6346 = vmatpush1.bf16.msra.mxu1 %v10044_v57  ;;  %6060 = vmatprep.subr.bf16.mxu0 %v10049_v58  ;;  %v10130_v57 = vld [vmem:[%s13600_s3 + $0xb2c] ss:$16 sps:$4 sm:$0xff]   ;;  %v10125_v58 = vld [vmem:[%s13600_s3 + $0xb20] ss:$16 sps:$4 sm:$0xff]  }
 0x2d1   :  { %6347 = vmatprep.subr.bf16.mxu1 %v10052_v59  ;;  %v10133_v59 = vld [vmem:[%s13600_s3 + $0xb44] ss:$16 sps:$4 sm:$0xff]  }
 0x2d3   :  { %6061 = vmatpush1.bf16.msra.mxu0 %v10047_v50  ;;  %v10128_v50 = vld [vmem:[%s13600_s3 + $0xb28] ss:$16 sps:$4 sm:$0xff]  }
 0x2d4   :  { %6348 = vmatpush1.bf16.msra.mxu1 %v10050_v61  ;;  %6062 = vmatprep.subr.bf16.mxu0 %v10055_v32  ;;  %v10136_v61 = vld [vmem:[%s13600_s3 + $0xb4c] ss:$16 sps:$4 sm:$0xff]   ;;  %v10131_v32 = vld [vmem:[%s13600_s3 + $0xb40] ss:$16 sps:$4 sm:$0xff]  }
 0x2d5   :  { %6349 = vmatprep.subr.bf16.mxu1 %v10058_v4  ;;  %v10139_v4 = vld [vmem:[%s13600_s3 + $0xb64] ss:$16 sps:$4 sm:$0xff]  }
 0x2d7   :  { %6063 = vmatpush1.bf16.msra.mxu0 %v10053_v3  ;;  %v10134_v3 = vld [vmem:[%s13600_s3 + $0xb48] ss:$16 sps:$4 sm:$0xff]  }
 0x2d8   :  { %6350 = vmatpush1.bf16.msra.mxu1 %v10056_v35  ;;  %6064 = vmatprep.subr.bf16.mxu0 %v10061_v5  ;;  %v10142_v35 = vld [vmem:[%s13600_s3 + $0xb6c] ss:$16 sps:$4 sm:$0xff]   ;;  %v10137_v5 = vld [vmem:[%s13600_s3 + $0xb60] ss:$16 sps:$4 sm:$0xff]  }
 0x2d9   :  { %6351 = vmatprep.subr.bf16.mxu1 %v10064_v16  ;;  %v10145_v16 = vld [vmem:[%s13600_s3 + $0xb84] ss:$16 sps:$4 sm:$0xff]  }
 0x2db   :  { %6065 = vmatpush1.bf16.msra.mxu0 %v10059_v6  ;;  %v10140_v6 = vld [vmem:[%s13600_s3 + $0xb68] ss:$16 sps:$4 sm:$0xff]  }
 0x2dc   :  { %6352 = vmatpush1.bf16.msra.mxu1 %v10062_v7  ;;  %6066 = vmatprep.subr.bf16.mxu0 %v10067_v8  ;;  %v10143_v7 = vld [vmem:[%s13600_s3 + $0xb80] ss:$16 sps:$4 sm:$0xff]   ;;  %v10146_v8 = vld [vmem:[%s13600_s3 + $0xb88] ss:$16 sps:$4 sm:$0xff]  }
 0x2dd   :  { %6353 = vmatprep.subr.bf16.mxu1 %v10070_v31  ;;  %v10154_v31 = vld [vmem:[%s13600_s3 + $0xbac] ss:$16 sps:$4 sm:$0xff]  }
 0x2df   :  { %6067 = vmatpush1.bf16.msra.mxu0 %v10065_v10  ;;  %v10151_v10 = vld [vmem:[%s13600_s3 + $0xba4] ss:$16 sps:$4 sm:$0xff]  }
 0x2e0   :  { %6354 = vmatpush1.bf16.msra.mxu1 %v10068_v11  ;;  %6077 = vmatprep.subr.bf16.mxu0 %v10073_v12  ;;  %v10149_v11 = vld [vmem:[%s13600_s3 + $0xba0] ss:$16 sps:$4 sm:$0xff]   ;;  %v10152_v12 = vld [vmem:[%s13600_s3 + $0xba8] ss:$16 sps:$4 sm:$0xff]  }
 0x2e1   :  { %6364 = vmatprep.subr.bf16.mxu1 %v10076_v14  ;;  %v10160_v14 = vld [vmem:[%s13600_s3 + $0xbcc] ss:$16 sps:$4 sm:$0xff]  }
 0x2e2   :  { %6069 = vmatmul.mubr.bf16.vlgmr.msra.gmra.mrb[16].mxu0 %v3441_v53 }
 0x2e3   :  { %6356 = vmatmul.mubr.bf16.vlgmr.msra.gmra.mrb[16].mxu1 %v3441_v53  ;;  %6078 = vmatpush1.bf16.msra.mxu0 %v10071_v13  ;;  %v10157_v13 = vld [vmem:[%s13600_s3 + $0xbc4] ss:$16 sps:$4 sm:$0xff]   ;;  %v10166_v53 = vld [vmem:[%s13600_s3 + $0xbec] ss:$16 sps:$4 sm:$0xff]  }
 0x2e4   :  { %6109 = vmatprep.mubr.bf16.mxu0 %v3444_v19  ;;  %6365 = vmatpush1.bf16.msra.mxu1 %v10074_v43  ;;  %v10155_v43 = vld [vmem:[%s13600_s3 + $0xbc0] ss:$16 sps:$4 sm:$0xff]  }
 0x2e5   :  { %6396 = vmatprep.mubr.bf16.mxu1 %v3444_v19  ;;  %6079 = vmatprep.subr.bf16.mxu0 %v10079_v52  ;;  %v10163_v52 = vld [vmem:[%s13600_s3 + $0xbe4] ss:$16 sps:$4 sm:$0xff]  }
 0x2e6   :  { %6366 = vmatprep.subr.bf16.mxu1 %v10082_v18  ;;  %v10164_v18 = vld [vmem:[%s13600_s3 + $0xbe8] ss:$16 sps:$4 sm:$0xff]   ;;  %v10169_v19 = vld [vmem:[%s13600_s3 + $0xc04] ss:$16 sps:$4 sm:$0xff]  }
 0x2e7   :  { %6080 = vmatpush1.bf16.msra.mxu0 %v10077_v17  ;;  %v10161_v17 = vld [vmem:[%s13600_s3 + $0xbe0] ss:$16 sps:$4 sm:$0xff]  }
 0x2e8   :  { %6367 = vmatpush1.bf16.msra.mxu1 %v10080_v21  ;;  %6081 = vmatprep.subr.bf16.mxu0 %v10085_v62  ;;  %v10172_v21 = vld [vmem:[%s13600_s3 + $0xc0c] ss:$16 sps:$4 sm:$0xff]   ;;  %v10167_v62 = vld [vmem:[%s13600_s3 + $0xc00] ss:$16 sps:$4 sm:$0xff]  }
 0x2e9   :  { %6368 = vmatprep.subr.bf16.mxu1 %v10088_v36  ;;  %v3443_v36 = vpack.c.bf16 %v12837_v26, %v12837_v26  ;;  %v10173_v26 = vld [vmem:[%s13600_s3 + $0xc20] ss:$16 sps:$4 sm:$0xff]  }
 0x2eb   :  { %6082 = vmatpush1.bf16.msra.mxu0 %v10083_v22  ;;  %v10170_v22 = vld [vmem:[%s13600_s3 + $0xc08] ss:$16 sps:$4 sm:$0xff]  }
 0x2ec   :  { %6369 = vmatpush1.bf16.msra.mxu1 %v10086_v24  ;;  %6083 = vmatprep.subr.bf16.mxu0 %v10091_v25  ;;  %v10175_v24 = vld [vmem:[%s13600_s3 + $0xc24] ss:$16 sps:$4 sm:$0xff]   ;;  %v10178_v25 = vld [vmem:[%s13600_s3 + $0xc2c] ss:$16 sps:$4 sm:$0xff]  }
 0x2ed   :  { %6370 = vmatprep.subr.bf16.mxu1 %v10094_v9  ;;  %v10176_v9 = vld [vmem:[%s13600_s3 + $0xc28] ss:$16 sps:$4 sm:$0xff]  }
 0x2ef   :  { %6084 = vmatpush1.bf16.msra.mxu0 %v10089_v27  ;;  %v10181_v27 = vld [vmem:[%s13600_s3 + $0xc44] ss:$16 sps:$4 sm:$0xff]  }
 0x2f0   :  { %6371 = vmatpush1.bf16.msra.mxu1 %v10092_v28  ;;  %6085 = vmatprep.subr.bf16.mxu0 %v10097_v44  ;;  %v10184_v28 = vld [vmem:[%s13600_s3 + $0xc4c] ss:$16 sps:$4 sm:$0xff]   ;;  %v10420_v44 = vmov 0  }
 0x2f1   :  { %6372 = vmatprep.subr.bf16.mxu1 %v10100_v29  ;;  %v10179_v29 = vld [vmem:[%s13600_s3 + $0xc40] ss:$16 sps:$4 sm:$0xff]  }
 0x2f3   :  { %6086 = vmatpush1.bf16.msra.mxu0 %v10095_v30  ;;  %v10182_v30 = vld [vmem:[%s13600_s3 + $0xc48] ss:$16 sps:$4 sm:$0xff]  }
 0x2f4   :  { %6373 = vmatpush1.bf16.msra.mxu1 %v10098_v33  ;;  %6087 = vmatprep.subr.bf16.mxu0 %v10103_v34  ;;  %v10187_v33 = vld [vmem:[%s13600_s3 + $0xc64] ss:$16 sps:$4 sm:$0xff]   ;;  %v10190_v34 = vld [vmem:[%s13600_s3 + $0xc6c] ss:$16 sps:$4 sm:$0xff]  }
 0x2f5   :  { %6374 = vmatprep.subr.bf16.mxu1 %v10106_v60  ;;  %v10185_v60 = vld [vmem:[%s13600_s3 + $0xc60] ss:$16 sps:$4 sm:$0xff]  }
 0x2f7   :  { %6088 = vmatpush1.bf16.msra.mxu0 %v10101_v20  ;;  %v10188_v20 = vld [vmem:[%s13600_s3 + $0xc68] ss:$16 sps:$4 sm:$0xff]  }
 0x2f8   :  { %6375 = vmatpush1.bf16.msra.mxu1 %v10104_v37  ;;  %6089 = vmatprep.subr.bf16.mxu0 %v10109_v38  ;;  %v10193_v37 = vld [vmem:[%s13602_s5 + $0x4] ss:$16 sps:$4 sm:$0xff]   ;;  %v8227_v38 = vld.sshfl [vmem:[#allocation2 + $0x18] sm:$0x3 pattern:$0x76325410] }
 0x2f9   :  { %6376 = vmatprep.subr.bf16.mxu1 %v10112_v40  ;;  %v10196_v40 = vld [vmem:[%s13602_s5 + $0xc] ss:$16 sps:$4 sm:$0xff]  }
 0x2fb   :  { %6090 = vmatpush1.bf16.msra.mxu0 %v10107_v41  ;;  %v10191_v41 = vld [vmem:[%s13602_s5] ss:$16 sps:$4 sm:$0xff]  }
 0x2fc   :  { %6377 = vmatpush1.bf16.msra.mxu1 %v10110_v55  ;;  %6091 = vmatprep.subr.bf16.mxu0 %v10115_v42  ;;  %v3445_v55 = vpack.c.bf16 %v8227_v38, %v8227_v38  ;;  %v10194_v42 = vld [vmem:[%s13602_s5 + $0x8] ss:$16 sps:$4 sm:$0xff]   ;;  %v10275_v38 = vld [vmem:[%s13602_s5 + $0x1c0] ss:$16 sps:$4 sm:$0xff]  }
 0x2fd   :  { %6378 = vmatprep.subr.bf16.mxu1 %v10118_v45  ;;  %v10199_v45 = vld [vmem:[%s13602_s5 + $0x24] ss:$16 sps:$4 sm:$0xff]  }
 0x2ff   :  { %6092 = vmatpush1.bf16.msra.mxu0 %v10113_v46  ;;  %v10202_v46 = vld [vmem:[%s13602_s5 + $0x2c] ss:$16 sps:$4 sm:$0xff]  }
 0x300   :  { %6379 = vmatpush1.bf16.msra.mxu1 %v10116_v47  ;;  %6093 = vmatprep.subr.bf16.mxu0 %v10121_v48  ;;  %v10197_v47 = vld [vmem:[%s13602_s5 + $0x20] ss:$16 sps:$4 sm:$0xff]   ;;  %v10200_v48 = vld [vmem:[%s13602_s5 + $0x28] ss:$16 sps:$4 sm:$0xff]  }
 0x301   :  { %6380 = vmatprep.subr.bf16.mxu1 %v10124_v51  ;;  %v10205_v51 = vld [vmem:[%s13602_s5 + $0x44] ss:$16 sps:$4 sm:$0xff]  }
 0x303   :  { %6094 = vmatpush1.bf16.msra.mxu0 %v10119_v54  ;;  %v10208_v54 = vld [vmem:[%s13602_s5 + $0x4c] ss:$16 sps:$4 sm:$0xff]  }
 0x304   :  { %6381 = vmatpush1.bf16.msra.mxu1 %v10122_v39  ;;  %6095 = vmatprep.subr.bf16.mxu0 %v10127_v56  ;;  %v10203_v39 = vld [vmem:[%s13602_s5 + $0x40] ss:$16 sps:$4 sm:$0xff]   ;;  %v10206_v56 = vld [vmem:[%s13602_s5 + $0x48] ss:$16 sps:$4 sm:$0xff]  }
 0x305   :  { %6382 = vmatprep.subr.bf16.mxu1 %v10130_v57  ;;  %v10211_v57 = vld [vmem:[%s13602_s5 + $0x64] ss:$16 sps:$4 sm:$0xff]  }
 0x307   :  { %6096 = vmatpush1.bf16.msra.mxu0 %v10125_v58  ;;  %v10214_v58 = vld [vmem:[%s13602_s5 + $0x6c] ss:$16 sps:$4 sm:$0xff]  }
 0x308   :  { %6383 = vmatpush1.bf16.msra.mxu1 %v10128_v50  ;;  %6097 = vmatprep.subr.bf16.mxu0 %v10133_v59  ;;  %v10209_v50 = vld [vmem:[%s13602_s5 + $0x60] ss:$16 sps:$4 sm:$0xff]   ;;  %v10212_v59 = vld [vmem:[%s13602_s5 + $0x68] ss:$16 sps:$4 sm:$0xff]  }
 0x309   :  { %6384 = vmatprep.subr.bf16.mxu1 %v10136_v61  ;;  %v10217_v61 = vld [vmem:[%s13602_s5 + $0x84] ss:$16 sps:$4 sm:$0xff]  }
 0x30b   :  { %6098 = vmatpush1.bf16.msra.mxu0 %v10131_v32  ;;  %v10220_v32 = vld [vmem:[%s13602_s5 + $0x8c] ss:$16 sps:$4 sm:$0xff]  }
 0x30c   :  { %6385 = vmatpush1.bf16.msra.mxu1 %v10134_v3  ;;  %6099 = vmatprep.subr.bf16.mxu0 %v10139_v4  ;;  %v10215_v3 = vld [vmem:[%s13602_s5 + $0x80] ss:$16 sps:$4 sm:$0xff]   ;;  %v10218_v4 = vld [vmem:[%s13602_s5 + $0x88] ss:$16 sps:$4 sm:$0xff]  }
 0x30d   :  { %6386 = vmatprep.subr.bf16.mxu1 %v10142_v35  ;;  %v10223_v35 = vld [vmem:[%s13602_s5 + $0xa4] ss:$16 sps:$4 sm:$0xff]  }
 0x30f   :  { %6100 = vmatpush1.bf16.msra.mxu0 %v10137_v5  ;;  %v10226_v5 = vld [vmem:[%s13602_s5 + $0xac] ss:$16 sps:$4 sm:$0xff]  }
 0x310   :  { %6387 = vmatpush1.bf16.msra.mxu1 %v10140_v6  ;;  %6101 = vmatprep.subr.bf16.mxu0 %v10145_v16  ;;  %v10221_v6 = vld [vmem:[%s13602_s5 + $0xa0] ss:$16 sps:$4 sm:$0xff]   ;;  %v10224_v16 = vld [vmem:[%s13602_s5 + $0xa8] ss:$16 sps:$4 sm:$0xff]  }
 0x311   :  { %6388 = vmatprep.subr.bf16.mxu1 %v10148_v23  ;;  %v10229_v23 = vld [vmem:[%s13602_s5 + $0xc4] ss:$16 sps:$4 sm:$0xff]  }
 0x313   :  { %6102 = vmatpush1.bf16.msra.mxu0 %v10143_v7  ;;  %v10232_v7 = vld [vmem:[%s13602_s5 + $0xcc] ss:$16 sps:$4 sm:$0xff]  }
 0x314   :  { %6389 = vmatpush1.bf16.msra.mxu1 %v10146_v8  ;;  %6103 = vmatprep.subr.bf16.mxu0 %v10151_v10  ;;  %v10227_v8 = vld [vmem:[%s13602_s5 + $0xc0] ss:$16 sps:$4 sm:$0xff]   ;;  %v10230_v10 = vld [vmem:[%s13602_s5 + $0xc8] ss:$16 sps:$4 sm:$0xff]  }
 0x315   :  { %6390 = vmatprep.subr.bf16.mxu1 %v10154_v31  ;;  %v10235_v31 = vld [vmem:[%s13602_s5 + $0xe4] ss:$16 sps:$4 sm:$0xff]  }
 0x317   :  { %6104 = vmatpush1.bf16.msra.mxu0 %v10149_v11  ;;  %v10238_v11 = vld [vmem:[%s13602_s5 + $0xec] ss:$16 sps:$4 sm:$0xff]  }
 0x318   :  { %6391 = vmatpush1.bf16.msra.mxu1 %v10152_v12  ;;  %6105 = vmatprep.subr.bf16.mxu0 %v10157_v13  ;;  %v10233_v12 = vld [vmem:[%s13602_s5 + $0xe0] ss:$16 sps:$4 sm:$0xff]   ;;  %v10236_v13 = vld [vmem:[%s13602_s5 + $0xe8] ss:$16 sps:$4 sm:$0xff]  }
 0x319   :  { %6392 = vmatprep.subr.bf16.mxu1 %v10160_v14  ;;  %v10241_v14 = vld [vmem:[%s13602_s5 + $0x104] ss:$16 sps:$4 sm:$0xff]  }
 0x31b   :  { %6106 = vmatpush1.bf16.msra.mxu0 %v10155_v43  ;;  %v10244_v43 = vld [vmem:[%s13602_s5 + $0x10c] ss:$16 sps:$4 sm:$0xff]  }
 0x31c   :  { %6393 = vmatpush1.bf16.msra.mxu1 %v10158_v15  ;;  %6107 = vmatprep.subr.bf16.mxu0 %v10163_v52  ;;  %v10239_v15 = vld [vmem:[%s13602_s5 + $0x100] ss:$16 sps:$4 sm:$0xff]   ;;  %v10242_v52 = vld [vmem:[%s13602_s5 + $0x108] ss:$16 sps:$4 sm:$0xff]  }
 0x31d   :  { %6394 = vmatprep.subr.bf16.mxu1 %v10166_v53  ;;  %v10247_v53 = vld [vmem:[%s13602_s5 + $0x124] ss:$16 sps:$4 sm:$0xff]  }
 0x31f   :  { %6108 = vmatpush1.bf16.msra.mxu0 %v10161_v17  ;;  %v10250_v17 = vld [vmem:[%s13602_s5 + $0x12c] ss:$16 sps:$4 sm:$0xff]  }
 0x320   :  { %6395 = vmatpush1.bf16.msra.mxu1 %v10164_v18  ;;  %6118 = vmatprep.subr.bf16.mxu0 %v10169_v19  ;;  %v10245_v18 = vld [vmem:[%s13602_s5 + $0x120] ss:$16 sps:$4 sm:$0xff]   ;;  %v10248_v19 = vld [vmem:[%s13602_s5 + $0x128] ss:$16 sps:$4 sm:$0xff]  }
 0x321   :  { %6405 = vmatprep.subr.bf16.mxu1 %v10172_v21  ;;  %v10253_v21 = vld [vmem:[%s13602_s5 + $0x144] ss:$16 sps:$4 sm:$0xff]  }
 0x322   :  { %6110 = vmatmul.mubr.bf16.vlgmr.msra.gmra.mrb[16].mxu0 %v3443_v36 }
 0x323   :  { %6397 = vmatmul.mubr.bf16.vlgmr.msra.gmra.mrb[16].mxu1 %v3443_v36  ;;  %6119 = vmatpush1.bf16.msra.mxu0 %v10167_v62  ;;  %v10256_v62 = vld [vmem:[%s13602_s5 + $0x14c] ss:$16 sps:$4 sm:$0xff]   ;;  %v10251_v36 = vld [vmem:[%s13602_s5 + $0x140] ss:$16 sps:$4 sm:$0xff]  }
 0x324   :  { %6406 = vmatpush1.bf16.msra.mxu1 %v10170_v22  ;;  %6120 = vmatprep.subr.bf16.mxu0 %v10175_v24  ;;  %v10254_v22 = vld [vmem:[%s13602_s5 + $0x148] ss:$16 sps:$4 sm:$0xff]   ;;  %v10259_v24 = vld [vmem:[%s13602_s5 + $0x164] ss:$16 sps:$4 sm:$0xff]  }
 0x325   :  { %6407 = vmatprep.subr.bf16.mxu1 %v10178_v25  ;;  %6150 = vmatprep.mubr.bf16.mxu0 %v10420_v44  ;;  %v10262_v25 = vld [vmem:[%s13602_s5 + $0x16c] ss:$16 sps:$4 sm:$0xff]  }
 0x326   :  { %6437 = vmatprep.mubr.bf16.mxu1 %v10420_v44  ;;  %v10263_v44 = vld [vmem:[%s13602_s5 + $0x180] ss:$16 sps:$4 sm:$0xff]  }
 0x327   :  { %6121 = vmatpush1.bf16.msra.mxu0 %v10173_v26  ;;  %v10257_v26 = vld [vmem:[%s13602_s5 + $0x160] ss:$16 sps:$4 sm:$0xff]  }
 0x328   :  { %6408 = vmatpush1.bf16.msra.mxu1 %v10176_v9  ;;  %6122 = vmatprep.subr.bf16.mxu0 %v10181_v27  ;;  %v10260_v9 = vld [vmem:[%s13602_s5 + $0x168] ss:$16 sps:$4 sm:$0xff]   ;;  %v10265_v27 = vld [vmem:[%s13602_s5 + $0x184] ss:$16 sps:$4 sm:$0xff]  }
 0x329   :  { %6409 = vmatprep.subr.bf16.mxu1 %v10184_v28  ;;  %v10268_v28 = vld [vmem:[%s13602_s5 + $0x18c] ss:$16 sps:$4 sm:$0xff]  }
 0x32b   :  { %6123 = vmatpush1.bf16.msra.mxu0 %v10179_v29  ;;  %v10266_v29 = vld [vmem:[%s13602_s5 + $0x188] ss:$16 sps:$4 sm:$0xff]  }
 0x32c   :  { %6410 = vmatpush1.bf16.msra.mxu1 %v10182_v30  ;;  %6124 = vmatprep.subr.bf16.mxu0 %v10187_v33  ;;  %v10271_v30 = vld [vmem:[%s13602_s5 + $0x1a4] ss:$16 sps:$4 sm:$0xff]   ;;  %v10274_v33 = vld [vmem:[%s13602_s5 + $0x1ac] ss:$16 sps:$4 sm:$0xff]  }
 0x32d   :  { %6411 = vmatprep.subr.bf16.mxu1 %v10190_v34  ;;  %v10269_v34 = vld [vmem:[%s13602_s5 + $0x1a0] ss:$16 sps:$4 sm:$0xff]  }
 0x32f   :  { %6125 = vmatpush1.bf16.msra.mxu0 %v10185_v60  ;;  %v10272_v60 = vld [vmem:[%s13602_s5 + $0x1a8] ss:$16 sps:$4 sm:$0xff]  }
 0x330   :  { %6412 = vmatpush1.bf16.msra.mxu1 %v10188_v20  ;;  %7290 = vmatprep.subr.bf16.mxu0 %v10193_v37  ;;  %v10277_v20 = vld [vmem:[%s13602_s5 + $0x1c4] ss:$16 sps:$4 sm:$0xff]   ;;  %v10280_v37 = vld [vmem:[%s13602_s5 + $0x1cc] ss:$16 sps:$4 sm:$0xff]  }
 0x331   :  { %7372 = vmatprep.subr.bf16.mxu1 %v10196_v40  ;;  %v10278_v40 = vld [vmem:[%s13602_s5 + $0x1c8] ss:$16 sps:$4 sm:$0xff]  }
 0x332   :  { %8628 = vmatmul.mubr.msk.bf16.vlgmr.msra.gmra.mrb[16].mxu0 %vm5868_vm1, %v3445_v55 }
 0x333   :  { %8629 = vmatmul.mubr.msk.bf16.vlgmr.msra.gmra.mrb[16].mxu1 %vm5868_vm1, %v3445_v55  ;;  %7291 = vmatpush1.bf16.msra.mxu0 %v10191_v41  ;;  %v10283_v41 = vld [vmem:[%s13602_s5 + $0x1e4] ss:$16 sps:$4 sm:$0xff]   ;;  %v10286_v55 = vld [vmem:[%s13602_s5 + $0x1ec] ss:$16 sps:$4 sm:$0xff]  }
 0x334   :  { %7373 = vmatpush1.bf16.msra.mxu1 %v10194_v42  ;;  %7292 = vmatprep.subr.bf16.mxu0 %v10199_v45  ;;  %v10281_v42 = vld [vmem:[%s13602_s5 + $0x1e0] ss:$16 sps:$4 sm:$0xff]   ;;  %v10284_v45 = vld [vmem:[%s13602_s5 + $0x1e8] ss:$16 sps:$4 sm:$0xff]  }
 0x335   :  { %7374 = vmatprep.subr.bf16.mxu1 %v10202_v46  ;;  %v10289_v46 = vld [vmem:[%s13602_s5 + $0x204] ss:$16 sps:$4 sm:$0xff]  }
 0x337   :  { %7293 = vmatpush1.bf16.msra.mxu0 %v10197_v47  ;;  %v10292_v47 = vld [vmem:[%s13602_s5 + $0x20c] ss:$16 sps:$4 sm:$0xff]  }
 0x338   :  { %7375 = vmatpush1.bf16.msra.mxu1 %v10200_v48  ;;  %7294 = vmatprep.subr.bf16.mxu0 %v10205_v51  ;;  %v3846_v48 = vld [vmem:[%s13604_s4] sm:$0xf] }
 0x339   :  { %7376 = vmatprep.subr.bf16.mxu1 %v10208_v54  ;;  %v3851_v51 = vrot.slane %v3846_v48, %v11541_v63  ;;  %v3859_v54 = vrot.slane %v3846_v48, %v11544_v0 }
 0x33b   :  { %7295 = vmatpush1.bf16.msra.mxu0 %v10203_v39  ;;  %v3855_v39 = vrot.slane %v3846_v48, %v11547_v1 }
 0x33c   :  { %7377 = vmatpush1.bf16.msra.mxu1 %v10206_v56  ;;  %7296 = vmatprep.subr.bf16.mxu0 %v10211_v57  ;;  %v3863_v56 = vrot.slane %v3846_v48, %v11550_v2  ;;  %v10331_v48 = vld [vmem:[%s13602_s5 + $0x2e4] ss:$16 sps:$4 sm:$0xff]  }
 0x33d   :  { %7378 = vmatprep.subr.bf16.mxu1 %v10214_v58 }
 0x33f   :  { %7297 = vmatpush1.bf16.msra.mxu0 %v10209_v50 }
 0x340   :  { %7379 = vmatpush1.bf16.msra.mxu1 %v10212_v59  ;;  %7298 = vmatprep.subr.bf16.mxu0 %v10217_v61 }
 0x341   :  { %7380 = vmatprep.subr.bf16.mxu1 %v10220_v32 }
 0x343   :  { %7299 = vmatpush1.bf16.msra.mxu0 %v10215_v3 }
 0x344   :  { %7381 = vmatpush1.bf16.msra.mxu1 %v10218_v4  ;;  %7300 = vmatprep.subr.bf16.mxu0 %v10223_v35 }
 0x345   :  { %7382 = vmatprep.subr.bf16.mxu1 %v10226_v5 }
 0x347   :  { %7301 = vmatpush1.bf16.msra.mxu0 %v10221_v6 }
 0x348   :  { %7383 = vmatpush1.bf16.msra.mxu1 %v10224_v16  ;;  %7302 = vmatprep.subr.bf16.mxu0 %v10229_v23 }
 0x349   :  { %7384 = vmatprep.subr.bf16.mxu1 %v10232_v7 }
 0x34b   :  { %7303 = vmatpush1.bf16.msra.mxu0 %v10227_v8 }
 0x34c   :  { %7385 = vmatpush1.bf16.msra.mxu1 %v10230_v10  ;;  %7304 = vmatprep.subr.bf16.mxu0 %v10235_v31 }
 0x34d   :  { %7386 = vmatprep.subr.bf16.mxu1 %v10238_v11 }
 0x34f   :  { %7305 = vmatpush1.bf16.msra.mxu0 %v10233_v12 }
 0x350   :  { %7387 = vmatpush1.bf16.msra.mxu1 %v10236_v13  ;;  %7306 = vmatprep.subr.bf16.mxu0 %v10241_v14 }
 0x351   :  { %7388 = vmatprep.subr.bf16.mxu1 %v10244_v43 }
 0x353   :  { %7307 = vmatpush1.bf16.msra.mxu0 %v10239_v15 }
 0x354   :  { %7389 = vmatpush1.bf16.msra.mxu1 %v10242_v52  ;;  %7308 = vmatprep.subr.bf16.mxu0 %v10247_v53 }
 0x355   :  { %7390 = vmatprep.subr.bf16.mxu1 %v10250_v17 }
 0x357   :  { %7309 = vmatpush1.bf16.msra.mxu0 %v10245_v18 }
 0x358   :  { %7391 = vmatpush1.bf16.msra.mxu1 %v10248_v19  ;;  %7310 = vmatprep.subr.bf16.mxu0 %v10253_v21  ;;  %v10287_v19 = vld [vmem:[%s13602_s5 + $0x200] ss:$16 sps:$4 sm:$0xff]   ;;  %v10290_v21 = vld [vmem:[%s13602_s5 + $0x208] ss:$16 sps:$4 sm:$0xff]  }
 0x359   :  { %7392 = vmatprep.subr.bf16.mxu1 %v10256_v62 }
 0x35b   :  { %7311 = vmatpush1.bf16.msra.mxu0 %v10251_v36  ;;  %v10298_v36 = vld [vmem:[%s13602_s5 + $0x22c] ss:$16 sps:$4 sm:$0xff]  }
 0x35c   :  { %7393 = vmatpush1.bf16.msra.mxu1 %v10254_v22  ;;  %7312 = vmatprep.subr.bf16.mxu0 %v10259_v24  ;;  %v10293_v24 = vld [vmem:[%s13602_s5 + $0x220] ss:$16 sps:$4 sm:$0xff]  }
 0x35d   :  { %7394 = vmatprep.subr.bf16.mxu1 %v10262_v25  ;;  %v10296_v25 = vld [vmem:[%s13602_s5 + $0x228] ss:$16 sps:$4 sm:$0xff]  }
 0x35f   :  { %7313 = vmatpush1.bf16.msra.mxu0 %v10257_v26  ;;  %v10301_v26 = vld [vmem:[%s13602_s5 + $0x244] ss:$16 sps:$4 sm:$0xff]  }
 0x360   :  { %7395 = vmatpush1.bf16.msra.mxu1 %v10260_v9  ;;  %7314 = vmatprep.subr.bf16.mxu0 %v10265_v27  ;;  %v10304_v9 = vld [vmem:[%s13602_s5 + $0x24c] ss:$16 sps:$4 sm:$0xff]   ;;  %v10299_v27 = vld [vmem:[%s13602_s5 + $0x240] ss:$16 sps:$4 sm:$0xff]  }
 0x361   :  { %7396 = vmatprep.subr.bf16.mxu1 %v10268_v28  ;;  %v10302_v28 = vld [vmem:[%s13602_s5 + $0x248] ss:$16 sps:$4 sm:$0xff]  }
 0x363   :  { %7315 = vmatpush1.bf16.msra.mxu0 %v10263_v44  ;;  %v10307_v44 = vld [vmem:[%s13602_s5 + $0x264] ss:$16 sps:$4 sm:$0xff]  }
 0x364   :  { %7397 = vmatpush1.bf16.msra.mxu1 %v10266_v29  ;;  %7316 = vmatprep.subr.bf16.mxu0 %v10271_v30  ;;  %v10310_v29 = vld [vmem:[%s13602_s5 + $0x26c] ss:$16 sps:$4 sm:$0xff]   ;;  %v10305_v30 = vld [vmem:[%s13602_s5 + $0x260] ss:$16 sps:$4 sm:$0xff]  }
 0x365   :  { %7398 = vmatprep.subr.bf16.mxu1 %v10274_v33  ;;  %v10308_v33 = vld [vmem:[%s13602_s5 + $0x268] ss:$16 sps:$4 sm:$0xff]  }
 0x367   :  { %7317 = vmatpush1.bf16.msra.mxu0 %v10269_v34  ;;  %v10313_v34 = vld [vmem:[%s13602_s5 + $0x284] ss:$16 sps:$4 sm:$0xff]  }
 0x368   :  { %7399 = vmatpush1.bf16.msra.mxu1 %v10272_v60  ;;  %7318 = vmatprep.subr.bf16.mxu0 %v10277_v20  ;;  %v10316_v60 = vld [vmem:[%s13602_s5 + $0x28c] ss:$16 sps:$4 sm:$0xff]   ;;  %v10311_v20 = vld [vmem:[%s13602_s5 + $0x280] ss:$16 sps:$4 sm:$0xff]  }
 0x369   :  { %7400 = vmatprep.subr.bf16.mxu1 %v10280_v37  ;;  %v10314_v37 = vld [vmem:[%s13602_s5 + $0x288] ss:$16 sps:$4 sm:$0xff]  }
 0x36b   :  { %7319 = vmatpush1.bf16.msra.mxu0 %v10275_v38  ;;  %v10319_v38 = vld [vmem:[%s13602_s5 + $0x2a4] ss:$16 sps:$4 sm:$0xff]  }
 0x36c   :  { %7401 = vmatpush1.bf16.msra.mxu1 %v10278_v40  ;;  %7320 = vmatprep.subr.bf16.mxu0 %v10283_v41  ;;  %v10322_v40 = vld [vmem:[%s13602_s5 + $0x2ac] ss:$16 sps:$4 sm:$0xff]   ;;  %v10317_v41 = vld [vmem:[%s13602_s5 + $0x2a0] ss:$16 sps:$4 sm:$0xff]  }
 0x36d   :  { %7402 = vmatprep.subr.bf16.mxu1 %v10286_v55  ;;  %v10320_v55 = vld [vmem:[%s13602_s5 + $0x2a8] ss:$16 sps:$4 sm:$0xff]  }
 0x36f   :  { %7321 = vmatpush1.bf16.msra.mxu0 %v10281_v42  ;;  %v10325_v42 = vld [vmem:[%s13602_s5 + $0x2c4] ss:$16 sps:$4 sm:$0xff]  }
 0x370   :  { %7403 = vmatpush1.bf16.msra.mxu1 %v10284_v45  ;;  %7331 = vmatprep.subr.bf16.mxu0 %v10289_v46  ;;  %v10328_v45 = vld [vmem:[%s13602_s5 + $0x2cc] ss:$16 sps:$4 sm:$0xff]   ;;  %v10323_v46 = vld [vmem:[%s13602_s5 + $0x2c0] ss:$16 sps:$4 sm:$0xff]  }
 0x371   :  { %7413 = vmatprep.subr.bf16.mxu1 %v10292_v47  ;;  %v10326_v47 = vld [vmem:[%s13602_s5 + $0x2c8] ss:$16 sps:$4 sm:$0xff]  }
 0x405   :  { %v6152_v57 = vpop.f32.mrb[16].mxu0 }
 0x406   :  { %v8892_v58 = vadd.f32 %v6152_v57, %v3851_v51  ;;  %v6439_v50 = vpop.f32.mrb[16].mxu1  ;;  %v6154_v59 = vpop.f32.mrb[17].mxu0  ;;  %v10334_v51 = vld [vmem:[%s13602_s5 + $0x2ec] ss:$16 sps:$4 sm:$0xff]  }
 0x407   :  { %v8894_v61 = vadd.f32 %v6439_v50, %v3859_v54  ;;  %v8893_v32 = vadd.f32 %v6154_v59, %v3855_v39  ;;  %v6441_v3 = vpop.f32.mrb[17].mxu1  ;;  %v6156_v4 = vpop.f32.mrb[18].mxu0  ;;  %v10329_v54 = vld [vmem:[%s13602_s5 + $0x2e0] ss:$16 sps:$4 sm:$0xff]   ;;  %v10332_v39 = vld [vmem:[%s13602_s5 + $0x2e8] ss:$16 sps:$4 sm:$0xff]  }
 0x408   :  { %v6446_v35 = vmax.f32 %v8892_v58, 0.0  ;;  %v8895_v5 = vadd.f32 %v6441_v3, %v3863_v56  ;;  %v6443_v6 = vpop.f32.mrb[18].mxu1  ;;  %v6157_v16 = vpop.f32.mrb[19].mxu0  ;;  %v10337_v56 = vld [vmem:[%s13602_s5 + $0x304] ss:$16 sps:$4 sm:$0xff]  }
 0x409   :  { %v6448_v23 = vmax.f32 %v8894_v61, 0.0  ;;  %v6447_v7 = vmax.f32 %v8893_v32, 0.0  ;;  %v6444_v8 = vpop.f32.mrb[19].mxu1  ;;  %v10340_v57 = vld [vmem:[%s13602_s5 + $0x30c] ss:$16 sps:$4 sm:$0xff]  }
 0x40a   :  { %v6449_v10 = vmax.f32 %v8895_v5, 0.0  ;;  %v10335_v58 = vld [vmem:[%s13602_s5 + $0x300] ss:$16 sps:$4 sm:$0xff]   ;;  %v10338_v50 = vld [vmem:[%s13602_s5 + $0x308] ss:$16 sps:$4 sm:$0xff]  }
 0x40b   :  { %v6454_v31 = vcombine.low %v6446_v35, %v6447_v7  ;;  %v10343_v59 = vld [vmem:[%s13602_s5 + $0x324] ss:$16 sps:$4 sm:$0xff]   ;;  %v10346_v61 = vld [vmem:[%s13602_s5 + $0x32c] ss:$16 sps:$4 sm:$0xff]   ;;  %v10341_v32 = vld [vmem:[%s13602_s5 + $0x320] ss:$16 sps:$4 sm:$0xff]  }
 0x40c   :  { %v6455_v11 = vcombine.low %v6448_v23, %v6449_v10  ;;  %v10344_v3 = vld [vmem:[%s13602_s5 + $0x328] ss:$16 sps:$4 sm:$0xff]   ;;  %v10349_v4 = vld [vmem:[%s13602_s5 + $0x344] ss:$16 sps:$4 sm:$0xff]   ;;  %v10352_v35 = vld [vmem:[%s13602_s5 + $0x34c] ss:$16 sps:$4 sm:$0xff]  }
 0x40d   :  { %v6462_v12 = vrot.slane %v6454_v31, %v10606_v49  ;;  %v10347_v5 = vld [vmem:[%s13602_s5 + $0x340] ss:$16 sps:$4 sm:$0xff]   ;;  %v10350_v6 = vld [vmem:[%s13602_s5 + $0x348] ss:$16 sps:$4 sm:$0xff]   ;;  %v10355_v16 = vld [vmem:[%s13602_s5 + $0x364] ss:$16 sps:$4 sm:$0xff]  }
 0x40e   :  { %v6469_v13 = vrot.slane %v6455_v11, %v10606_v49  ;;  %v10358_v23 = vld [vmem:[%s13602_s5 + $0x36c] ss:$16 sps:$4 sm:$0xff]   ;;  %v10353_v7 = vld [vmem:[%s13602_s5 + $0x360] ss:$16 sps:$4 sm:$0xff]   ;;  %v10356_v8 = vld [vmem:[%s13602_s5 + $0x368] ss:$16 sps:$4 sm:$0xff]  }
 0x40f   :  { %v10361_v10 = vld [vmem:[%s13602_s5 + $0x384] ss:$16 sps:$4 sm:$0xff]   ;;  %v10364_v31 = vld [vmem:[%s13602_s5 + $0x38c] ss:$16 sps:$4 sm:$0xff]   ;;  %v10359_v11 = vld [vmem:[%s13602_s5 + $0x380] ss:$16 sps:$4 sm:$0xff]  }
 0x410   :  { %v6470_v14 = vcombine.low %v6462_v12, %v6469_v13  ;;  %v8791_v43 = vcombine.low %v6469_v13, %v6469_v13  ;;  %v10362_v12 = vld [vmem:[%s13602_s5 + $0x388] ss:$16 sps:$4 sm:$0xff]   ;;  %v10367_v13 = vld [vmem:[%s13602_s5 + $0x3a4] ss:$16 sps:$4 sm:$0xff]  }
 0x412   :  { %v6482_v15 = vrot.slane %v6470_v14, %v10606_v49  ;;  %v13297_v52 = vrot.slane %v8791_v43, %v10606_v49  ;;  %v10295_v49 = vld [vmem:[%s13602_s5 + $0x224] ss:$16 sps:$4 sm:$0xff]   ;;  %v10370_v14 = vld [vmem:[%s13602_s5 + $0x3ac] ss:$16 sps:$4 sm:$0xff]   ;;  %v10365_v43 = vld [vmem:[%s13602_s5 + $0x3a0] ss:$16 sps:$4 sm:$0xff]  }
 0x414   :  { %v6490_v53 = vcombine.high %v6482_v15, %v6482_v15  ;;  %v6491_v17 = vcombine.high %v13297_v52, %v13297_v52  ;;  %v6496_v62 = vpack.c.bf16 %v6482_v15, %v6482_v15  ;;  %v10368_v15 = vld [vmem:[%s13602_s5 + $0x3a8] ss:$16 sps:$4 sm:$0xff]  }
 0x416   :  { %v6497_v18 = vpack.c.bf16 %v6490_v53, %v6490_v53  ;;  %v6499_v22 = vpack.c.bf16 %v6491_v17, %v6491_v17  ;;  %v10373_v53 = vld [vmem:[%s13602_s5 + $0x3c4] ss:$16 sps:$4 sm:$0xff]   ;;  %v10376_v17 = vld [vmem:[%s13602_s5 + $0x3cc] ss:$16 sps:$4 sm:$0xff]  }
 0x418   :  { %7322 = vmatprep.mubr.bf16.mxu0 %v6497_v18  ;;  %7404 = vmatprep.mubr.bf16.mxu1 %v6497_v18  ;;  %v10371_v18 = vld [vmem:[%s13602_s5 + $0x3c0] ss:$16 sps:$4 sm:$0xff]  }
 0x419   :  { %7323 = vmatmul.mubr.bf16.vlgmr.msra.gmra.mrb[20].mxu0 %v6496_v62  ;;  %7405 = vmatmul.mubr.bf16.vlgmr.msra.gmra.mrb[20].mxu1 %v6496_v62  ;;  %v10382_v62 = vld [vmem:[%s13602_s5 + $0x3ec] ss:$16 sps:$4 sm:$0xff]  }
 0x41a   :  { %7332 = vmatpush1.bf16.msra.mxu0 %v10287_v19  ;;  %7414 = vmatpush1.bf16.msra.mxu1 %v10290_v21  ;;  %v10374_v19 = vld [vmem:[%s13602_s5 + $0x3c8] ss:$16 sps:$4 sm:$0xff]   ;;  %v10379_v21 = vld [vmem:[%s13602_s5 + $0x3e4] ss:$16 sps:$4 sm:$0xff]  }
 0x41b   :  { %7363 = vmatprep.mubr.bf16.mxu0 %v6499_v22  ;;  %7445 = vmatprep.mubr.bf16.mxu1 %v6499_v22  ;;  %v10383_v22 = vld [vmem:[%s13603_s7 + $0x40] sm:$0xff]  }
 0x41c   :  { %7333 = vmatprep.subr.bf16.mxu0 %v10295_v49  ;;  %7415 = vmatprep.subr.bf16.mxu1 %v10298_v36  ;;  %v10377_v49 = vld [vmem:[%s13602_s5 + $0x3e0] ss:$16 sps:$4 sm:$0xff]   ;;  %v10380_v36 = vld [vmem:[%s13602_s5 + $0x3e8] ss:$16 sps:$4 sm:$0xff]  }
 0x41e   :  { %7334 = vmatpush1.bf16.msra.mxu0 %v10293_v24  ;;  %7416 = vmatpush1.bf16.msra.mxu1 %v10296_v25  ;;  %v10384_v24 = vld [vmem:[%s13603_s7 + $0xc0] sm:$0xff]  }
 0x41f   :  { %7335 = vmatprep.subr.bf16.mxu0 %v10301_v26  ;;  %7417 = vmatprep.subr.bf16.mxu1 %v10304_v9  ;;  %v10385_v25 = vld [vmem:[%s13603_s7] sm:$0xff]   ;;  %v6498_v9 = vpack.c.bf16 %v13297_v52, %v13297_v52  ;;  %v10390_v52 = vld [vmem:[%s13603_s7 + $0x88] sm:$0xff]  }
 0x420   :  { %v10386_v26 = vld [vmem:[%s13603_s7 + $0x80] sm:$0xff]  }
 0x422   :  { %7336 = vmatpush1.bf16.msra.mxu0 %v10299_v27  ;;  %7418 = vmatpush1.bf16.msra.mxu1 %v10302_v28  ;;  %v10387_v27 = vld [vmem:[%s13603_s7 + $0x48] sm:$0xff]  }
 0x423   :  { %7337 = vmatprep.subr.bf16.mxu0 %v10307_v44  ;;  %7419 = vmatprep.subr.bf16.mxu1 %v10310_v29  ;;  %v10388_v28 = vld [vmem:[%s13603_s7 + $0xc8] sm:$0xff]   ;;  %v10391_v29 = vld [vmem:[%s13603_s7 + $0x50] sm:$0xff]  }
 0x424   :  { %v10389_v44 = vld [vmem:[%s13603_s7 + $0x8] sm:$0xff]  }
 0x426   :  { %7338 = vmatpush1.bf16.msra.mxu0 %v10305_v30  ;;  %7420 = vmatpush1.bf16.msra.mxu1 %v10308_v33  ;;  %v10392_v30 = vld [vmem:[%s13603_s7 + $0xd0] sm:$0xff]  }
 0x427   :  { %7339 = vmatprep.subr.bf16.mxu0 %v10313_v34  ;;  %7421 = vmatprep.subr.bf16.mxu1 %v10316_v60  ;;  %v10393_v33 = vld [vmem:[%s13603_s7 + $0x10] sm:$0xff]   ;;  %v10395_v60 = vld [vmem:[%s13603_s7 + $0x58] sm:$0xff]  }
 0x428   :  { %v10394_v34 = vld [vmem:[%s13603_s7 + $0x90] sm:$0xff]  }
 0x42a   :  { %7340 = vmatpush1.bf16.msra.mxu0 %v10311_v20  ;;  %7422 = vmatpush1.bf16.msra.mxu1 %v10314_v37  ;;  %v10396_v20 = vld [vmem:[%s13603_s7 + $0xd8] sm:$0xff]  }
 0x42b   :  { %7341 = vmatprep.subr.bf16.mxu0 %v10319_v38  ;;  %7423 = vmatprep.subr.bf16.mxu1 %v10322_v40  ;;  %v10397_v37 = vld [vmem:[%s13603_s7 + $0x18] sm:$0xff]   ;;  %v10399_v40 = vld [vmem:[%s13603_s7 + $0x60] sm:$0xff]  }
 0x42c   :  { %v10398_v38 = vld [vmem:[%s13603_s7 + $0x98] sm:$0xff]  }
 0x42e   :  { %7342 = vmatpush1.bf16.msra.mxu0 %v10317_v41  ;;  %7424 = vmatpush1.bf16.msra.mxu1 %v10320_v55  ;;  %v10400_v41 = vld [vmem:[%s13603_s7 + $0xe0] sm:$0xff]  }
 0x42f   :  { %7343 = vmatprep.subr.bf16.mxu0 %v10325_v42  ;;  %7425 = vmatprep.subr.bf16.mxu1 %v10328_v45  ;;  %v10401_v55 = vld [vmem:[%s13603_s7 + $0x20] sm:$0xff]   ;;  %v10403_v45 = vld [vmem:[%s13603_s7 + $0x68] sm:$0xff]  }
 0x430   :  { %v10402_v42 = vld [vmem:[%s13603_s7 + $0xa0] sm:$0xff]  }
 0x432   :  { %7344 = vmatpush1.bf16.msra.mxu0 %v10323_v46  ;;  %7426 = vmatpush1.bf16.msra.mxu1 %v10326_v47  ;;  %v10404_v46 = vld [vmem:[%s13603_s7 + $0xe8] sm:$0xff]  }
 0x433   :  { %7345 = vmatprep.subr.bf16.mxu0 %v10331_v48  ;;  %7427 = vmatprep.subr.bf16.mxu1 %v10334_v51  ;;  %v10405_v47 = vld [vmem:[%s13603_s7 + $0x28] sm:$0xff]   ;;  %v10407_v51 = vld [vmem:[%s13603_s7 + $0x70] sm:$0xff]  }
 0x434   :  { %v10406_v48 = vld [vmem:[%s13603_s7 + $0xa8] sm:$0xff]  }
 0x436   :  { %7346 = vmatpush1.bf16.msra.mxu0 %v10329_v54  ;;  %7428 = vmatpush1.bf16.msra.mxu1 %v10332_v39  ;;  %v10408_v54 = vld [vmem:[%s13603_s7 + $0xf0] sm:$0xff]  }
 0x437   :  { %7347 = vmatprep.subr.bf16.mxu0 %v10337_v56  ;;  %7429 = vmatprep.subr.bf16.mxu1 %v10340_v57  ;;  %v10409_v39 = vld [vmem:[%s13603_s7 + $0x30] sm:$0xff]   ;;  %v10411_v57 = vld [vmem:[%s13603_s7 + $0x78] sm:$0xff]  }
 0x438   :  { %v10410_v56 = vld [vmem:[%s13603_s7 + $0xb0] sm:$0xff]  }
 0x43a   :  { %7348 = vmatpush1.bf16.msra.mxu0 %v10335_v58  ;;  %7430 = vmatpush1.bf16.msra.mxu1 %v10338_v50  ;;  %v10412_v58 = vld [vmem:[%s13603_s7 + $0xf8] sm:$0xff]  }
 0x43b   :  { %7349 = vmatprep.subr.bf16.mxu0 %v10343_v59  ;;  %7431 = vmatprep.subr.bf16.mxu1 %v10346_v61  ;;  %v10413_v50 = vld [vmem:[%s13603_s7 + $0x38] sm:$0xff]   ;;  %v6628_v61 = vld [vmem:[%s13605_s6] sm:$0xf] }
 0x43c   :  { %v10414_v59 = vld [vmem:[%s13603_s7 + $0xb8] sm:$0xff]  }
 0x43e   :  { %7350 = vmatpush1.bf16.msra.mxu0 %v10341_v32  ;;  %7432 = vmatpush1.bf16.msra.mxu1 %v10344_v3  ;;  %v6633_v32 = vrot.slane %v6628_v61, %v11541_v63  ;;  %v6641_v3 = vrot.slane %v6628_v61, %v11544_v0 }
 0x43f   :  { %7351 = vmatprep.subr.bf16.mxu0 %v10349_v4  ;;  %7433 = vmatprep.subr.bf16.mxu1 %v10352_v35  ;;  %v6637_v4 = vrot.slane %v6628_v61, %v11547_v1  ;;  %v6645_v35 = vrot.slane %v6628_v61, %v11550_v2 }
 0x442   :  { %7352 = vmatpush1.bf16.msra.mxu0 %v10347_v5  ;;  %7434 = vmatpush1.bf16.msra.mxu1 %v10350_v6 }
 0x443   :  { %7353 = vmatprep.subr.bf16.mxu0 %v10355_v16  ;;  %7435 = vmatprep.subr.bf16.mxu1 %v10358_v23 }
 0x446   :  { %7354 = vmatpush1.bf16.msra.mxu0 %v10353_v7  ;;  %7436 = vmatpush1.bf16.msra.mxu1 %v10356_v8 }
 0x447   :  { %7355 = vmatprep.subr.bf16.mxu0 %v10361_v10  ;;  %7437 = vmatprep.subr.bf16.mxu1 %v10364_v31 }
 0x44a   :  { %7356 = vmatpush1.bf16.msra.mxu0 %v10359_v11  ;;  %7438 = vmatpush1.bf16.msra.mxu1 %v10362_v12 }
 0x44b   :  { %7357 = vmatprep.subr.bf16.mxu0 %v10367_v13  ;;  %7439 = vmatprep.subr.bf16.mxu1 %v10370_v14 }
 0x44e   :  { %7358 = vmatpush1.bf16.msra.mxu0 %v10365_v43  ;;  %7440 = vmatpush1.bf16.msra.mxu1 %v10368_v15 }
 0x44f   :  { %7359 = vmatprep.subr.bf16.mxu0 %v10373_v53  ;;  %7441 = vmatprep.subr.bf16.mxu1 %v10376_v17 }
 0x452   :  { %7360 = vmatpush1.bf16.msra.mxu0 %v10371_v18  ;;  %7442 = vmatpush1.bf16.msra.mxu1 %v10374_v19 }
 0x453   :  { %7361 = vmatprep.subr.bf16.mxu0 %v10379_v21  ;;  %7443 = vmatprep.subr.bf16.mxu1 %v10382_v62  ;;  %v8758_v21 = vld [vmem:[%s13606_s8] ss:$0 sm:$0xff] }
 0x456   :  { %7362 = vmatpush1.bf16.msra.mxu0 %v10377_v49  ;;  %7444 = vmatpush1.bf16.msra.mxu1 %v10380_v36 }
 0x457   :  { %8836 = vmatprep.subr.bf16.mxu0 %v10383_v22  ;;  %8858 = vmatprep.subr.bf16.mxu1 %v10384_v24 }
 0x459   :  { %7364 = vmatmul.mubr.bf16.vlgmr.msra.gmra.mrb[20].mxu0 %v6498_v9  ;;  %7446 = vmatmul.mubr.bf16.vlgmr.msra.gmra.mrb[20].mxu1 %v6498_v9 }
 0x45a   :  { %8837 = vmatpush3.bf16.msra.mxu0 %v10385_v25  ;;  %8859 = vmatpush3.bf16.msra.mxu1 %v10386_v26 }
 0x45b   :  { %8838 = vmatprep.subr.bf16.mxu0 %v10387_v27  ;;  %8860 = vmatprep.subr.bf16.mxu1 %v10388_v28 }
 0x45e   :  { %8839 = vmatpush3.bf16.msra.mxu0 %v10389_v44  ;;  %8861 = vmatpush3.bf16.msra.mxu1 %v10390_v52 }
 0x45f   :  { %8840 = vmatprep.subr.bf16.mxu0 %v10391_v29  ;;  %8862 = vmatprep.subr.bf16.mxu1 %v10392_v30 }
 0x462   :  { %8841 = vmatpush3.bf16.msra.mxu0 %v10393_v33  ;;  %8863 = vmatpush3.bf16.msra.mxu1 %v10394_v34 }
 0x463   :  { %8842 = vmatprep.subr.bf16.mxu0 %v10395_v60  ;;  %8864 = vmatprep.subr.bf16.mxu1 %v10396_v20 }
 0x466   :  { %8843 = vmatpush3.bf16.msra.mxu0 %v10397_v37  ;;  %8865 = vmatpush3.bf16.msra.mxu1 %v10398_v38 }
 0x467   :  { %8844 = vmatprep.subr.bf16.mxu0 %v10399_v40  ;;  %8866 = vmatprep.subr.bf16.mxu1 %v10400_v41 }
 0x46a   :  { %8845 = vmatpush3.bf16.msra.mxu0 %v10401_v55  ;;  %8867 = vmatpush3.bf16.msra.mxu1 %v10402_v42 }
 0x46b   :  { %8846 = vmatprep.subr.bf16.mxu0 %v10403_v45  ;;  %8868 = vmatprep.subr.bf16.mxu1 %v10404_v46 }
 0x46e   :  { %8847 = vmatpush3.bf16.msra.mxu0 %v10405_v47  ;;  %8869 = vmatpush3.bf16.msra.mxu1 %v10406_v48 }
 0x46f   :  { %8848 = vmatprep.subr.bf16.mxu0 %v10407_v51  ;;  %8870 = vmatprep.subr.bf16.mxu1 %v10408_v54 }
 0x472   :  { %8849 = vmatpush3.bf16.msra.mxu0 %v10409_v39  ;;  %8871 = vmatpush3.bf16.msra.mxu1 %v10410_v56 }
 0x473   :  { %8850 = vmatprep.subr.bf16.mxu0 %v10411_v57  ;;  %8872 = vmatprep.subr.bf16.mxu1 %v10412_v58 }
 0x476   :  { %8851 = vmatpush3.bf16.msra.mxu0 %v10413_v50  ;;  %8873 = vmatpush3.bf16.msra.mxu1 %v10414_v59 }
 0x52c   :  { %v7365_v5 = vpop.f32.mrb[20].mxu0  ;;  %v7447_v6 = vpop.f32.mrb[20].mxu1 }
 0x52d   :  { %v8896_v16 = vadd.f32 %v7365_v5, %v6633_v32  ;;  %v8898_v23 = vadd.f32 %v7447_v6, %v6641_v3  ;;  %v7367_v7 = vpop.f32.mrb[21].mxu0  ;;  %v7449_v8 = vpop.f32.mrb[21].mxu1 }
 0x52e   :  { %v8897_v10 = vadd.f32 %v7367_v7, %v6637_v4  ;;  %v8899_v31 = vadd.f32 %v7449_v8, %v6645_v35  ;;  %v7369_v11 = vpop.f32.mrb[22].mxu0  ;;  %v7451_v12 = vpop.f32.mrb[22].mxu1 }
 0x52f   :  { %v7454_v13 = vmax.f32 %v8896_v16, 0.0  ;;  %v7456_v14 = vmax.f32 %v8898_v23, 0.0  ;;  %v7370_v43 = vpop.f32.mrb[23].mxu0  ;;  %v7452_v63 = vpop.f32.mrb[23].mxu1 }
 0x530   :  { %v7455_v15 = vmax.f32 %v8897_v10, 0.0  ;;  %v7457_v0 = vmax.f32 %v8899_v31, 0.0 }
 0x531   :  { %v7458_v17 = vpack.c.bf16 %v7454_v13, %v7454_v13  ;;  %v7460_v2 = vpack.c.bf16 %v7456_v14, %v7456_v14 }
 0x532   :  { %v7459_v53 = vpack.c.bf16 %v7455_v15, %v7455_v15  ;;  %v7461_v1 = vpack.c.bf16 %v7457_v0, %v7457_v0 }
 0x534   :  { %7757 = vmatprep.mubr.bf16.mxu0 %v7459_v53  ;;  %7797 = vmatprep.mubr.bf16.mxu1 %v7461_v1 }
 0x535   :  { %7758 = vmatmul.mubr.bf16.vlgmr.msra.gmra.mrb[24].mxu0 %v7458_v17  ;;  %7798 = vmatmul.mubr.bf16.vlgmr.msra.gmra.mrb[24].mxu1 %v7460_v2 }
 0x608   :  { %v8852_v18 = vpop.f32.mrb[24].mxu0  ;;  %v8874_v19 = vpop.f32.mrb[24].mxu1 }
 0x609   :  { %v8853_v62 = vpop.f32.mrb[25].mxu0  ;;  %v8875_v49 = vpop.f32.mrb[25].mxu1 }
 0x60a   :  { %v8854_v36 = vadd.f32 %v8853_v62, %v8852_v18  ;;  %v8876_v22 = vadd.f32 %v8875_v49, %v8874_v19  ;;  %v8855_v24 = vpop.f32.mrb[26].mxu0  ;;  %v8877_v25 = vpop.f32.mrb[26].mxu1 }
 0x60b   :  { %v8856_v26 = vpop.f32.mrb[27].mxu0  ;;  %v8878_v9 = vpop.f32.mrb[27].mxu1 }
 0x60c   :  { %v7760_v27 = vadd.f32 %v8854_v36, %v8758_v21 }
 0x60e   :  { %v7800_v28 = vadd.f32 %v8876_v22, %v7760_v27 }
 0x610   :  { %7806 = vst.msk [vmem:[%s13607_s9] sm:$0x3] %vm7805_vm2, %v7800_v28 }

</bundles_post_ra>
